<compile_context>
chip_gen: v5e
topology: v5e:2x2
jax: 0.10.0
libtpu: 0.0.40
codegen_flags: <defaults>
</compile_context>

<pallas_src>
import math
from functools import partial

import jax
import jax.numpy as jnp
from jax.experimental import pallas as pl
from jax.experimental.pallas import tpu as pltpu


# ---------------------------------------------------------------------------
# Pallas kernel: 3x3 conv + bias + PReLU, stored in pixel-shuffled layout
# ---------------------------------------------------------------------------
def _conv_shuffle_prelu_kernel(x_ref, w_ref, b_ref, a_ref, o_ref,
                               *, TH, W, KS, r, C):
    # x_ref: (Hp, W, KS*Cin) bf16  width-shifted padded image (one batch elem)
    # w_ref: (KS, KS*Cin, Cout) bf16  weights, Cout permuted to (i, j, c) order
    # b_ref: (1, Cout) f32            bias, same Cout order
    # a_ref: (1,) f32 (SMEM)          PReLU alpha (single shared parameter)
    # o_ref: (TH, r, W, r*C) f32      pixel-shuffled output block
    rb = pl.program_id(1)
    h0 = rb * TH
    M = TH * W
    KC = w_ref.shape[1]
    rc = r * C

    # KS MXU dots per grid step: M = TH*W, K = KS*Cin, N = Cout.
    def tap(dh):
        slab = x_ref[pl.ds(h0 + dh, TH), :, :].reshape(M, KC)
        return jnp.dot(slab, w_ref[dh], preferred_element_type=jnp.float32)

    acc = tap(0)                       # init from first tap (no zero + add)
    for dh in range(1, KS):
        acc = acc + tap(dh)

    y = acc + b_ref[...]                                    # fused bias (f32)
    alpha = a_ref[0]
    y = jnp.where(y >= 0.0, y, alpha * y).astype(o_ref.dtype)   # fused PReLU

    # PixelShuffle: column block i (lane-aligned, r*C wide) is output sub-row i.
    for i in range(r):
        o_ref[:, i, :, :] = y[:, i * rc:(i + 1) * rc].reshape(TH, W, rc)


# ---------------------------------------------------------------------------
# Wrapper: NCHW -> kernel (conv+shuffle+PReLU) -> NCHW
# ---------------------------------------------------------------------------
def subpixel_conv_block(x_nchw, w, b, alpha, scaling_factor=2):
    """Forward of SubPixelConvolutionalBlock.

    x_nchw: (N, C, H, W);  w: (C*r^2, C, k, k) PyTorch OIHW;  b: (C*r^2,)
    alpha: scalar shared PReLU parameter.  Returns (N, C, H*r, W*r).
    """
    Nb, Cin, H, W = x_nchw.shape
    Cout, _, KS, _ = w.shape
    r = scaling_factor
    C = Cout // (r * r)
    pad = KS // 2
    KC = KS * Cin
    Hp = H + 2 * pad

    # PReLU-before-PixelShuffle is only exact for the single shared-alpha PReLU.
    assert jnp.asarray(alpha).size == 1, "per-channel PReLU is not supported"
    assert C == Cin and Cout == C * r * r

    # ---- input prep (wrapper-side XLA): NCHW -> NHWC, zero-pad, fold kw taps --
    x_nhwc = jnp.transpose(x_nchw, (0, 2, 3, 1))
    x_pad = jnp.pad(x_nhwc, ((0, 0), (pad, pad), (pad, pad), (0, 0)))
    # Width-shift "im2col" over kw only: (N, Hp, W, KS*Cin); kernel contraction
    # depth becomes KS*Cin instead of Cin, with no in-kernel concatenation.
    x_cat = jnp.concatenate([x_pad[:, :, dw:dw + W, :] for dw in range(KS)],
                            axis=-1).astype(jnp.bfloat16)

    # ---- weight/bias prep: fold PixelShuffle's channel permutation in --------
    # torch OIHW with O = c*r^2 + i*r + j  ->  (kh, kw*Cin, i*r*C + j*C + c)
    w6 = w.reshape(C, r, r, Cin, KS, KS)
    w6 = jnp.transpose(w6, (4, 5, 3, 1, 2, 0))        # (kh, kw, cin, i, j, c)
    w_k = w6.reshape(KS, KC, r * r * C).astype(jnp.bfloat16)
    b_k = jnp.transpose(b.reshape(C, r, r), (1, 2, 0)).reshape(1, r * r * C)
    b_k = b_k.astype(jnp.float32)
    alpha_s = jnp.asarray(alpha, jnp.float32).reshape(1)

    # Row block: aim for M = TH*W ~ 256 MXU rows (v6e/v7x), capped for VMEM.
    cand = [t for t in (32, 16, 8, 4, 2, 1) if H % t == 0 and t * W <= 2048]
    TH = cand[0] if cand else 1
    nrb = H // TH

    out_dtype = x_nchw.dtype
    kernel = partial(_conv_shuffle_prelu_kernel, TH=TH, W=W, KS=KS, r=r, C=C)

    # VMEM budget: double-buffered blocks + headroom, capped at 64 MiB (v7x-safe).
    blk = (Hp * W * KC * 2 + KS * KC * Cout * 2 + Cout * 4
           + TH * r * W * r * C * jnp.dtype(out_dtype).itemsize)
    vmem_limit = int(min(max(2 * blk + (8 << 20), 32 << 20), 64 << 20))

    # TODO(synk): for large images, replace the resident full-image block with a
    # halo-tiled (TH + 2*pad)-row window (manual DMA / Buffered(1) specs).
    out4d = pl.pallas_call(
        kernel,
        out_shape=jax.ShapeDtypeStruct((Nb * H, r, W, r * C), out_dtype),
        grid=(Nb, nrb),
        in_specs=[
            # Full (width-shifted) padded image per batch element; index ignores
            # rb so it is DMA'd once per n and stays resident across row blocks.
            pl.BlockSpec((None, Hp, W, KC), lambda n, rb: (n, 0, 0, 0)),
            # Weights / bias: constant index -> fetched once, stay resident.
            pl.BlockSpec((KS, KC, r * r * C), lambda n, rb: (0, 0, 0)),
            pl.BlockSpec((1, r * r * C), lambda n, rb: (0, 0)),
            # PReLU alpha: scalar in SMEM.
            pl.BlockSpec(memory_space=pltpu.MemorySpace.SMEM),
        ],
        # Already pixel-shuffled, lane-dense output block (last dim r*C = 128).
        out_specs=pl.BlockSpec((TH, r, W, r * C),
                               lambda n, rb: (n * nrb + rb, 0, 0, 0)),
        compiler_params=pltpu.CompilerParams(
            dimension_semantics=("parallel", "parallel"),
            vmem_limit_bytes=vmem_limit),
    )(x_cat, w_k, b_k, alpha_s)

    # Free reshape (dims already in (n, h, i, w, j, c) row-major order) followed
    # by one NHWC -> NCHW transpose.
    out_nhwc = out4d.reshape(Nb, H * r, W * r, C)
    return jnp.transpose(out_nhwc, (0, 3, 1, 2))


# ---------------------------------------------------------------------------
# Pure-JAX reference (lax conv + pixel shuffle + PReLU) for verification
# ---------------------------------------------------------------------------
def reference_forward(x_nchw, w, b, alpha, r):
    pad = w.shape[2] // 2
    y = jax.lax.conv_general_dilated(
        x_nchw, w, window_strides=(1, 1), padding=((pad, pad), (pad, pad)),
        dimension_numbers=("NCHW", "OIHW", "NCHW"))
    y = y + b.reshape(1, -1, 1, 1)
    N, Co, H, W = y.shape
    C = Co // (r * r)
    y = y.reshape(N, C, r, r, H, W)
    y = jnp.transpose(y, (0, 1, 4, 2, 5, 3)).reshape(N, C, H * r, W * r)
    return jnp.where(y >= 0.0, y, alpha * y)


# ---------------------------------------------------------------------------
# Deterministic parameter init (mirrors nn.Conv2d / nn.PReLU defaults)
# ---------------------------------------------------------------------------
def init_params(key, n_channels=64, scaling_factor=2, kernel_size=3):
    cout = n_channels * scaling_factor ** 2
    fan_in = n_channels * kernel_size * kernel_size
    bound = 1.0 / math.sqrt(fan_in)
    kw, kb = jax.random.split(key)
    w = jax.random.uniform(kw, (cout, n_channels, kernel_size, kernel_size),
                           jnp.float32, -bound, bound)
    b = jax.random.uniform(kb, (cout,), jnp.float32, -bound, bound)
    alpha = jnp.float32(0.25)          # nn.PReLU() default: 1 shared param, 0.25
    return w, b, alpha


if __name__ == "__main__":
    key = jax.random.PRNGKey(0)
    kx, kp = jax.random.split(key)

    # Module defaults: n_channels=64, kernel_size=3, scaling_factor=2.
    N, C, H, W, r = 2, 64, 16, 16, 2
    x = jax.random.normal(kx, (N, C, H, W), jnp.float32)
    w, b, alpha = init_params(kp, n_channels=C, scaling_factor=r, kernel_size=3)

    fwd = jax.jit(partial(subpixel_conv_block, scaling_factor=r))
    out = jax.block_until_ready(fwd(x, w, b, alpha))
    assert out.shape == (N, C, H * r, W * r) and out.dtype == jnp.float32

    ref = jax.block_until_ready(reference_forward(x, w, b, alpha, r))
    err = float(jnp.max(jnp.abs(out - ref)))
    assert jnp.allclose(out, ref, rtol=2e-2, atol=2e-2), err

    print("KERNEL_OK")
</pallas_src>

<mosaic_0001>
module attributes {stable_mosaic.version = 11 : i64} {
  func.func @_conv_shuffle_prelu_kernel(%arg0: i32, %arg1: i32, %arg2: memref<1x18x16x192xbf16, #tpu.memory_space<vmem>>, %arg3: memref<3x192x256xbf16, #tpu.memory_space<vmem>>, %arg4: memref<1x256xf32, #tpu.memory_space<vmem>>, %arg5: memref<1xf32, #tpu.memory_space<smem>>, %arg6: memref<16x2x16x128xf32, #tpu.memory_space<vmem>>) attributes {dimension_semantics = [#tpu.dimension_semantics<parallel>, #tpu.dimension_semantics<parallel>], iteration_bounds = array<i64: 2, 1>, scalar_prefetch = 0 : i64, scratch_operands = 0 : i64, tpu.core_type = #tpu.core_type<tc>, window_params = [{transform_indices = @transform_0, window_bounds = array<i64: 1, 18, 16, 192>}, {pipeline_mode = #tpu.pipeline_mode<synchronous>, transform_indices = @transform_1, window_bounds = array<i64: 3, 192, 256>}, {pipeline_mode = #tpu.pipeline_mode<synchronous>, transform_indices = @transform_2, window_bounds = array<i64: 1, 256>}, {transform_indices = @transform_3, window_bounds = array<i64: 1>}, {transform_indices = @transform_4, window_bounds = array<i64: 16, 2, 16, 128>}]} {
    %c16_i32 = arith.constant 16 : i32
    %0 = arith.muli %arg1, %c16_i32 : i32
    %c0_i32 = arith.constant 0 : i32
    %1 = arith.addi %0, %c0_i32 : i32
    %c0 = arith.constant 0 : index
    %2 = arith.index_cast %1 : i32 to index
    %c0_0 = arith.constant 0 : index
    %c0_1 = arith.constant 0 : index
    %3 = vector.load %arg2[%c0, %2, %c0_0, %c0_1] : memref<1x18x16x192xbf16, #tpu.memory_space<vmem>>, vector<1x16x16x192xbf16>
    %4 = vector.shape_cast %3 : vector<1x16x16x192xbf16> to vector<16x16x192xbf16>
    %5 = vector.shape_cast %4 : vector<16x16x192xbf16> to vector<256x192xbf16>
    %c0_2 = arith.constant 0 : index
    %c0_3 = arith.constant 0 : index
    %c0_4 = arith.constant 0 : index
    %6 = vector.load %arg3[%c0_2, %c0_3, %c0_4] : memref<3x192x256xbf16, #tpu.memory_space<vmem>>, vector<1x192x256xbf16>
    %7 = vector.shape_cast %6 : vector<1x192x256xbf16> to vector<192x256xbf16>
    %cst = arith.constant dense<0.000000e+00> : vector<256x256xf32>
    %8 = tpu.matmul %5, %7, %cst {dimension_numbers = #tpu.dot_dimension_numbers<[1], [0], [0], [1], [0, 0, 1, 1], [], []>} : vector<256x192xbf16>, vector<192x256xbf16>, vector<256x256xf32> -> vector<256x256xf32>
    %c1_i32 = arith.constant 1 : i32
    %9 = arith.addi %0, %c1_i32 : i32
    %c0_5 = arith.constant 0 : index
    %10 = arith.index_cast %9 : i32 to index
    %c0_6 = arith.constant 0 : index
    %c0_7 = arith.constant 0 : index
    %11 = vector.load %arg2[%c0_5, %10, %c0_6, %c0_7] : memref<1x18x16x192xbf16, #tpu.memory_space<vmem>>, vector<1x16x16x192xbf16>
    %12 = vector.shape_cast %11 : vector<1x16x16x192xbf16> to vector<16x16x192xbf16>
    %13 = vector.shape_cast %12 : vector<16x16x192xbf16> to vector<256x192xbf16>
    %c1 = arith.constant 1 : index
    %c0_8 = arith.constant 0 : index
    %c0_9 = arith.constant 0 : index
    %14 = vector.load %arg3[%c1, %c0_8, %c0_9] : memref<3x192x256xbf16, #tpu.memory_space<vmem>>, vector<1x192x256xbf16>
    %15 = vector.shape_cast %14 : vector<1x192x256xbf16> to vector<192x256xbf16>
    %cst_10 = arith.constant dense<0.000000e+00> : vector<256x256xf32>
    %16 = tpu.matmul %13, %15, %cst_10 {dimension_numbers = #tpu.dot_dimension_numbers<[1], [0], [0], [1], [0, 0, 1, 1], [], []>} : vector<256x192xbf16>, vector<192x256xbf16>, vector<256x256xf32> -> vector<256x256xf32>
    %17 = arith.addf %8, %16 : vector<256x256xf32>
    %c2_i32 = arith.constant 2 : i32
    %18 = arith.addi %0, %c2_i32 : i32
    %c0_11 = arith.constant 0 : index
    %19 = arith.index_cast %18 : i32 to index
    %c0_12 = arith.constant 0 : index
    %c0_13 = arith.constant 0 : index
    %20 = vector.load %arg2[%c0_11, %19, %c0_12, %c0_13] : memref<1x18x16x192xbf16, #tpu.memory_space<vmem>>, vector<1x16x16x192xbf16>
    %21 = vector.shape_cast %20 : vector<1x16x16x192xbf16> to vector<16x16x192xbf16>
    %22 = vector.shape_cast %21 : vector<16x16x192xbf16> to vector<256x192xbf16>
    %c2 = arith.constant 2 : index
    %c0_14 = arith.constant 0 : index
    %c0_15 = arith.constant 0 : index
    %23 = vector.load %arg3[%c2, %c0_14, %c0_15] : memref<3x192x256xbf16, #tpu.memory_space<vmem>>, vector<1x192x256xbf16>
    %24 = vector.shape_cast %23 : vector<1x192x256xbf16> to vector<192x256xbf16>
    %cst_16 = arith.constant dense<0.000000e+00> : vector<256x256xf32>
    %25 = tpu.matmul %22, %24, %cst_16 {dimension_numbers = #tpu.dot_dimension_numbers<[1], [0], [0], [1], [0, 0, 1, 1], [], []>} : vector<256x192xbf16>, vector<192x256xbf16>, vector<256x256xf32> -> vector<256x256xf32>
    %26 = arith.addf %17, %25 : vector<256x256xf32>
    %c0_17 = arith.constant 0 : index
    %c0_18 = arith.constant 0 : index
    %27 = vector.load %arg4[%c0_17, %c0_18] : memref<1x256xf32, #tpu.memory_space<vmem>>, vector<1x256xf32>
    %28 = vector.broadcast %27 : vector<1x256xf32> to vector<256x256xf32>
    %29 = arith.addf %26, %28 : vector<256x256xf32>
    %c0_19 = arith.constant 0 : index
    %30 = memref.load %arg5[%c0_19] : memref<1xf32, #tpu.memory_space<smem>>
    %cst_20 = arith.constant 0.000000e+00 : f32
    %31 = vector.broadcast %cst_20 : f32 to vector<256x256xf32>
    %32 = arith.cmpf oge, %29, %31 : vector<256x256xf32>
    %33 = vector.broadcast %30 : f32 to vector<256x256xf32>
    %34 = arith.mulf %33, %29 : vector<256x256xf32>
    %35 = arith.select %32, %29, %34 : vector<256x256xi1>, vector<256x256xf32>
    %36 = vector.extract_strided_slice %35 {offsets = [0, 0], sizes = [256, 128], strides = [1, 1]} : vector<256x256xf32> to vector<256x128xf32>
    %37 = vector.shape_cast %36 : vector<256x128xf32> to vector<16x16x128xf32>
    %c0_21 = arith.constant 0 : index
    %c0_22 = arith.constant 0 : index
    %c0_23 = arith.constant 0 : index
    %c0_24 = arith.constant 0 : index
    %38 = vector.load %arg6[%c0_21, %c0_22, %c0_23, %c0_24] : memref<16x2x16x128xf32, #tpu.memory_space<vmem>>, vector<16x1x16x128xf32>
    %39 = vector.shape_cast %38 : vector<16x1x16x128xf32> to vector<16x16x128xf32>
    %40 = vector.shape_cast %37 : vector<16x16x128xf32> to vector<16x1x16x128xf32>
    tpu.vector_store %arg6[%c0_21, %c0_22, %c0_23, %c0_24], %40 {strides = array<i32>} : memref<16x2x16x128xf32, #tpu.memory_space<vmem>>, vector<16x1x16x128xf32>,
    %41 = vector.extract_strided_slice %35 {offsets = [0, 128], sizes = [256, 128], strides = [1, 1]} : vector<256x256xf32> to vector<256x128xf32>
    %42 = vector.shape_cast %41 : vector<256x128xf32> to vector<16x16x128xf32>
    %c0_25 = arith.constant 0 : index
    %c1_26 = arith.constant 1 : index
    %c0_27 = arith.constant 0 : index
    %c0_28 = arith.constant 0 : index
    %43 = vector.load %arg6[%c0_25, %c1_26, %c0_27, %c0_28] : memref<16x2x16x128xf32, #tpu.memory_space<vmem>>, vector<16x1x16x128xf32>
    %44 = vector.shape_cast %43 : vector<16x1x16x128xf32> to vector<16x16x128xf32>
    %45 = vector.shape_cast %42 : vector<16x16x128xf32> to vector<16x1x16x128xf32>
    tpu.vector_store %arg6[%c0_25, %c1_26, %c0_27, %c0_28], %45 {strides = array<i32>} : memref<16x2x16x128xf32, #tpu.memory_space<vmem>>, vector<16x1x16x128xf32>,
    return
  }
  func.func @transform_0(%arg0: i32, %arg1: i32) -> (i32, i32, i32, i32) {
    %c0_i32 = arith.constant 0 : i32
    %c0_i32_0 = arith.constant 0 : i32
    %c0_i32_1 = arith.constant 0 : i32
    %c0_i32_2 = arith.constant 0 : i32
    return %arg0, %c0_i32, %c0_i32_0, %c0_i32_1 : i32, i32, i32, i32
  }
  func.func @transform_1(%arg0: i32, %arg1: i32) -> (i32, i32, i32) {
    %c0_i32 = arith.constant 0 : i32
    %c0_i32_0 = arith.constant 0 : i32
    %c0_i32_1 = arith.constant 0 : i32
    %c0_i32_2 = arith.constant 0 : i32
    return %c0_i32, %c0_i32_0, %c0_i32_1 : i32, i32, i32
  }
  func.func @transform_2(%arg0: i32, %arg1: i32) -> (i32, i32) {
    %c0_i32 = arith.constant 0 : i32
    %c0_i32_0 = arith.constant 0 : i32
    %c0_i32_1 = arith.constant 0 : i32
    return %c0_i32, %c0_i32_0 : i32, i32
  }
  func.func @transform_3(%arg0: i32, %arg1: i32) -> i32 {
    %c0_i32 = arith.constant 0 : i32
    %c0_i32_0 = arith.constant 0 : i32
    return %c0_i32 : i32
  }
  func.func @transform_4(%arg0: i32, %arg1: i32) -> (i32, i32, i32, i32) {
    %c1_i32 = arith.constant 1 : i32
    %0 = arith.muli %arg0, %c1_i32 : i32
    %1 = arith.addi %0, %arg1 : i32
    %c0_i32 = arith.constant 0 : i32
    %c0_i32_0 = arith.constant 0 : i32
    %c0_i32_1 = arith.constant 0 : i32
    %c0_i32_2 = arith.constant 0 : i32
    return %1, %c0_i32, %c0_i32_0, %c0_i32_1 : i32, i32, i32, i32
  }
}

</mosaic_0001>

<bundles_post_ra>
// kernel: subpixel_conv_block.1
= control target key start
LH: loop header
LB: loop body
LE: loop exit
PB: predicated region body
PF: predicated region fallthrough
CT: control target
= control target key end

     0   :  { %s4049_s17 = smov 0   ;;  %s4051_s18 = smov 0   ;;  %s5396_s0 = inlined_call_operand.vmem [shape: bf16[2,18,16,192], index: 0, kind: input, shape index: {}]   ;;  %s5397_s1 = inlined_call_operand.vmem [shape: bf16[3,192,256], index: 1, kind: input, shape index: {}]   ;;  %s5398_s2 = inlined_call_operand.vmem [shape: f32[1,256], index: 2, kind: input, shape index: {}]   ;;  %s5399_s3 = inlined_call_operand.<no memory space> [shape: f32[1], index: 3, kind: input, shape index: {}]   ;;  %s5400_s4 = inlined_call_operand.vmem [shape: f32[32,2,16,128], index: 4, kind: output, shape index: {}]  }
   0x1   :  { %9 = sst [smem:[#allocation2]] %s5399_s3  ;;  %s4053_s19 = smov 0  }
   0x2 LB: > { %s27_s3 = sadd.s32 1, %s4015_s18  ;;  %p2884_p0 = scmp.ge.s32.totalorder %s4019_s19, 1  ;;  %s4019_s19 = sphi %s4053_s19, %s15_s19   ;;  %s4015_s18 = sphi %s4051_s18, %s5488_s18   ;;  %s4011_s17 = sphi %s4049_s17, %s5487_s17  }
   0x3   : > { %p29_p1 = scmp.ge.s32.totalorder %s27_s3, 2  ;;  %p177_p2 = scmp.lt.s32.totalorder %s4019_s19, 3 }
   0x5   : > { %s5490_s3 = smov (%p29_p1, %s27_s3), 0  ;;  %p178_p3 = pnand %p2884_p0, %p177_p2 }
   0x7   : > { %181 = sbr.rel (%p178_p3) target bundleno = 950 (0x3b6), region = 36 }
   0xc   : > { %v3131_v0 = vld [vmem:[%s5397_s1 + $0x130] sm:$0xf]  ;;  %v3907_v1 = vld [vmem:[%s5397_s1 + $0x134] sm:$0xf0]  ;;  %v3906_v5 = vld [vmem:[%s5397_s1 + $0x134] sm:$0xf] }
   0xd   : > { %v3163_v2 = vld [vmem:[%s5397_s1 + $0x170] sm:$0xf]  ;;  %v3132_v3 = vor.u32 %v3907_v1, %v3131_v0  ;;  %v3915_v4 = vld [vmem:[%s5397_s1 + $0x174] sm:$0xf0]  ;;  %v3133_v6 = vld [vmem:[%s5397_s1 + $0x138] sm:$0xf0] }
   0xe   : > { %v3164_v7 = vor.u32 %v3915_v4, %v3163_v2  ;;  %v3136_v8 = vor.u32 %v3906_v5, %v3133_v6  ;;  %v3914_v9 = vld [vmem:[%s5397_s1 + $0x174] sm:$0xf]  ;;  %v3165_v10 = vld [vmem:[%s5397_s1 + $0x178] sm:$0xf0]  ;;  %v3123_v11 = vld [vmem:[%s5397_s1 + $0x120] sm:$0xf] }
   0xf   : > { %654 = vmatpush.bf16.msra.mxu0 %v3132_v3  ;;  %v3168_v12 = vor.u32 %v3914_v9, %v3165_v10  ;;  %v3905_v13 = vld [vmem:[%s5397_s1 + $0x124] sm:$0xf0]  ;;  %v3155_v14 = vld [vmem:[%s5397_s1 + $0x160] sm:$0xf]  ;;  %v3904_v18 = vld [vmem:[%s5397_s1 + $0x124] sm:$0xf] }
  0x10   : > { %v3913_v15 = vld [vmem:[%s5397_s1 + $0x164] sm:$0xf0]  ;;  %747 = vmatpush.bf16.msra.mxu1 %v3164_v7  ;;  %832 = vmatpush.bf16.msra.mxu2 %v3136_v8  ;;  %v3124_v16 = vor.u32 %v3905_v13, %v3123_v11  ;;  %v3125_v19 = vld [vmem:[%s5397_s1 + $0x128] sm:$0xf0]  ;;  %v3912_v20 = vld [vmem:[%s5397_s1 + $0x164] sm:$0xf] }
  0x11   : > { %v3156_v17 = vor.u32 %v3913_v15, %v3155_v14  ;;  %925 = vmatpush.bf16.msra.mxu3 %v3168_v12  ;;  %v3128_v21 = vor.u32 %v3904_v18, %v3125_v19  ;;  %v3157_v22 = vld [vmem:[%s5397_s1 + $0x168] sm:$0xf0]  ;;  %v3115_v23 = vld [vmem:[%s5397_s1 + $0x110] sm:$0xf]  ;;  %v3903_v24 = vld [vmem:[%s5397_s1 + $0x114] sm:$0xf0] }
  0x12   : > { %v3160_v25 = vor.u32 %v3912_v20, %v3157_v22  ;;  %v3147_v26 = vld [vmem:[%s5397_s1 + $0x150] sm:$0xf]  ;;  %v3911_v27 = vld [vmem:[%s5397_s1 + $0x154] sm:$0xf0]  ;;  %v3902_v28 = vld [vmem:[%s5397_s1 + $0x114] sm:$0xf]  ;;  %v3116_v29 = vor.u32 %v3903_v24, %v3115_v23 }
  0x13   : > { %655 = vmatpush.bf16.msra.mxu0 %v3124_v16  ;;  %v3117_v30 = vld [vmem:[%s5397_s1 + $0x118] sm:$0xf0]  ;;  %v3910_v31 = vld [vmem:[%s5397_s1 + $0x154] sm:$0xf]  ;;  %v3148_v33 = vor.u32 %v3911_v27, %v3147_v26  ;;  %v3107_v35 = vld [vmem:[%s5397_s1 + $0x100] sm:$0xf] }
  0x14   : > { %v3149_v32 = vld [vmem:[%s5397_s1 + $0x158] sm:$0xf0]  ;;  %748 = vmatpush.bf16.msra.mxu1 %v3156_v17  ;;  %833 = vmatpush.bf16.msra.mxu2 %v3128_v21  ;;  %v3120_v34 = vor.u32 %v3902_v28, %v3117_v30  ;;  %v3901_v36 = vld [vmem:[%s5397_s1 + $0x104] sm:$0xf0]  ;;  %v3139_v37 = vld [vmem:[%s5397_s1 + $0x140] sm:$0xf] }
  0x15   : > { %926 = vmatpush.bf16.msra.mxu3 %v3160_v25  ;;  %v3152_v38 = vor.u32 %v3910_v31, %v3149_v32  ;;  %v3909_v39 = vld [vmem:[%s5397_s1 + $0x144] sm:$0xf0]  ;;  %v3900_v40 = vld [vmem:[%s5397_s1 + $0x104] sm:$0xf]  ;;  %v3109_v41 = vld [vmem:[%s5397_s1 + $0x108] sm:$0xf0]  ;;  %v3108_v44 = vor.u32 %v3901_v36, %v3107_v35 }
  0x16   : > { %v3908_v42 = vld [vmem:[%s5397_s1 + $0x144] sm:$0xf]  ;;  %v3141_v43 = vld [vmem:[%s5397_s1 + $0x148] sm:$0xf0]  ;;  %p205_p4 = scmp.lt.s32.totalorder %s4011_s17, 1  ;;  %v3140_v45 = vor.u32 %v3909_v39, %v3139_v37  ;;  %v3112_v46 = vor.u32 %v3900_v40, %v3109_v41  ;;  %vm605_vm0 = vcmask 523264  }
  0x17   : > { %656 = vmatpush.bf16.msra.mxu0 %v3116_v29  ;;  %v3099_v47 = vld [vmem:[%s5397_s1 + $0xf0] sm:$0xf]  ;;  %v3899_v48 = vld [vmem:[%s5397_s1 + $0xf4] sm:$0xf0]  ;;  %v3144_v49 = vor.u32 %v3908_v42, %v3141_v43  ;;  %v3898_v50 = vld [vmem:[%s5397_s1 + $0xf4] sm:$0xf] }
  0x18   : > { %749 = vmatpush.bf16.msra.mxu1 %v3148_v33  ;;  %834 = vmatpush.bf16.msra.mxu2 %v3120_v34  ;;  %s206_s12 = scalar_select %p205_p4, %s4011_s17, 1  ;;  %v3101_v51 = vld [vmem:[%s5397_s1 + $0xf8] sm:$0xf0]  ;;  %v3100_v52 = vor.u32 %v3899_v48, %v3099_v47  ;;  %v3091_v53 = vld [vmem:[%s5397_s1 + $0xe0] sm:$0xf] }
  0x19   : > { %927 = vmatpush.bf16.msra.mxu3 %v3152_v38  ;;  %v3897_v54 = vld [vmem:[%s5397_s1 + $0xe4] sm:$0xf0]  ;;  %v3104_v57 = vor.u32 %v3898_v50, %v3101_v51  ;;  %v3896_v59 = vld [vmem:[%s5397_s1 + $0xe4] sm:$0xf]  ;;  %v3093_v60 = vld [vmem:[%s5397_s1 + $0xe8] sm:$0xf0] }
  0x1a   : > { %s3972_s20 = smul.u32 288, %s206_s12  ;;  %v3092_v61 = vor.u32 %v3897_v54, %v3091_v53  ;;  %v3083_v62 = vld [vmem:[%s5397_s1 + $0xd0] sm:$0xf]  ;;  %v3859_v0 = vld [vmem:[%s5397_s1 + $0xb4] sm:$0xf0]  ;;  %v3096_v5 = vor.u32 %v3896_v59, %v3093_v60  ;;  %s2886_s23 = sshll.u32 %s4011_s17, 4 }
  0x1b   : > { %657 = vmatpush.bf16.msra.mxu0 %v3108_v44  ;;  %v3419_v63 = vld [vmem:[%s5397_s1 + $0xb0] sm:$0xf]  ;;  %v3895_v1 = vld [vmem:[%s5397_s1 + $0xd4] sm:$0xf0]  ;;  %v3894_v7 = vld [vmem:[%s5397_s1 + $0xd4] sm:$0xf] }
  0x1c   : > { %750 = vmatpush.bf16.msra.mxu1 %v3140_v45  ;;  %835 = vmatpush.bf16.msra.mxu2 %v3112_v46  ;;  %s4182_s27 = scalar_lea.vmem %s5396_s0, %s3972_s20  ;;  %v3420_v2 = vor.u32 %v3859_v0, %v3419_v63  ;;  %v3387_v3 = vld [vmem:[%s5397_s1 + $0x70] sm:$0xf]  ;;  %v3851_v4 = vld [vmem:[%s5397_s1 + $0x74] sm:$0xf0]  ;;  %v3085_v8 = vld [vmem:[%s5397_s1 + $0xd8] sm:$0xf0]  ;;  %v3084_v9 = vor.u32 %v3895_v1, %v3083_v62 }
  0x1d   : > { %928 = vmatpush.bf16.msra.mxu3 %v3144_v49  ;;  %v3860_v55 = vld [vmem:[%s4182_s27 + $0x14] sm:$0xf]  ;;  %v2949_v56 = vld [vmem:[%s4182_s27 + $0x18] sm:$0xf0]  ;;  %v3388_v6 = vor.u32 %v3851_v4, %v3387_v3  ;;  %v3075_v10 = vld [vmem:[%s5397_s1 + $0xc0] sm:$0xf]  ;;  %v3088_v12 = vor.u32 %v3894_v7, %v3085_v8 }
  0x1e   : > { %v2952_v58 = vor.u32 %v3860_v55, %v2949_v56  ;;  %v3893_v11 = vld [vmem:[%s5397_s1 + $0xc4] sm:$0xf0]  ;;  %v3850_v13 = vld [vmem:[%s5397_s1 + $0x74] sm:$0xf]  ;;  %v3389_v14 = vld [vmem:[%s5397_s1 + $0x78] sm:$0xf0] }
  0x1f   : > { %658 = vmatpush.bf16.msra.mxu0 %v3100_v52  ;;  %v3892_v15 = vld [vmem:[%s5397_s1 + $0xc4] sm:$0xf]  ;;  %v3077_v16 = vld [vmem:[%s5397_s1 + $0xc8] sm:$0xf0]  ;;  %v2947_v17 = vld [vmem:[%s4182_s27 + $0x10] sm:$0xf]  ;;  %v3076_v18 = vor.u32 %v3893_v11, %v3075_v10  ;;  %v3392_v22 = vor.u32 %v3850_v13, %v3389_v14 }
  0x20   : > { %3169 = vmatmul.msk.bf16.vlgmr.msra.gmra.mxu1 %vm605_vm0, %v2952_v58  ;;  %3185 = vmatmul.msk.bf16.vlgmr.msra.gmra.mxu3 %vm605_vm0, %v2952_v58  ;;  %v3861_v19 = vld [vmem:[%s4182_s27 + $0x14] sm:$0xf0]  ;;  %v3858_v20 = vld [vmem:[%s5397_s1 + $0xb4] sm:$0xf]  ;;  %v3421_v21 = vld [vmem:[%s5397_s1 + $0xb8] sm:$0xf0]  ;;  %v3080_v23 = vor.u32 %v3892_v15, %v3077_v16 }
  0x21   : > { %836 = vmatpush.bf16.msra.mxu2 %v3104_v57  ;;  %1415 = vmatpush.bf16.msrb.mxu3 %v3420_v2  ;;  %v3862_v24 = vld [vmem:[%s4182_s27 + $0x24] sm:$0xf]  ;;  %v2957_v25 = vld [vmem:[%s4182_s27 + $0x28] sm:$0xf0]  ;;  %v2948_v26 = vor.u32 %v3861_v19, %v2947_v17  ;;  %v3424_v27 = vor.u32 %v3858_v20, %v3421_v21  ;;  %v3379_v29 = vld [vmem:[%s5397_s1 + $0x60] sm:$0xf] }
  0x22   : > { %1322 = vmatpush.bf16.msrb.mxu1 %v3388_v6  ;;  %v2960_v28 = vor.u32 %v3862_v24, %v2957_v25  ;;  %v3849_v30 = vld [vmem:[%s5397_s1 + $0x64] sm:$0xf0]  ;;  %v3848_v31 = vld [vmem:[%s5397_s1 + $0x64] sm:$0xf]  ;;  %v3381_v33 = vld [vmem:[%s5397_s1 + $0x68] sm:$0xf0] }
  0x23   : > { %659 = vmatpush.bf16.msra.mxu0 %v3092_v61  ;;  %v3380_v32 = vor.u32 %v3849_v30, %v3379_v29  ;;  %v3384_v34 = vor.u32 %v3848_v31, %v3381_v33  ;;  %v2955_v35 = vld [vmem:[%s4182_s27 + $0x20] sm:$0xf]  ;;  %v3863_v36 = vld [vmem:[%s4182_s27 + $0x24] sm:$0xf0]  ;;  %v3864_v37 = vld [vmem:[%s4182_s27 + $0x34] sm:$0xf] }
  0x24   : > { %v2965_v38 = vld [vmem:[%s4182_s27 + $0x38] sm:$0xf0]  ;;  %v2956_v39 = vor.u32 %v3863_v36, %v2955_v35  ;;  %v2963_v41 = vld [vmem:[%s4182_s27 + $0x30] sm:$0xf]  ;;  %v3865_v42 = vld [vmem:[%s4182_s27 + $0x34] sm:$0xf0] }
  0x25   : > { %837 = vmatpush.bf16.msra.mxu2 %v3096_v5  ;;  %v2968_v40 = vor.u32 %v3864_v37, %v2965_v38  ;;  %v3866_v43 = vld [vmem:[%s4182_s27 + $0x44] sm:$0xf]  ;;  %v2973_v44 = vld [vmem:[%s4182_s27 + $0x48] sm:$0xf0]  ;;  %v2964_v45 = vor.u32 %v3865_v42, %v2963_v41  ;;  %v3411_v47 = vld [vmem:[%s5397_s1 + $0xa0] sm:$0xf] }
  0x26   : > { %1323 = vmatpush.bf16.msrb.mxu1 %v3380_v32  ;;  %v2976_v46 = vor.u32 %v3866_v43, %v2973_v44  ;;  %v3857_v48 = vld [vmem:[%s5397_s1 + $0xa4] sm:$0xf0]  ;;  %v3856_v49 = vld [vmem:[%s5397_s1 + $0xa4] sm:$0xf]  ;;  %v3413_v51 = vld [vmem:[%s5397_s1 + $0xa8] sm:$0xf0] }
  0x27   : > { %660 = vmatpush.bf16.msra.mxu0 %v3084_v9  ;;  %v3412_v50 = vor.u32 %v3857_v48, %v3411_v47  ;;  %v3371_v52 = vld [vmem:[%s5397_s1 + $0x50] sm:$0xf]  ;;  %v3847_v53 = vld [vmem:[%s5397_s1 + $0x54] sm:$0xf0]  ;;  %v3416_v54 = vor.u32 %v3856_v49, %v3413_v51  ;;  %v3846_v56 = vld [vmem:[%s5397_s1 + $0x54] sm:$0xf] }
  0x28   : > { %v3372_v55 = vor.u32 %v3847_v53, %v3371_v52  ;;  %v3373_v57 = vld [vmem:[%s5397_s1 + $0x58] sm:$0xf0]  ;;  %v2971_v59 = vld [vmem:[%s4182_s27 + $0x40] sm:$0xf]  ;;  %v3867_v60 = vld [vmem:[%s4182_s27 + $0x44] sm:$0xf0] }
  0x29   : > { %838 = vmatpush.bf16.msra.mxu2 %v3088_v12  ;;  %1416 = vmatpush.bf16.msrb.mxu3 %v3412_v50  ;;  %v3376_v58 = vor.u32 %v3846_v56, %v3373_v57  ;;  %v3868_v61 = vld [vmem:[%s4182_s27 + $0x54] sm:$0xf]  ;;  %v2981_v62 = vld [vmem:[%s4182_s27 + $0x58] sm:$0xf0]  ;;  %v2972_v63 = vor.u32 %v3867_v60, %v2971_v59  ;;  %v2979_v1 = vld [vmem:[%s4182_s27 + $0x50] sm:$0xf] }
  0x2a   : > { %1324 = vmatpush.bf16.msrb.mxu1 %v3372_v55  ;;  %v2984_v0 = vor.u32 %v3868_v61, %v2981_v62  ;;  %v3869_v2 = vld [vmem:[%s4182_s27 + $0x54] sm:$0xf0]  ;;  %v3870_v3 = vld [vmem:[%s4182_s27 + $0x64] sm:$0xf]  ;;  %v2989_v4 = vld [vmem:[%s4182_s27 + $0x68] sm:$0xf0] }
  0x2b   : > { %661 = vmatpush.bf16.msra.mxu0 %v3076_v18  ;;  %v2980_v5 = vor.u32 %v3869_v2, %v2979_v1  ;;  %v2992_v6 = vor.u32 %v3870_v3, %v2989_v4  ;;  %v3363_v7 = vld [vmem:[%s5397_s1 + $0x40] sm:$0xf]  ;;  %v3845_v8 = vld [vmem:[%s5397_s1 + $0x44] sm:$0xf0]  ;;  %v3844_v9 = vld [vmem:[%s5397_s1 + $0x44] sm:$0xf] }
  0x2c   : > { %v3364_v10 = vor.u32 %v3845_v8, %v3363_v7  ;;  %v3365_v11 = vld [vmem:[%s5397_s1 + $0x48] sm:$0xf0]  ;;  %v2987_v13 = vld [vmem:[%s4182_s27 + $0x60] sm:$0xf]  ;;  %v3871_v14 = vld [vmem:[%s4182_s27 + $0x64] sm:$0xf0] }
  0x2d   : > { %839 = vmatpush.bf16.msra.mxu2 %v3080_v23  ;;  %v3368_v12 = vor.u32 %v3844_v9, %v3365_v11  ;;  %v3872_v15 = vld [vmem:[%s4182_s27 + $0x74] sm:$0xf]  ;;  %v2997_v16 = vld [vmem:[%s4182_s27 + $0x78] sm:$0xf0]  ;;  %v2988_v17 = vor.u32 %v3871_v14, %v2987_v13  ;;  %v2995_v19 = vld [vmem:[%s4182_s27 + $0x70] sm:$0xf] }
  0x2e   : > { %662 = vmatmul.bf16.vlgmr.msra.gmra.mxu0 %v2948_v26  ;;  %1325 = vmatpush.bf16.msrb.mxu1 %v3364_v10  ;;  %v3000_v18 = vor.u32 %v3872_v15, %v2997_v16  ;;  %v3873_v20 = vld [vmem:[%s4182_s27 + $0x74] sm:$0xf0]  ;;  %v3874_v21 = vld [vmem:[%s4182_s27 + $0x84] sm:$0xf]  ;;  %v3403_v25 = vld [vmem:[%s5397_s1 + $0x90] sm:$0xf] }
  0x2f   : > { %1500 = vmatpush.bf16.msrb.mxu0 %v3392_v22  ;;  %v3005_v22 = vld [vmem:[%s4182_s27 + $0x88] sm:$0xf0]  ;;  %v2996_v23 = vor.u32 %v3873_v20, %v2995_v19  ;;  %v3405_v29 = vld [vmem:[%s5397_s1 + $0x98] sm:$0xf0]  ;;  %v3355_v31 = vld [vmem:[%s5397_s1 + $0x30] sm:$0xf] }
  0x30   : > { %3170 = vmatmul.msk.bf16.gmra.mxu1 %vm605_vm0, %v2960_v28  ;;  %840 = vmatmul.bf16.vlgmr.msra.gmra.mxu2 %v2948_v26  ;;  %v3008_v24 = vor.u32 %v3874_v21, %v3005_v22  ;;  %v3855_v26 = vld [vmem:[%s5397_s1 + $0x94] sm:$0xf0]  ;;  %v3842_v33 = vld [vmem:[%s5397_s1 + $0x34] sm:$0xf]  ;;  %v3357_v35 = vld [vmem:[%s5397_s1 + $0x38] sm:$0xf0] }
  0x31   : > { %1593 = vmatpush.bf16.msrb.mxu2 %v3424_v27  ;;  %3186 = vmatmul.msk.bf16.gmra.mxu3 %vm605_vm0, %v2960_v28  ;;  %v3854_v27 = vld [vmem:[%s5397_s1 + $0x94] sm:$0xf]  ;;  %v3404_v28 = vor.u32 %v3855_v26, %v3403_v25  ;;  %v3843_v32 = vld [vmem:[%s5397_s1 + $0x34] sm:$0xf0]  ;;  %v3003_v36 = vld [vmem:[%s4182_s27 + $0x80] sm:$0xf]  ;;  %v3360_v38 = vor.u32 %v3842_v33, %v3357_v35 }
  0x32   : > { %v3408_v30 = vor.u32 %v3854_v27, %v3405_v29  ;;  %v3875_v37 = vld [vmem:[%s4182_s27 + $0x84] sm:$0xf0]  ;;  %v3877_v47 = vld [vmem:[%s4182_s27 + $0x94] sm:$0xf0]  ;;  %v3878_v48 = vld [vmem:[%s4182_s27 + $0xa4] sm:$0xf] }
  0x33   : > { %1501 = vmatpush.bf16.msrb.mxu0 %v3384_v34  ;;  %1417 = vmatpush.bf16.msrb.mxu3 %v3404_v28  ;;  %v3356_v34 = vor.u32 %v3843_v32, %v3355_v31  ;;  %v3004_v41 = vor.u32 %v3875_v37, %v3003_v36  ;;  %v3021_v49 = vld [vmem:[%s4182_s27 + $0xa8] sm:$0xf0]  ;;  %v3347_v62 = vld [vmem:[%s5397_s1 + $0x20] sm:$0xf]  ;;  %v3879_v4 = vld [vmem:[%s4182_s27 + $0xa4] sm:$0xf0] }
  0x34   : > { %v3349_v2 = vld [vmem:[%s5397_s1 + $0x28] sm:$0xf0]  ;;  %v3019_v3 = vld [vmem:[%s4182_s27 + $0xa0] sm:$0xf]  ;;  %v3029_v7 = vld [vmem:[%s4182_s27 + $0xb8] sm:$0xf0] }
  0x35   : > { %1594 = vmatpush.bf16.msrb.mxu2 %v3416_v54  ;;  %1326 = vmatpush.bf16.msrb.mxu1 %v3356_v34  ;;  %v3024_v54 = vor.u32 %v3878_v48, %v3021_v49  ;;  %v3020_v8 = vor.u32 %v3879_v4, %v3019_v3  ;;  %v3027_v22 = vld [vmem:[%s4182_s27 + $0xb0] sm:$0xf]  ;;  %v3037_v25 = vld [vmem:[%s4182_s27 + $0xc8] sm:$0xf0]  ;;  %v3395_v34 = vld [vmem:[%s5397_s1 + $0x80] sm:$0xf] }
  0x36   : > { %v3853_v35 = vld [vmem:[%s5397_s1 + $0x84] sm:$0xf0]  ;;  %v3852_v36 = vld [vmem:[%s5397_s1 + $0x84] sm:$0xf]  ;;  %v3838_v48 = vld [vmem:[%s5397_s1 + $0x14] sm:$0xf] }
  0x37   : > { %1502 = vmatpush.bf16.msrb.mxu0 %v3376_v58  ;;  %v3396_v37 = vor.u32 %v3853_v35, %v3395_v34  ;;  %v3837_v34 = vld [vmem:[%s5397_s1 + $0x4] sm:$0xf0]  ;;  %v3836_v35 = vld [vmem:[%s5397_s1 + $0x4] sm:$0xf]  ;;  %p212_p5 = scmp.lt.s32.totalorder %s2886_s23, 31  ;;  %s2541_s24 = sld [smem:[#allocation2]] }
  0x39   : > { %1595 = vmatpush.bf16.msrb.mxu2 %v3408_v30  ;;  %1418 = vmatpush.bf16.msrb.mxu3 %v3396_v37  ;;  %v3333_v37 = vld [vmem:[%s5397_s1 + $0x8] sm:$0xf0]  ;;  %s5492_s23 = smov (!%p212_p5, %s2886_s23), 31 }
  0x3a   : > { %s3803_s17 = sshll.u32 %s5492_s23, 5 }
  0x3b   : > { %1503 = vmatpush.bf16.msrb.mxu0 %v3368_v12  ;;  %s5088_s30 = scalar_lea.vmem %s5400_s4, %s3803_s17 }
  0x3e   : > { %667 = vmatmul.bf16.gmra.mxu0 %v2956_v39 }
  0x3f   : > { %1504 = vmatpush.bf16.msrb.mxu0 %v3360_v38  ;;  %v3397_v38 = vld [vmem:[%s5397_s1 + $0x88] sm:$0xf0] }
  0x40   : > { %3171 = vmatmul.msk.bf16.gmra.mxu1 %vm605_vm0, %v2968_v40  ;;  %845 = vmatmul.bf16.gmra.mxu2 %v2956_v39  ;;  %v3876_v39 = vld [vmem:[%s4182_s27 + $0x94] sm:$0xf] }
  0x41   : > { %3187 = vmatmul.msk.bf16.gmra.mxu3 %vm605_vm0, %v2968_v40  ;;  %v3013_v40 = vld [vmem:[%s4182_s27 + $0x98] sm:$0xf0] }
  0x42   : > { %v3016_v42 = vor.u32 %v3876_v39, %v3013_v40 }
  0x4e   : > { %672 = vmatmul.bf16.gmra.mxu0 %v2964_v45 }
  0x50   : > { %3172 = vmatmul.msk.bf16.gmra.mxu1 %vm605_vm0, %v2976_v46  ;;  %850 = vmatmul.bf16.gmra.mxu2 %v2964_v45 }
  0x51   : > { %3188 = vmatmul.msk.bf16.gmra.mxu3 %vm605_vm0, %v2976_v46  ;;  %v3011_v46 = vld [vmem:[%s4182_s27 + $0x90] sm:$0xf] }
  0x52   : > { %v3012_v50 = vor.u32 %v3877_v47, %v3011_v46  ;;  %v3339_v46 = vld [vmem:[%s5397_s1 + $0x10] sm:$0xf]  ;;  %v3839_v47 = vld [vmem:[%s5397_s1 + $0x14] sm:$0xf0] }
  0x53   : > { %v3340_v49 = vor.u32 %v3839_v47, %v3339_v46 }
  0x5e   : > { %677 = vmatmul.bf16.gmra.mxu0 %v2972_v63 }
  0x60   : > { %3173 = vmatmul.msk.bf16.gmra.mxu1 %vm605_vm0, %v2984_v0  ;;  %855 = vmatmul.bf16.gmra.mxu2 %v2972_v63  ;;  %v3841_v63 = vld [vmem:[%s5397_s1 + $0x24] sm:$0xf0] }
  0x61   : > { %3189 = vmatmul.msk.bf16.gmra.mxu3 %vm605_vm0, %v2984_v0  ;;  %v3840_v0 = vld [vmem:[%s5397_s1 + $0x24] sm:$0xf]  ;;  %v3348_v1 = vor.u32 %v3841_v63, %v3347_v62 }
  0x63   : > { %1327 = vmatpush.bf16.msrb.mxu1 %v3348_v1 }
  0x67   : > { %1328 = vmatpush.bf16.msrb.mxu1 %v3340_v49 }
  0x6e   : > { %682 = vmatmul.bf16.gmra.mxu0 %v2980_v5 }
  0x70   : > { %3174 = vmatmul.msk.bf16.gmra.mxu1 %vm605_vm0, %v2992_v6  ;;  %860 = vmatmul.bf16.gmra.mxu2 %v2980_v5  ;;  %v3352_v5 = vor.u32 %v3840_v0, %v3349_v2 }
  0x71   : > { %3190 = vmatmul.msk.bf16.gmra.mxu3 %vm605_vm0, %v2992_v6  ;;  %v3880_v6 = vld [vmem:[%s4182_s27 + $0xb4] sm:$0xf] }
  0x72   : > { %1505 = vmatpush.bf16.msrb.mxu0 %v3352_v5  ;;  %v3032_v14 = vor.u32 %v3880_v6, %v3029_v7 }
  0x7e   : > { %687 = vmatmul.bf16.gmra.mxu0 %v2988_v17 }
  0x80   : > { %3175 = vmatmul.msk.bf16.gmra.mxu1 %vm605_vm0, %v3000_v18  ;;  %865 = vmatmul.bf16.gmra.mxu2 %v2988_v17 }
  0x81   : > { %3191 = vmatmul.msk.bf16.gmra.mxu3 %vm605_vm0, %v3000_v18 }
  0x8e   : > { %692 = vmatmul.bf16.gmra.mxu0 %v2996_v23 }
  0x90   : > { %3176 = vmatmul.msk.bf16.gmra.mxu1 %vm605_vm0, %v3008_v24  ;;  %870 = vmatmul.bf16.gmra.mxu2 %v2996_v23  ;;  %v3881_v23 = vld [vmem:[%s4182_s27 + $0xb4] sm:$0xf0] }
  0x91   : > { %3192 = vmatmul.msk.bf16.gmra.mxu3 %vm605_vm0, %v3008_v24  ;;  %v3882_v24 = vld [vmem:[%s4182_s27 + $0xc4] sm:$0xf]  ;;  %v3028_v26 = vor.u32 %v3881_v23, %v3027_v22 }
  0x92   : > { %v3040_v32 = vor.u32 %v3882_v24, %v3037_v25 }
  0x9d   : > { %v752_v43 = vpop.f32.mrf.mxu1 }
  0x9e   : > { %697 = vmatmul.bf16.gmra.mxu0 %v3004_v41 }
  0xa0   : > { %3177 = vmatmul.msk.bf16.gmra.mxu1 %vm605_vm0, %v3016_v42  ;;  %875 = vmatmul.bf16.gmra.mxu2 %v3004_v41  ;;  %v3400_v41 = vor.u32 %v3852_v36, %v3397_v38  ;;  %v3051_v38 = vld [vmem:[%s4182_s27 + $0xe0] sm:$0xf] }
  0xa1   : > { %3193 = vmatmul.msk.bf16.gmra.mxu3 %vm605_vm0, %v3016_v42 }
  0xa2   : > { %1596 = vmatpush.bf16.msrb.mxu2 %v3400_v41  ;;  %v3888_v41 = vld [vmem:[%s4182_s27 + $0xf4] sm:$0xf] }
  0xa3   : > { %v930_v44 = vpop.f32.mrf.mxu3 }
  0xa5   : > { %v754_v45 = vpop.f32.mrf.mxu1 }
  0xab   : > { %v932_v51 = vpop.f32.mrf.mxu3  ;;  %v663_v52 = vpop.f32.mrf.mxu0 }
  0xac   : > { %v4372_v53 = vadd.f32 %v752_v43, %v663_v52  ;;  %v3883_v52 = vld [vmem:[%s4182_s27 + $0xc4] sm:$0xf0] }
  0xad   : > { %v757_v55 = vpop.f32.mrf.mxu1 }
  0xae   : > { %702 = vmatmul.bf16.gmra.mxu0 %v3012_v50 }
  0xb0   : > { %3178 = vmatmul.msk.bf16.gmra.mxu1 %vm605_vm0, %v3024_v54  ;;  %880 = vmatmul.bf16.gmra.mxu2 %v3012_v50  ;;  %v3341_v50 = vld [vmem:[%s5397_s1 + $0x18] sm:$0xf0] }
  0xb1   : > { %3194 = vmatmul.msk.bf16.gmra.mxu3 %vm605_vm0, %v3024_v54  ;;  %v3344_v54 = vor.u32 %v3838_v48, %v3341_v50 }
  0xb3   : > { %v841_v56 = vpop.f32.mrf.mxu2  ;;  %v665_v57 = vpop.f32.mrf.mxu0  ;;  %1506 = vmatpush.bf16.msrb.mxu0 %v3344_v54 }
  0xb4   : > { %v4376_v58 = vadd.f32 %v930_v44, %v841_v56  ;;  %v935_v59 = vpop.f32.mrf.mxu3  ;;  %v4378_v60 = vadd.f32 %v754_v45, %v665_v57  ;;  %v3045_v56 = vld [vmem:[%s4182_s27 + $0xd8] sm:$0xf0] }
  0xb5   : > { %v759_v61 = vpop.f32.mrf.mxu1 }
  0xbb   : > { %v843_v9 = vpop.f32.mrf.mxu2  ;;  %v668_v10 = vpop.f32.mrf.mxu0 }
  0xbc   : > { %v4396_v11 = vadd.f32 %v932_v51, %v843_v9  ;;  %v937_v12 = vpop.f32.mrf.mxu3  ;;  %v4398_v13 = vadd.f32 %v757_v55, %v668_v10  ;;  %v3035_v51 = vld [vmem:[%s4182_s27 + $0xc0] sm:$0xf]  ;;  %v3884_v55 = vld [vmem:[%s4182_s27 + $0xd4] sm:$0xf]  ;;  %v3043_v9 = vld [vmem:[%s4182_s27 + $0xd0] sm:$0xf] }
  0xbd   : > { %v762_v15 = vpop.f32.mrf.mxu1  ;;  %v3036_v57 = vor.u32 %v3883_v52, %v3035_v51  ;;  %v3048_v1 = vor.u32 %v3884_v55, %v3045_v56  ;;  %v3885_v10 = vld [vmem:[%s4182_s27 + $0xd4] sm:$0xf0] }
  0xbe   : > { %707 = vmatmul.bf16.gmra.mxu0 %v3020_v8 }
  0xc0   : > { %3179 = vmatmul.msk.bf16.gmra.mxu1 %vm605_vm0, %v3032_v14  ;;  %885 = vmatmul.bf16.gmra.mxu2 %v3020_v8 }
  0xc1   : > { %3195 = vmatmul.msk.bf16.gmra.mxu3 %vm605_vm0, %v3032_v14  ;;  %v3053_v14 = vld [vmem:[%s4182_s27 + $0xe8] sm:$0xf0] }
  0xc3   : > { %v846_v16 = vpop.f32.mrf.mxu2  ;;  %v670_v17 = vpop.f32.mrf.mxu0 }
  0xc4   : > { %v4402_v18 = vadd.f32 %v935_v59, %v846_v16  ;;  %v940_v19 = vpop.f32.mrf.mxu3  ;;  %v4404_v20 = vadd.f32 %v759_v61, %v670_v17 }
  0xc5   : > { %v764_v21 = vpop.f32.mrf.mxu1 }
  0xcb   : > { %v848_v27 = vpop.f32.mrf.mxu2  ;;  %v673_v28 = vpop.f32.mrf.mxu0 }
  0xcc   : > { %v4410_v29 = vadd.f32 %v937_v12, %v848_v27  ;;  %v942_v30 = vpop.f32.mrf.mxu3  ;;  %v4412_v31 = vadd.f32 %v762_v15, %v673_v28  ;;  %v3886_v12 = vld [vmem:[%s4182_s27 + $0xe4] sm:$0xf]  ;;  %v3044_v15 = vor.u32 %v3885_v10, %v3043_v9 }
  0xcd   : > { %v767_v33 = vpop.f32.mrf.mxu1  ;;  %v3056_v23 = vor.u32 %v3886_v12, %v3053_v14 }
  0xce   : > { %712 = vmatmul.bf16.gmra.mxu0 %v3028_v26 }
  0xd0   : > { %3180 = vmatmul.msk.bf16.gmra.mxu1 %vm605_vm0, %v3040_v32  ;;  %890 = vmatmul.bf16.gmra.mxu2 %v3028_v26 }
  0xd1   : > { %3196 = vmatmul.msk.bf16.gmra.mxu3 %vm605_vm0, %v3040_v32 }
  0xd3   : > { %v851_v39 = vpop.f32.mrf.mxu2  ;;  %v675_v40 = vpop.f32.mrf.mxu0 }
  0xd4   : > { %v4428_v42 = vadd.f32 %v940_v19, %v851_v39  ;;  %v945_v43 = vpop.f32.mrf.mxu3  ;;  %v4430_v44 = vadd.f32 %v764_v21, %v675_v40  ;;  %v3887_v39 = vld [vmem:[%s4182_s27 + $0xe4] sm:$0xf0]  ;;  %v3336_v40 = vor.u32 %v3836_v35, %v3333_v37  ;;  %v3963_v37 = vld [vmem:[%s5397_s1 + $0x1f4] sm:$0xf0] }
  0xd5   : > { %v769_v45 = vpop.f32.mrf.mxu1 }
  0xd6   : > { %1507 = vmatpush.bf16.msrb.mxu0 %v3336_v40  ;;  %v3701_v40 = vld [vmem:[%s5397_s1 + $0x1f8] sm:$0xf0] }
  0xdb   : > { %v853_v59 = vpop.f32.mrf.mxu2  ;;  %v678_v61 = vpop.f32.mrf.mxu0 }
  0xdc   : > { %v4448_v62 = vadd.f32 %v942_v30, %v853_v59  ;;  %v947_v63 = vpop.f32.mrf.mxu3  ;;  %v4450_v0 = vadd.f32 %v767_v33, %v678_v61  ;;  %v3331_v33 = vld [vmem:[%s5397_s1] sm:$0xf] }
  0xdd   : > { %v772_v2 = vpop.f32.mrf.mxu1  ;;  %v3332_v36 = vor.u32 %v3837_v34, %v3331_v33 }
  0xde   : > { %717 = vmatmul.bf16.gmra.mxu0 %v3036_v57 }
  0xdf   : > { %1329 = vmatpush.bf16.msrb.mxu1 %v3332_v36  ;;  %v3699_v36 = vld [vmem:[%s5397_s1 + $0x1f0] sm:$0xf] }
  0xe0   : > { %3181 = vmatmul.msk.bf16.gmra.mxu1 %vm605_vm0, %v3048_v1  ;;  %895 = vmatmul.bf16.gmra.mxu2 %v3036_v57 }
  0xe1   : > { %3197 = vmatmul.msk.bf16.gmra.mxu3 %vm605_vm0, %v3048_v1  ;;  %v3889_v1 = vld [vmem:[%s4182_s27 + $0xf4] sm:$0xf0] }
  0xe3   : > { %v856_v3 = vpop.f32.mrf.mxu2  ;;  %v680_v4 = vpop.f32.mrf.mxu0 }
  0xe4   : > { %v4454_v5 = vadd.f32 %v945_v43, %v856_v3  ;;  %v950_v6 = vpop.f32.mrf.mxu3  ;;  %v4456_v7 = vadd.f32 %v769_v45, %v680_v4  ;;  %v3061_v43 = vld [vmem:[%s4182_s27 + $0xf8] sm:$0xf0]  ;;  %v3052_v45 = vor.u32 %v3887_v39, %v3051_v38  ;;  %v3069_v3 = vld [vmem:[%s4182_s27 + $0x108] sm:$0xf0]  ;;  %v3962_v38 = vld [vmem:[%s5397_s1 + $0x1f4] sm:$0xf]  ;;  %v3700_v39 = vor.u32 %v3963_v37, %v3699_v36 }
  0xe5   : > { %v774_v8 = vpop.f32.mrf.mxu1  ;;  %v3064_v51 = vor.u32 %v3888_v41, %v3061_v43  ;;  %v3067_v41 = vld [vmem:[%s4182_s27 + $0x100] sm:$0xf]  ;;  %v3891_v43 = vld [vmem:[%s4182_s27 + $0x104] sm:$0xf0] }
  0xe6   : > { %2051 = vmatpush.bf16.msra.mxu1 %v3700_v39 }
  0xeb   : > { %v858_v16 = vpop.f32.mrf.mxu2  ;;  %v683_v17 = vpop.f32.mrf.mxu0 }
  0xec   : > { %v4462_v19 = vadd.f32 %v947_v63, %v858_v16  ;;  %v952_v21 = vpop.f32.mrf.mxu3  ;;  %v4464_v22 = vadd.f32 %v772_v2, %v683_v17  ;;  %v3059_v63 = vld [vmem:[%s4182_s27 + $0xf0] sm:$0xf]  ;;  %v3890_v2 = vld [vmem:[%s4182_s27 + $0x104] sm:$0xf]  ;;  %v3971_v17 = vld [vmem:[%s5397_s1 + $0x234] sm:$0xf0] }
  0xed   : > { %v777_v24 = vpop.f32.mrf.mxu1  ;;  %v3060_v4 = vor.u32 %v3889_v1, %v3059_v63  ;;  %v3072_v14 = vor.u32 %v3890_v2, %v3069_v3  ;;  %v3731_v16 = vld [vmem:[%s5397_s1 + $0x230] sm:$0xf] }
  0xee   : > { %722 = vmatmul.bf16.gmra.mxu0 %v3044_v15 }
  0xf0   : > { %3182 = vmatmul.msk.bf16.gmra.mxu1 %vm605_vm0, %v3056_v23  ;;  %900 = vmatmul.bf16.gmra.mxu2 %v3044_v15 }
  0xf1   : > { %3198 = vmatmul.msk.bf16.gmra.mxu3 %vm605_vm0, %v3056_v23  ;;  %v3732_v23 = vor.u32 %v3971_v17, %v3731_v16  ;;  %v3807_v17 = vld [vmem:[%s4182_s27 + $0x14] sm:$0xf0] }
  0xf3   : > { %v861_v25 = vpop.f32.mrf.mxu2  ;;  %v685_v26 = vpop.f32.mrf.mxu0  ;;  %2144 = vmatpush.bf16.msra.mxu3 %v3732_v23  ;;  %v3213_v23 = vld [vmem:[%s4182_s27 + $0x18] sm:$0xf0] }
  0xf4   : > { %v4468_v27 = vadd.f32 %v950_v6, %v861_v25  ;;  %v955_v28 = vpop.f32.mrf.mxu3  ;;  %v4470_v30 = vadd.f32 %v774_v8, %v685_v26 }
  0xf5   : > { %v779_v32 = vpop.f32.mrf.mxu1 }
  0xfb   : > { %v863_v46 = vpop.f32.mrf.mxu2  ;;  %v688_v47 = vpop.f32.mrf.mxu0 }
  0xfc   : > { %v4488_v48 = vadd.f32 %v952_v21, %v863_v46  ;;  %v957_v49 = vpop.f32.mrf.mxu3  ;;  %v4490_v50 = vadd.f32 %v777_v24, %v688_v47  ;;  %v3970_v21 = vld [vmem:[%s5397_s1 + $0x234] sm:$0xf]  ;;  %v3733_v24 = vld [vmem:[%s5397_s1 + $0x238] sm:$0xf0]  ;;  %v3203_v46 = vld [vmem:[%s4182_s27] sm:$0xf] }
  0xfd   : > { %v782_v52 = vpop.f32.mrf.mxu1  ;;  %v3805_v47 = vld [vmem:[%s4182_s27 + $0x4] sm:$0xf0] }
  0xfe   : > { %727 = vmatmul.bf16.gmra.mxu0 %v3052_v45  ;;  %v3204_v1 = vor.u32 %v3805_v47, %v3203_v46  ;;  %v3691_v46 = vld [vmem:[%s5397_s1 + $0x1e0] sm:$0xf]  ;;  %v3961_v47 = vld [vmem:[%s5397_s1 + $0x1e4] sm:$0xf0] }
 0x100   : > { %3183 = vmatmul.msk.bf16.gmra.mxu1 %vm605_vm0, %v3064_v51  ;;  %905 = vmatmul.bf16.gmra.mxu2 %v3052_v45  ;;  %v3704_v45 = vor.u32 %v3962_v38, %v3701_v40 }
 0x101   : > { %3199 = vmatmul.msk.bf16.gmra.mxu3 %vm605_vm0, %v3064_v51  ;;  %v3804_v51 = vld [vmem:[%s4182_s27 + $0x4] sm:$0xf] }
 0x102   : > { %2229 = vmatpush.bf16.msra.mxu0 %v3704_v45 }
 0x103   : > { %v866_v54 = vpop.f32.mrf.mxu2  ;;  %v690_v55 = vpop.f32.mrf.mxu0 }
 0x104   : > { %v4494_v56 = vadd.f32 %v955_v28, %v866_v54  ;;  %v960_v57 = vpop.f32.mrf.mxu3  ;;  %v4496_v59 = vadd.f32 %v779_v32, %v690_v55  ;;  %v3736_v28 = vor.u32 %v3970_v21, %v3733_v24  ;;  %v3806_v21 = vld [vmem:[%s4182_s27 + $0x14] sm:$0xf] }
 0x105   : > { %v784_v61 = vpop.f32.mrf.mxu1  ;;  %v3216_v39 = vor.u32 %v3806_v21, %v3213_v23 }
 0x106   : > { %2322 = vmatpush.bf16.msra.mxu2 %v3736_v28 }
 0x10b   : > { %v868_v6 = vpop.f32.mrf.mxu2  ;;  %v693_v8 = vpop.f32.mrf.mxu0 }
 0x10c   : > { %v4502_v9 = vadd.f32 %v957_v49, %v868_v6  ;;  %v962_v10 = vpop.f32.mrf.mxu3  ;;  %v4504_v12 = vadd.f32 %v782_v52, %v693_v8  ;;  %v3068_v49 = vor.u32 %v3891_v43, %v3067_v41  ;;  %v3205_v52 = vld [vmem:[%s4182_s27 + $0x8] sm:$0xf0] }
 0x10d   : > { %v787_v15 = vpop.f32.mrf.mxu1  ;;  %v3208_v3 = vor.u32 %v3804_v51, %v3205_v52  ;;  %v3692_v51 = vor.u32 %v3961_v47, %v3691_v46  ;;  %v3693_v52 = vld [vmem:[%s5397_s1 + $0x1e8] sm:$0xf0]  ;;  %v3811_v46 = vld [vmem:[%s4182_s27 + $0x34] sm:$0xf0]  ;;  %v3810_v47 = vld [vmem:[%s4182_s27 + $0x34] sm:$0xf] }
 0x10e   : > { %732 = vmatmul.bf16.gmra.mxu0 %v3060_v4 }
 0x10f   : > { %2052 = vmatpush.bf16.msra.mxu1 %v3692_v51 }
 0x110   : > { %3184 = vmatmul.msk.bf16.gmra.mxu1 %vm605_vm0, %v3072_v14  ;;  %910 = vmatmul.bf16.gmra.mxu2 %v3060_v4 }
 0x111   : > { %3200 = vmatmul.msk.bf16.gmra.mxu3 %vm605_vm0, %v3072_v14 }
 0x113   : > { %v871_v25 = vpop.f32.mrf.mxu2  ;;  %v695_v26 = vpop.f32.mrf.mxu0 }
 0x114   : > { %v4520_v32 = vadd.f32 %v960_v57, %v871_v25  ;;  %v965_v33 = vpop.f32.mrf.mxu3  ;;  %v4522_v34 = vadd.f32 %v784_v61, %v695_v26 }
 0x115   : > { %v789_v35 = vpop.f32.mrf.mxu1 }
 0x11b   : > { %v873_v54 = vpop.f32.mrf.mxu2  ;;  %v698_v55 = vpop.f32.mrf.mxu0 }
 0x11c   : > { %v4542_v57 = vadd.f32 %v962_v10, %v873_v54  ;;  %v967_v61 = vpop.f32.mrf.mxu3  ;;  %v4544_v63 = vadd.f32 %v787_v15, %v698_v55  ;;  %v3211_v15 = vld [vmem:[%s4182_s27 + $0x10] sm:$0xf]  ;;  %v3219_v55 = vld [vmem:[%s4182_s27 + $0x20] sm:$0xf] }
 0x11d   : > { %v792_v2 = vpop.f32.mrf.mxu1  ;;  %v3212_v37 = vor.u32 %v3807_v17, %v3211_v15 }
 0x11e   : > { %737 = vmatmul.bf16.gmra.mxu0 %v3068_v49 }
 0x120   : > { %915 = vmatmul.bf16.gmra.mxu2 %v3068_v49  ;;  %1330 = vmatmul.bf16.vlgmr.msrb.gmra.mxu1 %v3204_v1  ;;  %v3960_v49 = vld [vmem:[%s5397_s1 + $0x1e4] sm:$0xf] }
 0x121   : > { %3425 = vmatmul.msk.bf16.vlgmr.msrb.gmra.mxu3 %vm605_vm0, %v3208_v3  ;;  %v3696_v54 = vor.u32 %v3960_v49, %v3693_v52  ;;  %v3229_v49 = vld [vmem:[%s4182_s27 + $0x38] sm:$0xf0] }
 0x123   : > { %v876_v4 = vpop.f32.mrf.mxu2  ;;  %v700_v6 = vpop.f32.mrf.mxu0  ;;  %2230 = vmatpush.bf16.msra.mxu0 %v3696_v54 }
 0x124   : > { %v4547_v8 = vadd.f32 %v965_v33, %v876_v4  ;;  %v970_v10 = vpop.f32.mrf.mxu3  ;;  %v4549_v14 = vadd.f32 %v789_v35, %v700_v6 }
 0x125   : > { %v794_v16 = vpop.f32.mrf.mxu1 }
 0x12b   : > { %v878_v24 = vpop.f32.mrf.mxu2  ;;  %v703_v25 = vpop.f32.mrf.mxu0 }
 0x12c   : > { %v4555_v26 = vadd.f32 %v967_v61, %v878_v24  ;;  %v972_v28 = vpop.f32.mrf.mxu3  ;;  %v4557_v36 = vadd.f32 %v792_v2, %v703_v25  ;;  %v3809_v61 = vld [vmem:[%s4182_s27 + $0x24] sm:$0xf0]  ;;  %v3221_v2 = vld [vmem:[%s4182_s27 + $0x28] sm:$0xf0] }
 0x12d   : > { %v797_v38 = vpop.f32.mrf.mxu1  ;;  %v3220_v15 = vor.u32 %v3809_v61, %v3219_v55 }
 0x12e   : > { %1508 = vmatmul.bf16.vlgmr.msrb.gmra.mxu0 %v3204_v1  ;;  %v3808_v1 = vld [vmem:[%s4182_s27 + $0x24] sm:$0xf] }
 0x12f   : > { %v3224_v21 = vor.u32 %v3808_v1, %v3221_v2  ;;  %v3232_v1 = vor.u32 %v3810_v47, %v3229_v49  ;;  %v3968_v2 = vld [vmem:[%s5397_s1 + $0x224] sm:$0xf]  ;;  %v3959_v47 = vld [vmem:[%s5397_s1 + $0x1d4] sm:$0xf0] }
 0x130   : > { %1335 = vmatmul.bf16.gmra.mxu1 %v3212_v37  ;;  %3441 = vmatmul.msk.bf16.vlgmr.msrb.gmra.mxu2 %vm605_vm0, %v3208_v3 }
 0x131   : > { %3426 = vmatmul.msk.bf16.gmra.mxu3 %vm605_vm0, %v3216_v39 }
 0x133   : > { %v881_v33 = vpop.f32.mrf.mxu2  ;;  %v705_v35 = vpop.f32.mrf.mxu0 }
 0x134   : > { %v4561_v40 = vadd.f32 %v970_v10, %v881_v33  ;;  %v975_v41 = vpop.f32.mrf.mxu3  ;;  %v4563_v43 = vadd.f32 %v794_v16, %v705_v35  ;;  %v3227_v35 = vld [vmem:[%s4182_s27 + $0x30] sm:$0xf] }
 0x135   : > { %v799_v45 = vpop.f32.mrf.mxu1  ;;  %v3228_v55 = vor.u32 %v3811_v46, %v3227_v35  ;;  %v3683_v46 = vld [vmem:[%s5397_s1 + $0x1d0] sm:$0xf] }
 0x136   : > { %v3684_v49 = vor.u32 %v3959_v47, %v3683_v46 }
 0x138   : > { %2053 = vmatpush.bf16.msra.mxu1 %v3684_v49 }
 0x13b   : > { %v883_v3 = vpop.f32.mrf.mxu2  ;;  %v708_v4 = vpop.f32.mrf.mxu0 }
 0x13c   : > { %v4581_v6 = vadd.f32 %v972_v28, %v883_v3  ;;  %v977_v10 = vpop.f32.mrf.mxu3  ;;  %v4583_v16 = vadd.f32 %v797_v38, %v708_v4  ;;  %v3725_v4 = vld [vmem:[%s5397_s1 + $0x228] sm:$0xf0] }
 0x13d   : > { %v802_v17 = vpop.f32.mrf.mxu1 }
 0x13e   : > { %1513 = vmatmul.bf16.gmra.mxu0 %v3212_v37 }
 0x140   : > { %1340 = vmatmul.bf16.gmra.mxu1 %v3220_v15  ;;  %3442 = vmatmul.msk.bf16.gmra.mxu2 %vm605_vm0, %v3216_v39 }
 0x141   : > { %3427 = vmatmul.msk.bf16.gmra.mxu3 %vm605_vm0, %v3224_v21 }
 0x143   : > { %v886_v23 = vpop.f32.mrf.mxu2  ;;  %v710_v24 = vpop.f32.mrf.mxu0 }
 0x144   : > { %v4587_v25 = vadd.f32 %v975_v41, %v886_v23  ;;  %v980_v28 = vpop.f32.mrf.mxu3  ;;  %v4589_v33 = vadd.f32 %v799_v45, %v710_v24  ;;  %v3723_v41 = vld [vmem:[%s5397_s1 + $0x220] sm:$0xf]  ;;  %v3969_v45 = vld [vmem:[%s5397_s1 + $0x224] sm:$0xf0] }
 0x145   : > { %v804_v38 = vpop.f32.mrf.mxu1  ;;  %v3724_v3 = vor.u32 %v3969_v45, %v3723_v41  ;;  %v3813_v41 = vld [vmem:[%s4182_s27 + $0x44] sm:$0xf0]  ;;  %v3812_v45 = vld [vmem:[%s4182_s27 + $0x44] sm:$0xf] }
 0x147   : > { %2145 = vmatpush.bf16.msra.mxu3 %v3724_v3 }
 0x14b   : > { %v888_v51 = vpop.f32.mrf.mxu2  ;;  %v713_v52 = vpop.f32.mrf.mxu0 }
 0x14c   : > { %v4595_v37 = vadd.f32 %v977_v10, %v888_v51  ;;  %v982_v54 = vpop.f32.mrf.mxu3  ;;  %v4597_v39 = vadd.f32 %v802_v17, %v713_v52  ;;  %v3728_v17 = vor.u32 %v3968_v2, %v3725_v4  ;;  %v3235_v52 = vld [vmem:[%s4182_s27 + $0x40] sm:$0xf]  ;;  %v3237_v2 = vld [vmem:[%s4182_s27 + $0x48] sm:$0xf0] }
 0x14d   : > { %v807_v61 = vpop.f32.mrf.mxu1  ;;  %v3236_v46 = vor.u32 %v3813_v41, %v3235_v52  ;;  %v3814_v52 = vld [vmem:[%s4182_s27 + $0x54] sm:$0xf]  ;;  %v3245_v41 = vld [vmem:[%s4182_s27 + $0x58] sm:$0xf0] }
 0x14e   : > { %5401 = vst [vmem:[#allocation3_spill] sm:$0xff] %v4595_v37  ;;  %1518 = vmatmul.bf16.gmra.mxu0 %v3220_v15  ;;  %2323 = vmatpush.bf16.msra.mxu2 %v3728_v17  ;;  %v3248_v37 = vor.u32 %v3814_v52, %v3245_v41  ;;  %v3817_v52 = vld [vmem:[%s4182_s27 + $0x64] sm:$0xf0]  ;;  %v3816_v41 = vld [vmem:[%s4182_s27 + $0x64] sm:$0xf] }
 0x150   : > { %1345 = vmatmul.bf16.gmra.mxu1 %v3228_v55  ;;  %3443 = vmatmul.msk.bf16.gmra.mxu2 %vm605_vm0, %v3224_v21 }
 0x151   : > { %3428 = vmatmul.msk.bf16.gmra.mxu3 %vm605_vm0, %v3232_v1 }
 0x153   : > { %v891_v10 = vpop.f32.mrf.mxu2  ;;  %v715_v15 = vpop.f32.mrf.mxu0 }
 0x154   : > { %v4613_v21 = vadd.f32 %v980_v28, %v891_v10  ;;  %v985_v23 = vpop.f32.mrf.mxu3  ;;  %v4615_v24 = vadd.f32 %v804_v38, %v715_v15  ;;  %v3958_v28 = vld [vmem:[%s5397_s1 + $0x1d4] sm:$0xf]  ;;  %v3685_v38 = vld [vmem:[%s5397_s1 + $0x1d8] sm:$0xf0] }
 0x155   : > { %v809_v35 = vpop.f32.mrf.mxu1  ;;  %v3688_v51 = vor.u32 %v3958_v28, %v3685_v38  ;;  %v3240_v28 = vor.u32 %v3812_v45, %v3237_v2 }
 0x156   : > { %5402 = vst [vmem:[#allocation4_spill] sm:$0xff] %v4613_v21 }
 0x157   : > { %5403 = vst [vmem:[#allocation5_spill] sm:$0xff] %v4615_v24  ;;  %2231 = vmatpush.bf16.msra.mxu0 %v3688_v51 }
 0x15b   : > { %v893_v3 = vpop.f32.mrf.mxu2  ;;  %v718_v4 = vpop.f32.mrf.mxu0 }
 0x15c   : > { %v4633_v10 = vadd.f32 %v982_v54, %v893_v3  ;;  %v987_v15 = vpop.f32.mrf.mxu3  ;;  %v4635_v17 = vadd.f32 %v807_v61, %v718_v4  ;;  %v3243_v4 = vld [vmem:[%s4182_s27 + $0x50] sm:$0xf] }
 0x15d   : > { %v812_v47 = vpop.f32.mrf.mxu1 }
 0x15e   : > { %5404 = vst [vmem:[#allocation6_spill] sm:$0xff] %v4633_v10  ;;  %1523 = vmatmul.bf16.gmra.mxu0 %v3228_v55  ;;  %v3815_v10 = vld [vmem:[%s4182_s27 + $0x54] sm:$0xf0] }
 0x15f   : > { %5405 = vst [vmem:[#allocation7_spill] sm:$0xff] %v4635_v17  ;;  %v3244_v21 = vor.u32 %v3815_v10, %v3243_v4  ;;  %v3251_v4 = vld [vmem:[%s4182_s27 + $0x60] sm:$0xf] }
 0x160   : > { %1350 = vmatmul.bf16.gmra.mxu1 %v3236_v46  ;;  %3444 = vmatmul.msk.bf16.gmra.mxu2 %vm605_vm0, %v3232_v1 }
 0x161   : > { %3429 = vmatmul.msk.bf16.gmra.mxu3 %vm605_vm0, %v3240_v28 }
 0x163   : > { %v896_v49 = vpop.f32.mrf.mxu2  ;;  %v720_v38 = vpop.f32.mrf.mxu0 }
 0x164   : > { %v4639_v54 = vadd.f32 %v985_v23, %v896_v49  ;;  %v990_v51 = vpop.f32.mrf.mxu3  ;;  %v4641_v3 = vadd.f32 %v809_v35, %v720_v38  ;;  %v3956_v49 = vld [vmem:[%s5397_s1 + $0x1c4] sm:$0xf] }
 0x165   : > { %v814_v61 = vpop.f32.mrf.mxu1 }
 0x166   : > { %5406 = vst [vmem:[#allocation8_spill] sm:$0xff] %v4639_v54 }
 0x167   : > { %5407 = vst [vmem:[#allocation9_spill] sm:$0xff] %v4641_v3 }
 0x16b   : > { %v898_v17 = vpop.f32.mrf.mxu2  ;;  %v723_v45 = vpop.f32.mrf.mxu0 }
 0x16c   : > { %v4647_v55 = vadd.f32 %v987_v15, %v898_v17  ;;  %v992_v2 = vpop.f32.mrf.mxu3  ;;  %v4649_v1 = vadd.f32 %v812_v47, %v723_v45  ;;  %v3253_v45 = vld [vmem:[%s4182_s27 + $0x68] sm:$0xf0] }
 0x16d   : > { %v817_v24 = vpop.f32.mrf.mxu1 }
 0x16e   : > { %5408 = vst [vmem:[#allocation10_spill] sm:$0xff] %v4647_v55  ;;  %1528 = vmatmul.bf16.gmra.mxu0 %v3236_v46  ;;  %v3675_v46 = vld [vmem:[%s5397_s1 + $0x1c0] sm:$0xf] }
 0x16f   : > { %5409 = vst [vmem:[#allocation11_spill] sm:$0xff] %v4649_v1 }
 0x170   : > { %1355 = vmatmul.bf16.gmra.mxu1 %v3244_v21  ;;  %3445 = vmatmul.msk.bf16.gmra.mxu2 %vm605_vm0, %v3240_v28  ;;  %v3957_v28 = vld [vmem:[%s5397_s1 + $0x1c4] sm:$0xf0] }
 0x171   : > { %3430 = vmatmul.msk.bf16.gmra.mxu3 %vm605_vm0, %v3248_v37  ;;  %v3676_v38 = vor.u32 %v3957_v28, %v3675_v46  ;;  %v3252_v46 = vor.u32 %v3817_v52, %v3251_v4  ;;  %v3818_v4 = vld [vmem:[%s4182_s27 + $0x74] sm:$0xf]  ;;  %v3261_v52 = vld [vmem:[%s4182_s27 + $0x78] sm:$0xf0] }
 0x172   : > { %v3264_v3 = vor.u32 %v3818_v4, %v3261_v52  ;;  %v3667_v52 = vld [vmem:[%s5397_s1 + $0x1b0] sm:$0xf] }
 0x173   : > { %v901_v23 = vpop.f32.mrf.mxu2  ;;  %v725_v35 = vpop.f32.mrf.mxu0  ;;  %2054 = vmatpush.bf16.msra.mxu1 %v3676_v38 }
 0x174   : > { %v4653_v15 = vadd.f32 %v990_v51, %v901_v23  ;;  %v995_v17 = vpop.f32.mrf.mxu3  ;;  %v4655_v47 = vadd.f32 %v814_v61, %v725_v35  ;;  %v3677_v51 = vld [vmem:[%s5397_s1 + $0x1c8] sm:$0xf0] }
 0x175   : > { %v819_v10 = vpop.f32.mrf.mxu1  ;;  %v3680_v61 = vor.u32 %v3956_v49, %v3677_v51  ;;  %v3256_v49 = vor.u32 %v3816_v41, %v3253_v45 }
 0x176   : > { %5410 = vst [vmem:[#allocation12_spill] sm:$0xff] %v4653_v15 }
 0x177   : > { %5411 = vst [vmem:[#allocation13_spill] sm:$0xff] %v4655_v47  ;;  %2232 = vmatpush.bf16.msra.mxu0 %v3680_v61 }
 0x17b   : > { %v903_v23 = vpop.f32.mrf.mxu2  ;;  %v728_v35 = vpop.f32.mrf.mxu0 }
 0x17c   : > { %v4673_v15 = vadd.f32 %v992_v2, %v903_v23  ;;  %v997_v47 = vpop.f32.mrf.mxu3  ;;  %v4675_v55 = vadd.f32 %v817_v24, %v728_v35  ;;  %v3259_v35 = vld [vmem:[%s4182_s27 + $0x70] sm:$0xf] }
 0x17d   : > { %v822_v28 = vpop.f32.mrf.mxu1 }
 0x17e   : > { %5412 = vst [vmem:[#allocation14_spill] sm:$0xff] %v4673_v15  ;;  %1533 = vmatmul.bf16.gmra.mxu0 %v3244_v21  ;;  %v3819_v15 = vld [vmem:[%s4182_s27 + $0x74] sm:$0xf0] }
 0x17f   : > { %5413 = vst [vmem:[#allocation15_spill] sm:$0xff] %v4675_v55  ;;  %v3260_v1 = vor.u32 %v3819_v15, %v3259_v35  ;;  %v3966_v15 = vld [vmem:[%s5397_s1 + $0x214] sm:$0xf] }
 0x180   : > { %1360 = vmatmul.bf16.gmra.mxu1 %v3252_v46  ;;  %3446 = vmatmul.msk.bf16.gmra.mxu2 %vm605_vm0, %v3248_v37 }
 0x181   : > { %3431 = vmatmul.msk.bf16.gmra.mxu3 %vm605_vm0, %v3256_v49 }
 0x183   : > { %v906_v38 = vpop.f32.mrf.mxu2  ;;  %v730_v51 = vpop.f32.mrf.mxu0 }
 0x184   : > { %v4679_v2 = vadd.f32 %v995_v17, %v906_v38  ;;  %v1000_v61 = vpop.f32.mrf.mxu3  ;;  %v4681_v23 = vadd.f32 %v819_v10, %v730_v51  ;;  %v3715_v17 = vld [vmem:[%s5397_s1 + $0x210] sm:$0xf]  ;;  %v3717_v10 = vld [vmem:[%s5397_s1 + $0x218] sm:$0xf0] }
 0x185   : > { %v824_v24 = vpop.f32.mrf.mxu1 }
 0x18b   : > { %v908_v55 = vpop.f32.mrf.mxu2  ;;  %v733_v41 = vpop.f32.mrf.mxu0 }
 0x18c   : > { %v4687_v21 = vadd.f32 %v997_v47, %v908_v55  ;;  %v1002_v45 = vpop.f32.mrf.mxu3  ;;  %v4689_v37 = vadd.f32 %v822_v28, %v733_v41  ;;  %v3967_v55 = vld [vmem:[%s5397_s1 + $0x214] sm:$0xf0] }
 0x18d   : > { %v827_v54 = vpop.f32.mrf.mxu1  ;;  %v3716_v47 = vor.u32 %v3967_v55, %v3715_v17  ;;  %v3955_v41 = vld [vmem:[%s5397_s1 + $0x1b4] sm:$0xf0] }
 0x18e   : > { %5414 = vst [vmem:[#allocation16_spill] sm:$0xff] %v4687_v21  ;;  %1538 = vmatmul.bf16.gmra.mxu0 %v3252_v46  ;;  %v3668_v17 = vor.u32 %v3955_v41, %v3667_v52 }
 0x18f   : > { %5415 = vst [vmem:[#allocation17_spill] sm:$0xff] %v4689_v37  ;;  %2146 = vmatpush.bf16.msra.mxu3 %v3716_v47  ;;  %v3821_v47 = vld [vmem:[%s4182_s27 + $0x84] sm:$0xf0] }
 0x190   : > { %1365 = vmatmul.bf16.gmra.mxu1 %v3260_v1  ;;  %3447 = vmatmul.msk.bf16.gmra.mxu2 %vm605_vm0, %v3256_v49  ;;  %v3720_v49 = vor.u32 %v3966_v15, %v3717_v10  ;;  %v3267_v15 = vld [vmem:[%s4182_s27 + $0x80] sm:$0xf]  ;;  %v3820_v10 = vld [vmem:[%s4182_s27 + $0x84] sm:$0xf] }
 0x191   : > { %3432 = vmatmul.msk.bf16.gmra.mxu3 %vm605_vm0, %v3264_v3  ;;  %2055 = vmatpush.bf16.msra.mxu1 %v3668_v17  ;;  %v3268_v37 = vor.u32 %v3821_v47, %v3267_v15 }
 0x192   : > { %2324 = vmatpush.bf16.msra.mxu2 %v3720_v49 }
 0x193   : > { %v911_v46 = vpop.f32.mrf.mxu2  ;;  %v735_v28 = vpop.f32.mrf.mxu0 }
 0x194   : > { %v4705_v38 = vadd.f32 %v1000_v61, %v911_v46  ;;  %v1005_v51 = vpop.f32.mrf.mxu3  ;;  %v4707_v35 = vadd.f32 %v824_v24, %v735_v28  ;;  %v3954_v61 = vld [vmem:[%s5397_s1 + $0x1b4] sm:$0xf]  ;;  %v3669_v24 = vld [vmem:[%s5397_s1 + $0x1b8] sm:$0xf0]  ;;  %v3269_v46 = vld [vmem:[%s4182_s27 + $0x88] sm:$0xf0] }
 0x195   : > { %v829_v4 = vpop.f32.mrf.mxu1  ;;  %v3672_v55 = vor.u32 %v3954_v61, %v3669_v24  ;;  %v3272_v41 = vor.u32 %v3820_v10, %v3269_v46  ;;  %v3823_v46 = vld [vmem:[%s4182_s27 + $0x94] sm:$0xf0] }
 0x196   : > { %5416 = vst [vmem:[#allocation18_spill] sm:$0xff] %v4705_v38 }
 0x197   : > { %5417 = vst [vmem:[#allocation19_spill] sm:$0xff] %v4707_v35  ;;  %2233 = vmatpush.bf16.msra.mxu0 %v3672_v55 }
 0x19b   : > { %v913_v28 = vpop.f32.mrf.mxu2  ;;  %v738_v49 = vpop.f32.mrf.mxu0 }
 0x19c   : > { %v4725_v38 = vadd.f32 %v1002_v45, %v913_v28  ;;  %v1007_v35 = vpop.f32.mrf.mxu3  ;;  %v4727_v21 = vadd.f32 %v827_v54, %v738_v49  ;;  %v3277_v28 = vld [vmem:[%s4182_s27 + $0x98] sm:$0xf0] }
 0x19d   : > { %v1331_v52 = vpop.f32.mrf.mxu1 }
 0x19e   : > { %5418 = vst [vmem:[#allocation20_spill] sm:$0xff] %v4725_v38  ;;  %v1332_v61 = vadd.f32 %v1331_v52, %v4372_v53  ;;  %1543 = vmatmul.bf16.gmra.mxu0 %v3260_v1  ;;  %v3275_v53 = vld [vmem:[%s4182_s27 + $0x90] sm:$0xf]  ;;  %v3822_v1 = vld [vmem:[%s4182_s27 + $0x94] sm:$0xf] }
 0x1a0   : > { %1370 = vmatmul.bf16.gmra.mxu1 %v3268_v37  ;;  %3448 = vmatmul.msk.bf16.gmra.mxu2 %vm605_vm0, %v3264_v3 }
 0x1a1   : > { %3433 = vmatmul.msk.bf16.gmra.mxu3 %vm605_vm0, %v3272_v41 }
 0x1a3   : > { %v916_v45 = vpop.f32.mrf.mxu2  ;;  %v740_v17 = vpop.f32.mrf.mxu0 }
 0x1a4   : > { %v4732_v24 = vadd.f32 %v1005_v51, %v916_v45  ;;  %v1420_v54 = vpop.f32.mrf.mxu3  ;;  %v4734_v55 = vadd.f32 %v829_v4, %v740_v17  ;;  %v3276_v45 = vor.u32 %v3823_v46, %v3275_v53  ;;  %v3952_v53 = vld [vmem:[%s5397_s1 + $0x1a4] sm:$0xf] }
 0x1a5   : > { %v4736_v15 = vadd.f32 %v1420_v54, %v1332_v61  ;;  %v1333_v47 = vpop.f32.mrf.mxu1  ;;  %v3280_v61 = vor.u32 %v3822_v1, %v3277_v28  ;;  %v3283_v28 = vld [vmem:[%s4182_s27 + $0xa0] sm:$0xf] }
 0x1a6   : > { %5419 = vst [vmem:[#allocation21_spill] sm:$0xff] %v4732_v24  ;;  %v1334_v10 = vadd.f32 %v1333_v47, %v4378_v60 }
 0x1ab   : > { %v918_v49 = vpop.f32.mrf.mxu2  ;;  %v1509_v3 = vpop.f32.mrf.mxu0 }
 0x1ac   : > { %v4743_v52 = vadd.f32 %v1007_v35, %v918_v49  ;;  %v1422_v38 = vpop.f32.mrf.mxu3  ;;  %v1510_v51 = vadd.f32 %v1509_v3, %v4376_v58  ;;  %v3824_v49 = vld [vmem:[%s4182_s27 + $0xa4] sm:$0xf]  ;;  %v3285_v3 = vld [vmem:[%s4182_s27 + $0xa8] sm:$0xf0] }
 0x1ad   : > { %v4746_v24 = vadd.f32 %v1422_v38, %v1334_v10  ;;  %v1336_v4 = vpop.f32.mrf.mxu1  ;;  %v3953_v10 = vld [vmem:[%s5397_s1 + $0x1a4] sm:$0xf0] }
 0x1ae   : > { %v1337_v17 = vadd.f32 %v1336_v4, %v4398_v13  ;;  %1548 = vmatmul.bf16.gmra.mxu0 %v3268_v37 }
 0x1b0   : > { %1375 = vmatmul.bf16.gmra.mxu1 %v3276_v45  ;;  %3449 = vmatmul.msk.bf16.gmra.mxu2 %vm605_vm0, %v3272_v41  ;;  %v3659_v41 = vld [vmem:[%s5397_s1 + $0x1a0] sm:$0xf] }
 0x1b1   : > { %3434 = vmatmul.msk.bf16.gmra.mxu3 %vm605_vm0, %v3280_v61  ;;  %v3660_v46 = vor.u32 %v3953_v10, %v3659_v41  ;;  %v3288_v10 = vor.u32 %v3824_v49, %v3285_v3  ;;  %v3827_v49 = vld [vmem:[%s4182_s27 + $0xb4] sm:$0xf0]  ;;  %v3293_v3 = vld [vmem:[%s4182_s27 + $0xb8] sm:$0xf0] }
 0x1b3   : > { %v1598_v60 = vpop.f32.mrf.mxu2  ;;  %v1511_v35 = vpop.f32.mrf.mxu0  ;;  %2056 = vmatpush.bf16.msra.mxu1 %v3660_v46 }
 0x1b4   : > { %v1425_v54 = vpop.f32.mrf.mxu3  ;;  %v4751_v58 = vadd.f32 %v1598_v60, %v1510_v51  ;;  %v1512_v38 = vadd.f32 %v1511_v35, %v4396_v11  ;;  %v3661_v11 = vld [vmem:[%s5397_s1 + $0x1a8] sm:$0xf0] }
 0x1b5   : > { %v4754_v47 = vadd.f32 %v1425_v54, %v1337_v17  ;;  %v1338_v13 = vpop.f32.mrf.mxu1  ;;  %v3664_v1 = vor.u32 %v3952_v53, %v3661_v11 }
 0x1b6   : > { %v1339_v37 = vadd.f32 %v1338_v13, %v4404_v20  ;;  %v3825_v20 = vld [vmem:[%s4182_s27 + $0xa4] sm:$0xf0] }
 0x1b7   : > { %2234 = vmatpush.bf16.msra.mxu0 %v3664_v1  ;;  %v3284_v54 = vor.u32 %v3825_v20, %v3283_v28 }
 0x1bb   : > { %v1600_v51 = vpop.f32.mrf.mxu2  ;;  %v1514_v4 = vpop.f32.mrf.mxu0 }
 0x1bc   : > { %v1427_v17 = vpop.f32.mrf.mxu3  ;;  %v4773_v60 = vadd.f32 %v1600_v51, %v1512_v38  ;;  %v1515_v35 = vadd.f32 %v1514_v4, %v4402_v18 }
 0x1bd   : > { %v4776_v13 = vadd.f32 %v1427_v17, %v1339_v37  ;;  %v1341_v41 = vpop.f32.mrf.mxu1 }
 0x1be   : > { %v1342_v53 = vadd.f32 %v1341_v41, %v4412_v31  ;;  %1553 = vmatmul.bf16.gmra.mxu0 %v3276_v45  ;;  %v3291_v31 = vld [vmem:[%s4182_s27 + $0xb0] sm:$0xf]  ;;  %v3826_v45 = vld [vmem:[%s4182_s27 + $0xb4] sm:$0xf] }
 0x1c0   : > { %1380 = vmatmul.bf16.gmra.mxu1 %v3284_v54  ;;  %3450 = vmatmul.msk.bf16.gmra.mxu2 %vm605_vm0, %v3280_v61 }
 0x1c1   : > { %3435 = vmatmul.msk.bf16.gmra.mxu3 %vm605_vm0, %v3288_v10 }
 0x1c3   : > { %v1603_v38 = vpop.f32.mrf.mxu2  ;;  %v1516_v46 = vpop.f32.mrf.mxu0 }
 0x1c4   : > { %v1430_v18 = vpop.f32.mrf.mxu3  ;;  %v4781_v11 = vadd.f32 %v1603_v38, %v1515_v35  ;;  %v1517_v37 = vadd.f32 %v1516_v46, %v4410_v29  ;;  %v3292_v35 = vor.u32 %v3827_v49, %v3291_v31 }
 0x1c5   : > { %v4784_v1 = vadd.f32 %v1430_v18, %v1342_v53  ;;  %v1343_v28 = vpop.f32.mrf.mxu1  ;;  %v3296_v53 = vor.u32 %v3826_v45, %v3293_v3  ;;  %v3964_v18 = vld [vmem:[%s5397_s1 + $0x204] sm:$0xf] }
 0x1c6   : > { %v1344_v20 = vadd.f32 %v1343_v28, %v4430_v44  ;;  %v3707_v44 = vld [vmem:[%s5397_s1 + $0x200] sm:$0xf] }
 0x1cb   : > { %v1605_v51 = vpop.f32.mrf.mxu2  ;;  %v1519_v61 = vpop.f32.mrf.mxu0 }
 0x1cc   : > { %v1432_v4 = vpop.f32.mrf.mxu3  ;;  %v4791_v17 = vadd.f32 %v1605_v51, %v1517_v37  ;;  %v1520_v41 = vadd.f32 %v1519_v61, %v4428_v42  ;;  %v3965_v42 = vld [vmem:[%s5397_s1 + $0x204] sm:$0xf0]  ;;  %v3651_v61 = vld [vmem:[%s5397_s1 + $0x190] sm:$0xf] }
 0x1cd   : > { %v4794_v38 = vadd.f32 %v1432_v4, %v1344_v20  ;;  %v1346_v29 = vpop.f32.mrf.mxu1  ;;  %v3708_v37 = vor.u32 %v3965_v42, %v3707_v44  ;;  %v3951_v4 = vld [vmem:[%s5397_s1 + $0x194] sm:$0xf0]  ;;  %v3299_v44 = vld [vmem:[%s4182_s27 + $0xc0] sm:$0xf]  ;;  %v3828_v42 = vld [vmem:[%s4182_s27 + $0xc4] sm:$0xf] }
 0x1ce   : > { %v1347_v46 = vadd.f32 %v1346_v29, %v4450_v0  ;;  %1558 = vmatmul.bf16.gmra.mxu0 %v3284_v54  ;;  %v3709_v0 = vld [vmem:[%s5397_s1 + $0x208] sm:$0xf0]  ;;  %v3653_v29 = vld [vmem:[%s5397_s1 + $0x198] sm:$0xf0] }
 0x1cf   : > { %v3712_v28 = vor.u32 %v3964_v18, %v3709_v0  ;;  %2147 = vmatpush.bf16.msra.mxu3 %v3708_v37  ;;  %v3301_v18 = vld [vmem:[%s4182_s27 + $0xc8] sm:$0xf0] }
 0x1d0   : > { %1385 = vmatmul.bf16.gmra.mxu1 %v3292_v35  ;;  %3451 = vmatmul.msk.bf16.gmra.mxu2 %vm605_vm0, %v3288_v10 }
 0x1d1   : > { %3436 = vmatmul.msk.bf16.gmra.mxu3 %vm605_vm0, %v3296_v53  ;;  %2325 = vmatpush.bf16.msra.mxu2 %v3712_v28 }
 0x1d3   : > { %v1608_v54 = vpop.f32.mrf.mxu2  ;;  %v1521_v10 = vpop.f32.mrf.mxu0 }
 0x1d4   : > { %v1435_v20 = vpop.f32.mrf.mxu3  ;;  %v4811_v31 = vadd.f32 %v1608_v54, %v1520_v41  ;;  %v1522_v49 = vadd.f32 %v1521_v10, %v4448_v62  ;;  %v3950_v62 = vld [vmem:[%s5397_s1 + $0x194] sm:$0xf]  ;;  %v3652_v41 = vor.u32 %v3951_v4, %v3651_v61  ;;  %v3304_v4 = vor.u32 %v3828_v42, %v3301_v18  ;;  %v3831_v42 = vld [vmem:[%s4182_s27 + $0xd4] sm:$0xf0]  ;;  %v3309_v18 = vld [vmem:[%s4182_s27 + $0xd8] sm:$0xf0] }
 0x1d5   : > { %v4814_v45 = vadd.f32 %v1435_v20, %v1347_v46  ;;  %v1348_v3 = vpop.f32.mrf.mxu1  ;;  %v3656_v46 = vor.u32 %v3950_v62, %v3653_v29 }
 0x1d6   : > { %v1349_v51 = vadd.f32 %v1348_v3, %v4456_v7  ;;  %v3829_v7 = vld [vmem:[%s4182_s27 + $0xc4] sm:$0xf0]  ;;  %2057 = vmatpush.bf16.msra.mxu1 %v3652_v41 }
 0x1d7   : > { %2235 = vmatpush.bf16.msra.mxu0 %v3656_v46  ;;  %v3300_v20 = vor.u32 %v3829_v7, %v3299_v44 }
 0x1db   : > { %v1610_v37 = vpop.f32.mrf.mxu2  ;;  %v1524_v0 = vpop.f32.mrf.mxu0 }
 0x1dc   : > { %v1437_v54 = vpop.f32.mrf.mxu3  ;;  %v4833_v10 = vadd.f32 %v1610_v37, %v1522_v49  ;;  %v1525_v28 = vadd.f32 %v1524_v0, %v4454_v5 }
 0x1dd   : > { %v4836_v3 = vadd.f32 %v1437_v54, %v1349_v51  ;;  %v1351_v61 = vpop.f32.mrf.mxu1 }
 0x1de   : > { %v1352_v62 = vadd.f32 %v1351_v61, %v4464_v22  ;;  %1563 = vmatmul.bf16.gmra.mxu0 %v3292_v35  ;;  %v3307_v22 = vld [vmem:[%s4182_s27 + $0xd0] sm:$0xf]  ;;  %v3830_v35 = vld [vmem:[%s4182_s27 + $0xd4] sm:$0xf] }
 0x1e0   : > { %1390 = vmatmul.bf16.gmra.mxu1 %v3300_v20  ;;  %3452 = vmatmul.msk.bf16.gmra.mxu2 %vm605_vm0, %v3296_v53 }
 0x1e1   : > { %3437 = vmatmul.msk.bf16.gmra.mxu3 %vm605_vm0, %v3304_v4 }
 0x1e3   : > { %v1613_v49 = vpop.f32.mrf.mxu2  ;;  %v1526_v41 = vpop.f32.mrf.mxu0 }
 0x1e4   : > { %v1440_v5 = vpop.f32.mrf.mxu3  ;;  %v4841_v29 = vadd.f32 %v1613_v49, %v1525_v28  ;;  %v1527_v51 = vadd.f32 %v1526_v41, %v4462_v19  ;;  %v3308_v28 = vor.u32 %v3831_v42, %v3307_v22  ;;  %v3949_v22 = vld [vmem:[%s5397_s1 + $0x184] sm:$0xf0]  ;;  %v3948_v42 = vld [vmem:[%s5397_s1 + $0x184] sm:$0xf] }
 0x1e5   : > { %v4844_v46 = vadd.f32 %v1440_v5, %v1352_v62  ;;  %v1353_v44 = vpop.f32.mrf.mxu1  ;;  %v3312_v62 = vor.u32 %v3830_v35, %v3309_v18 }
 0x1e6   : > { %v1354_v7 = vadd.f32 %v1353_v44, %v4470_v30 }
 0x1eb   : > { %v1615_v37 = vpop.f32.mrf.mxu2  ;;  %v1529_v53 = vpop.f32.mrf.mxu0 }
 0x1ec   : > { %v1442_v0 = vpop.f32.mrf.mxu3  ;;  %v4851_v54 = vadd.f32 %v1615_v37, %v1527_v51  ;;  %v1530_v61 = vadd.f32 %v1529_v53, %v4468_v27  ;;  %v3315_v37 = vld [vmem:[%s4182_s27 + $0xe0] sm:$0xf]  ;;  %v3832_v53 = vld [vmem:[%s4182_s27 + $0xe4] sm:$0xf] }
 0x1ed   : > { %v4854_v49 = vadd.f32 %v1442_v0, %v1354_v7  ;;  %v1356_v19 = vpop.f32.mrf.mxu1  ;;  %v3317_v0 = vld [vmem:[%s4182_s27 + $0xe8] sm:$0xf0] }
 0x1ee   : > { %v1357_v41 = vadd.f32 %v1356_v19, %v4490_v50  ;;  %1568 = vmatmul.bf16.gmra.mxu0 %v3300_v20 }
 0x1f0   : > { %1395 = vmatmul.bf16.gmra.mxu1 %v3308_v28  ;;  %3453 = vmatmul.msk.bf16.gmra.mxu2 %vm605_vm0, %v3304_v4  ;;  %v3643_v4 = vld [vmem:[%s5397_s1 + $0x180] sm:$0xf] }
 0x1f1   : > { %3438 = vmatmul.msk.bf16.gmra.mxu3 %vm605_vm0, %v3312_v62  ;;  %v3644_v35 = vor.u32 %v3949_v22, %v3643_v4  ;;  %v3320_v22 = vor.u32 %v3832_v53, %v3317_v0  ;;  %v3835_v53 = vld [vmem:[%s4182_s27 + $0xf4] sm:$0xf0]  ;;  %v3325_v0 = vld [vmem:[%s4182_s27 + $0xf8] sm:$0xf0] }
 0x1f3   : > { %v1618_v30 = vpop.f32.mrf.mxu2  ;;  %v1531_v5 = vpop.f32.mrf.mxu0  ;;  %2058 = vmatpush.bf16.msra.mxu1 %v3644_v35 }
 0x1f4   : > { %v1445_v51 = vpop.f32.mrf.mxu3  ;;  %v4859_v27 = vadd.f32 %v1618_v30, %v1530_v61  ;;  %v1532_v44 = vadd.f32 %v1531_v5, %v4488_v48  ;;  %v3645_v48 = vld [vmem:[%s5397_s1 + $0x188] sm:$0xf0] }
 0x1f5   : > { %v4862_v7 = vadd.f32 %v1445_v51, %v1357_v41  ;;  %v1358_v50 = vpop.f32.mrf.mxu1  ;;  %v3648_v18 = vor.u32 %v3948_v42, %v3645_v48 }
 0x1f6   : > { %v1359_v20 = vadd.f32 %v1358_v50, %v4496_v59  ;;  %v3833_v59 = vld [vmem:[%s4182_s27 + $0xe4] sm:$0xf0] }
 0x1f7   : > { %2236 = vmatpush.bf16.msra.mxu0 %v3648_v18  ;;  %v3316_v51 = vor.u32 %v3833_v59, %v3315_v37 }
 0x1fb   : > { %v1620_v61 = vpop.f32.mrf.mxu2  ;;  %v1534_v19 = vpop.f32.mrf.mxu0 }
 0x1fc   : > { %v1447_v41 = vpop.f32.mrf.mxu3  ;;  %v4881_v30 = vadd.f32 %v1620_v61, %v1532_v44  ;;  %v1535_v5 = vadd.f32 %v1534_v19, %v4494_v56 }
 0x1fd   : > { %v4884_v50 = vadd.f32 %v1447_v41, %v1359_v20  ;;  %v1361_v4 = vpop.f32.mrf.mxu1 }
 0x1fe   : > { %v1362_v42 = vadd.f32 %v1361_v4, %v4504_v12  ;;  %1573 = vmatmul.bf16.gmra.mxu0 %v3308_v28  ;;  %v3323_v12 = vld [vmem:[%s4182_s27 + $0xf0] sm:$0xf]  ;;  %v3834_v28 = vld [vmem:[%s4182_s27 + $0xf4] sm:$0xf] }
 0x200   : > { %1400 = vmatmul.bf16.gmra.mxu1 %v3316_v51  ;;  %3454 = vmatmul.msk.bf16.gmra.mxu2 %vm605_vm0, %v3312_v62 }
 0x201   : > { %3439 = vmatmul.msk.bf16.gmra.mxu3 %vm605_vm0, %v3320_v22 }
 0x203   : > { %v1623_v44 = vpop.f32.mrf.mxu2  ;;  %v1536_v35 = vpop.f32.mrf.mxu0 }
 0x204   : > { %v1450_v56 = vpop.f32.mrf.mxu3  ;;  %v4889_v48 = vadd.f32 %v1623_v44, %v1535_v5  ;;  %v1537_v20 = vadd.f32 %v1536_v35, %v4502_v9  ;;  %v3324_v5 = vor.u32 %v3835_v53, %v3323_v12 }
 0x205   : > { %v4892_v18 = vadd.f32 %v1450_v56, %v1362_v42  ;;  %v1363_v37 = vpop.f32.mrf.mxu1  ;;  %v3328_v42 = vor.u32 %v3834_v28, %v3325_v0  ;;  %v3917_v28 = vld [vmem:[%s4182_s27 + $0x24] sm:$0xf0]  ;;  %v3517_v0 = vld [vmem:[%s4182_s27 + $0x28] sm:$0xf0] }
 0x206   : > { %v1364_v59 = vadd.f32 %v1363_v37, %v4522_v34 }
 0x20b   : > { %v1625_v61 = vpop.f32.mrf.mxu2  ;;  %v1539_v62 = vpop.f32.mrf.mxu0 }
 0x20c   : > { %v1452_v19 = vpop.f32.mrf.mxu3  ;;  %v4899_v41 = vadd.f32 %v1625_v61, %v1537_v20  ;;  %v1540_v4 = vadd.f32 %v1539_v62, %v4520_v32 }
 0x20d   : > { %v4902_v44 = vadd.f32 %v1452_v19, %v1364_v59  ;;  %v1366_v9 = vpop.f32.mrf.mxu1 }
 0x20e   : > { %v1367_v34 = vadd.f32 %v1366_v9, %v4544_v63  ;;  %1578 = vmatmul.bf16.gmra.mxu0 %v3316_v51  ;;  %v3515_v63 = vld [vmem:[%s4182_s27 + $0x20] sm:$0xf]  ;;  %v3916_v51 = vld [vmem:[%s4182_s27 + $0x24] sm:$0xf] }
 0x210   : > { %1405 = vmatmul.bf16.gmra.mxu1 %v3324_v5  ;;  %3455 = vmatmul.msk.bf16.gmra.mxu2 %vm605_vm0, %v3320_v22 }
 0x211   : > { %3440 = vmatmul.msk.bf16.gmra.mxu3 %vm605_vm0, %v3328_v42 }
 0x213   : > { %v1628_v35 = vpop.f32.mrf.mxu2  ;;  %v1541_v56 = vpop.f32.mrf.mxu0 }
 0x214   : > { %v1455_v32 = vpop.f32.mrf.mxu3  ;;  %v4907_v20 = vadd.f32 %v1628_v35, %v1540_v4  ;;  %v1542_v37 = vadd.f32 %v1541_v56, %v4542_v57  ;;  %v3516_v4 = vor.u32 %v3917_v28, %v3515_v63 }
 0x215   : > { %v4910_v59 = vadd.f32 %v1455_v32, %v1367_v34  ;;  %v1368_v12 = vpop.f32.mrf.mxu1  ;;  %v3520_v34 = vor.u32 %v3916_v51, %v3517_v0  ;;  %v3919_v51 = vld [vmem:[%s4182_s27 + $0x34] sm:$0xf0]  ;;  %v3525_v0 = vld [vmem:[%s4182_s27 + $0x38] sm:$0xf0] }
 0x216   : > { %v1369_v53 = vadd.f32 %v1368_v12, %v4549_v14 }
 0x21b   : > { %v1630_v61 = vpop.f32.mrf.mxu2  ;;  %v1544_v22 = vpop.f32.mrf.mxu0 }
 0x21c   : > { %v1457_v62 = vpop.f32.mrf.mxu3  ;;  %v4917_v19 = vadd.f32 %v1630_v61, %v1542_v37  ;;  %v1545_v9 = vadd.f32 %v1544_v22, %v4547_v8 }
 0x21d   : > { %v4920_v35 = vadd.f32 %v1457_v62, %v1369_v53  ;;  %v1371_v57 = vpop.f32.mrf.mxu1 }
 0x21e   : > { %v1372_v14 = vadd.f32 %v1371_v57, %v4557_v36  ;;  %1583 = vmatmul.bf16.gmra.mxu0 %v3324_v5  ;;  %v3523_v36 = vld [vmem:[%s4182_s27 + $0x30] sm:$0xf]  ;;  %v3918_v5 = vld [vmem:[%s4182_s27 + $0x34] sm:$0xf] }
 0x220   : > { %3456 = vmatmul.msk.bf16.gmra.mxu2 %vm605_vm0, %v3328_v42  ;;  %2059 = vmatmul.bf16.vlgmr.msra.gmra.mxu1 %v3516_v4 }
 0x221   : > { %3737 = vmatmul.msk.bf16.vlgmr.msra.gmra.mxu3 %vm605_vm0, %v3520_v34 }
 0x223   : > { %v1633_v56 = vpop.f32.mrf.mxu2  ;;  %v1546_v32 = vpop.f32.mrf.mxu0 }
 0x224   : > { %v1460_v8 = vpop.f32.mrf.mxu3  ;;  %v4925_v37 = vadd.f32 %v1633_v56, %v1545_v9  ;;  %v1547_v12 = vadd.f32 %v1546_v32, %v4555_v26  ;;  %v3524_v9 = vor.u32 %v3919_v51, %v3523_v36 }
 0x225   : > { %v4928_v53 = vadd.f32 %v1460_v8, %v1372_v14  ;;  %v1373_v63 = vpop.f32.mrf.mxu1  ;;  %v3528_v14 = vor.u32 %v3918_v5, %v3525_v0  ;;  %v3921_v5 = vld [vmem:[%s4182_s27 + $0x44] sm:$0xf0]  ;;  %v3533_v0 = vld [vmem:[%s4182_s27 + $0x48] sm:$0xf0] }
 0x226   : > { %v1374_v28 = vadd.f32 %v1373_v63, %v4563_v43 }
 0x22b   : > { %v1635_v42 = vpop.f32.mrf.mxu2  ;;  %v1549_v61 = vpop.f32.mrf.mxu0 }
 0x22c   : > { %v1462_v22 = vpop.f32.mrf.mxu3  ;;  %v4935_v62 = vadd.f32 %v1635_v42, %v1547_v12  ;;  %v1550_v57 = vadd.f32 %v1549_v61, %v4561_v40 }
 0x22d   : > { %v4938_v56 = vadd.f32 %v1462_v22, %v1374_v28  ;;  %v1376_v26 = vpop.f32.mrf.mxu1 }
 0x22e   : > { %v1377_v43 = vadd.f32 %v1376_v26, %v4583_v16  ;;  %2237 = vmatmul.bf16.vlgmr.msra.gmra.mxu0 %v3516_v4  ;;  %v3531_v16 = vld [vmem:[%s4182_s27 + $0x40] sm:$0xf]  ;;  %v3920_v4 = vld [vmem:[%s4182_s27 + $0x44] sm:$0xf] }
 0x230   : > { %3753 = vmatmul.msk.bf16.vlgmr.msra.gmra.mxu2 %vm605_vm0, %v3520_v34  ;;  %2064 = vmatmul.bf16.gmra.mxu1 %v3524_v9 }
 0x231   : > { %3738 = vmatmul.msk.bf16.gmra.mxu3 %vm605_vm0, %v3528_v14 }
 0x233   : > { %v1638_v32 = vpop.f32.mrf.mxu2  ;;  %v1551_v8 = vpop.f32.mrf.mxu0 }
 0x234   : > { %v1465_v40 = vpop.f32.mrf.mxu3  ;;  %v4943_v12 = vadd.f32 %v1638_v32, %v1550_v57  ;;  %v1552_v63 = vadd.f32 %v1551_v8, %v4581_v6  ;;  %v3532_v57 = vor.u32 %v3921_v5, %v3531_v16 }
 0x235   : > { %v4946_v28 = vadd.f32 %v1465_v40, %v1377_v43  ;;  %v1378_v36 = vpop.f32.mrf.mxu1  ;;  %v3536_v43 = vor.u32 %v3920_v4, %v3533_v0  ;;  %v5426_v4 = vld [vmem:[#allocation5_spill] sm:$0xff] }
 0x236   : > { %v1379_v51 = vadd.f32 %v1378_v36, %v4589_v33  ;;  %v5424_v36 = vld [vmem:[#allocation3_spill] sm:$0xff] }
 0x237   : > { %5420 = vst [vmem:[#allocation22_spill] sm:$0xff] %v4946_v28 }
 0x23b   : > { %v1640_v34 = vpop.f32.mrf.mxu2  ;;  %v1554_v42 = vpop.f32.mrf.mxu0 }
 0x23c   : > { %v1467_v61 = vpop.f32.mrf.mxu3  ;;  %v4953_v22 = vadd.f32 %v1640_v34, %v1552_v63  ;;  %v1555_v26 = vadd.f32 %v1554_v42, %v4587_v25  ;;  %v3923_v34 = vld [vmem:[%s4182_s27 + $0x54] sm:$0xf0]  ;;  %v3541_v42 = vld [vmem:[%s4182_s27 + $0x58] sm:$0xf0] }
 0x23d   : > { %v4956_v32 = vadd.f32 %v1467_v61, %v1379_v51  ;;  %v1381_v6 = vpop.f32.mrf.mxu1 }
 0x23e   : > { %5421 = vst [vmem:[#allocation23_spill] sm:$0xff] %v4953_v22  ;;  %v1382_v33 = vadd.f32 %v1381_v6, %v4597_v39  ;;  %2242 = vmatmul.bf16.gmra.mxu0 %v3524_v9  ;;  %v3539_v39 = vld [vmem:[%s4182_s27 + $0x50] sm:$0xf]  ;;  %v3922_v9 = vld [vmem:[%s4182_s27 + $0x54] sm:$0xf]  ;;  %v5428_v22 = vld [vmem:[#allocation4_spill] sm:$0xff] }
 0x23f   : > { %5422 = vst [vmem:[#allocation24_spill] sm:$0xff] %v4956_v32 }
 0x240   : > { %3754 = vmatmul.msk.bf16.gmra.mxu2 %vm605_vm0, %v3528_v14  ;;  %2069 = vmatmul.bf16.gmra.mxu1 %v3532_v57 }
 0x241   : > { %3739 = vmatmul.msk.bf16.gmra.mxu3 %vm605_vm0, %v3536_v43 }
 0x243   : > { %v1643_v8 = vpop.f32.mrf.mxu2  ;;  %v1556_v40 = vpop.f32.mrf.mxu0 }
 0x244   : > { %v1470_v25 = vpop.f32.mrf.mxu3  ;;  %v4961_v63 = vadd.f32 %v1643_v8, %v1555_v26  ;;  %v1557_v51 = vadd.f32 %v1556_v40, %v5424_v36  ;;  %v3540_v26 = vor.u32 %v3923_v34, %v3539_v39  ;;  %v3544_v40 = vor.u32 %v3922_v9, %v3541_v42  ;;  %v5434_v42 = vld [vmem:[#allocation9_spill] sm:$0xff] }
 0x245   : > { %v4964_v16 = vadd.f32 %v1470_v25, %v1382_v33  ;;  %v1383_v5 = vpop.f32.mrf.mxu1  ;;  %v5430_v25 = vld [vmem:[#allocation7_spill] sm:$0xff] }
 0x246   : > { %5423 = vst [vmem:[#allocation25_spill] sm:$0xff] %v4961_v63  ;;  %v1384_v0 = vadd.f32 %v1383_v5, %v5426_v4 }
 0x247   : > { %5425 = vst [vmem:[#allocation3_spill] sm:$0xff] %v4964_v16  ;;  %v5436_v16 = vld [vmem:[#allocation8_spill] sm:$0xff] }
 0x24b   : > { %v1645_v14 = vpop.f32.mrf.mxu2  ;;  %v1559_v61 = vpop.f32.mrf.mxu0 }
 0x24c   : > { %v1472_v6 = vpop.f32.mrf.mxu3  ;;  %v4971_v32 = vadd.f32 %v1645_v14, %v1557_v51  ;;  %v1560_v28 = vadd.f32 %v1559_v61, %v5428_v22  ;;  %v3547_v61 = vld [vmem:[%s4182_s27 + $0x60] sm:$0xf] }
 0x24d   : > { %v4974_v8 = vadd.f32 %v1472_v6, %v1384_v0  ;;  %v1386_v33 = vpop.f32.mrf.mxu1  ;;  %v5432_v0 = vld [vmem:[#allocation6_spill] sm:$0xff]  ;;  %v3925_v6 = vld [vmem:[%s4182_s27 + $0x64] sm:$0xf0] }
 0x24e   : > { %5427 = vst [vmem:[#allocation5_spill] sm:$0xff] %v4971_v32  ;;  %v1387_v36 = vadd.f32 %v1386_v33, %v5430_v25  ;;  %2247 = vmatmul.bf16.gmra.mxu0 %v3532_v57  ;;  %v3924_v57 = vld [vmem:[%s4182_s27 + $0x64] sm:$0xf]  ;;  %v3549_v33 = vld [vmem:[%s4182_s27 + $0x68] sm:$0xf0] }
 0x24f   : > { %5429 = vst [vmem:[#allocation4_spill] sm:$0xff] %v4974_v8 }
 0x250   : > { %3755 = vmatmul.msk.bf16.gmra.mxu2 %vm605_vm0, %v3536_v43  ;;  %2074 = vmatmul.bf16.gmra.mxu1 %v3540_v26 }
 0x251   : > { %3740 = vmatmul.msk.bf16.gmra.mxu3 %vm605_vm0, %v3544_v40 }
 0x253   : > { %v1648_v51 = vpop.f32.mrf.mxu2  ;;  %v1561_v5 = vpop.f32.mrf.mxu0 }
 0x254   : > { %v1475_v22 = vpop.f32.mrf.mxu3  ;;  %v4979_v4 = vadd.f32 %v1648_v51, %v1560_v28  ;;  %v1562_v39 = vadd.f32 %v1561_v5, %v5432_v0  ;;  %v3548_v28 = vor.u32 %v3925_v6, %v3547_v61  ;;  %v3552_v5 = vor.u32 %v3924_v57, %v3549_v33  ;;  %v5440_v57 = vld [vmem:[#allocation13_spill] sm:$0xff] }
 0x255   : > { %v4982_v34 = vadd.f32 %v1475_v22, %v1387_v36  ;;  %v1388_v9 = vpop.f32.mrf.mxu1  ;;  %v5438_v22 = vld [vmem:[#allocation11_spill] sm:$0xff] }
 0x256   : > { %5431 = vst [vmem:[#allocation7_spill] sm:$0xff] %v4979_v4  ;;  %v1389_v14 = vadd.f32 %v1388_v9, %v5434_v42 }
 0x257   : > { %5433 = vst [vmem:[#allocation6_spill] sm:$0xff] %v4982_v34  ;;  %v5442_v34 = vld [vmem:[#allocation12_spill] sm:$0xff] }
 0x25b   : > { %v1650_v43 = vpop.f32.mrf.mxu2  ;;  %v1564_v25 = vpop.f32.mrf.mxu0 }
 0x25c   : > { %v1477_v8 = vpop.f32.mrf.mxu3  ;;  %v4989_v32 = vadd.f32 %v1650_v43, %v1562_v39  ;;  %v1565_v63 = vadd.f32 %v1564_v25, %v5436_v16  ;;  %v3555_v43 = vld [vmem:[%s4182_s27 + $0x70] sm:$0xf]  ;;  %v3927_v25 = vld [vmem:[%s4182_s27 + $0x74] sm:$0xf0] }
 0x25d   : > { %v4992_v51 = vadd.f32 %v1477_v8, %v1389_v14  ;;  %v1391_v36 = vpop.f32.mrf.mxu1  ;;  %v5439_v8 = vld [vmem:[#allocation10_spill] sm:$0xff] }
 0x25e   : > { %5435 = vst [vmem:[#allocation9_spill] sm:$0xff] %v4989_v32  ;;  %v1392_v0 = vadd.f32 %v1391_v36, %v5438_v22  ;;  %2252 = vmatmul.bf16.gmra.mxu0 %v3540_v26  ;;  %v3926_v26 = vld [vmem:[%s4182_s27 + $0x74] sm:$0xf]  ;;  %v3557_v36 = vld [vmem:[%s4182_s27 + $0x78] sm:$0xf0] }
 0x25f   : > { %5437 = vst [vmem:[#allocation8_spill] sm:$0xff] %v4992_v51 }
 0x260   : > { %3756 = vmatmul.msk.bf16.gmra.mxu2 %vm605_vm0, %v3544_v40  ;;  %2079 = vmatmul.bf16.gmra.mxu1 %v3548_v28 }
 0x261   : > { %3741 = vmatmul.msk.bf16.gmra.mxu3 %vm605_vm0, %v3552_v5 }
 0x263   : > { %v1653_v39 = vpop.f32.mrf.mxu2  ;;  %v1566_v9 = vpop.f32.mrf.mxu0 }
 0x264   : > { %v1480_v16 = vpop.f32.mrf.mxu3  ;;  %v4997_v42 = vadd.f32 %v1653_v39, %v1565_v63  ;;  %v1567_v14 = vadd.f32 %v1566_v9, %v5439_v8  ;;  %v3556_v63 = vor.u32 %v3927_v25, %v3555_v43  ;;  %v3560_v9 = vor.u32 %v3926_v26, %v3557_v36  ;;  %v3563_v36 = vld [vmem:[%s4182_s27 + $0x80] sm:$0xf] }
 0x265   : > { %v5000_v61 = vadd.f32 %v1480_v16, %v1392_v0  ;;  %v1393_v6 = vpop.f32.mrf.mxu1  ;;  %v5444_v16 = vld [vmem:[#allocation15_spill] sm:$0xff] }
 0x266   : > { %v1394_v33 = vadd.f32 %v1393_v6, %v5440_v57 }
 0x26b   : > { %v1655_v40 = vpop.f32.mrf.mxu2  ;;  %v1569_v22 = vpop.f32.mrf.mxu0 }
 0x26c   : > { %v1482_v51 = vpop.f32.mrf.mxu3  ;;  %v5007_v32 = vadd.f32 %v1655_v40, %v1567_v14  ;;  %v1570_v4 = vadd.f32 %v1569_v22, %v5442_v34  ;;  %v3929_v40 = vld [vmem:[%s4182_s27 + $0x84] sm:$0xf0]  ;;  %v3565_v22 = vld [vmem:[%s4182_s27 + $0x88] sm:$0xf0] }
 0x26d   : > { %v5010_v39 = vadd.f32 %v1482_v51, %v1394_v33  ;;  %v1396_v0 = vpop.f32.mrf.mxu1  ;;  %v5446_v51 = vld [vmem:[#allocation14_spill] sm:$0xff] }
 0x26e   : > { %5441 = vst [vmem:[#allocation11_spill] sm:$0xff] %v5007_v32  ;;  %v1397_v8 = vadd.f32 %v1396_v0, %v5444_v16  ;;  %2257 = vmatmul.bf16.gmra.mxu0 %v3548_v28  ;;  %v3928_v28 = vld [vmem:[%s4182_s27 + $0x84] sm:$0xf] }
 0x26f   : > { %5443 = vst [vmem:[#allocation10_spill] sm:$0xff] %v5010_v39 }
 0x270   : > { %3757 = vmatmul.msk.bf16.gmra.mxu2 %vm605_vm0, %v3552_v5  ;;  %2084 = vmatmul.bf16.gmra.mxu1 %v3556_v63 }
 0x271   : > { %3742 = vmatmul.msk.bf16.gmra.mxu3 %vm605_vm0, %v3560_v9 }
 0x273   : > { %v1658_v14 = vpop.f32.mrf.mxu2  ;;  %v1571_v6 = vpop.f32.mrf.mxu0 }
 0x274   : > { %v1485_v34 = vpop.f32.mrf.mxu3  ;;  %v5015_v57 = vadd.f32 %v1658_v14, %v1570_v4  ;;  %v1572_v33 = vadd.f32 %v1571_v6, %v5446_v51  ;;  %v3564_v4 = vor.u32 %v3929_v40, %v3563_v36  ;;  %v3568_v6 = vor.u32 %v3928_v28, %v3565_v22  ;;  %v5452_v22 = vld [vmem:[#allocation19_spill] sm:$0xff] }
 0x275   : > { %v5018_v43 = vadd.f32 %v1485_v34, %v1397_v8  ;;  %v1398_v25 = vpop.f32.mrf.mxu1  ;;  %v5450_v34 = vld [vmem:[#allocation17_spill] sm:$0xff] }
 0x276   : > { %5445 = vst [vmem:[#allocation13_spill] sm:$0xff] %v5015_v57  ;;  %v1399_v26 = vadd.f32 %v1398_v25, %v4681_v23 }
 0x277   : > { %5447 = vst [vmem:[#allocation12_spill] sm:$0xff] %v5018_v43  ;;  %v5453_v43 = vld [vmem:[#allocation18_spill] sm:$0xff] }
 0x27b   : > { %v1660_v5 = vpop.f32.mrf.mxu2  ;;  %v1574_v0 = vpop.f32.mrf.mxu0 }
 0x27c   : > { %v1487_v16 = vpop.f32.mrf.mxu3  ;;  %v5025_v39 = vadd.f32 %v1660_v5, %v1572_v33  ;;  %v1575_v32 = vadd.f32 %v1574_v0, %v4679_v2  ;;  %v3571_v0 = vld [vmem:[%s4182_s27 + $0x90] sm:$0xf] }
 0x27d   : > { %v5028_v14 = vadd.f32 %v1487_v16, %v1399_v26  ;;  %v1401_v8 = vpop.f32.mrf.mxu1  ;;  %v5451_v26 = vld [vmem:[#allocation16_spill] sm:$0xff]  ;;  %v3931_v16 = vld [vmem:[%s4182_s27 + $0x94] sm:$0xf0] }
 0x27e   : > { %5448 = vst [vmem:[#allocation15_spill] sm:$0xff] %v5025_v39  ;;  %v1402_v23 = vadd.f32 %v1401_v8, %v5450_v34  ;;  %2262 = vmatmul.bf16.gmra.mxu0 %v3556_v63  ;;  %v3930_v63 = vld [vmem:[%s4182_s27 + $0x94] sm:$0xf]  ;;  %v3573_v8 = vld [vmem:[%s4182_s27 + $0x98] sm:$0xf0] }
 0x27f   : > { %5449 = vst [vmem:[#allocation14_spill] sm:$0xff] %v5028_v14 }
 0x280   : > { %3758 = vmatmul.msk.bf16.gmra.mxu2 %vm605_vm0, %v3560_v9  ;;  %2089 = vmatmul.bf16.gmra.mxu1 %v3564_v4 }
 0x281   : > { %3743 = vmatmul.msk.bf16.gmra.mxu3 %vm605_vm0, %v3568_v6 }
 0x283   : > { %v1663_v51 = vpop.f32.mrf.mxu2  ;;  %v1576_v33 = vpop.f32.mrf.mxu0 }
 0x284   : > { %v1490_v2 = vpop.f32.mrf.mxu3  ;;  %v5033_v25 = vadd.f32 %v1663_v51, %v1575_v32  ;;  %v1577_v36 = vadd.f32 %v1576_v33, %v5451_v26  ;;  %v3572_v32 = vor.u32 %v3931_v16, %v3571_v0  ;;  %v3576_v33 = vor.u32 %v3930_v63, %v3573_v8  ;;  %v3579_v16 = vld [vmem:[%s4182_s27 + $0xa0] sm:$0xf]  ;;  %v3932_v63 = vld [vmem:[%s4182_s27 + $0xa4] sm:$0xf] }
 0x285   : > { %v5036_v40 = vadd.f32 %v1490_v2, %v1402_v23  ;;  %v1403_v28 = vpop.f32.mrf.mxu1 }
 0x286   : > { %v1404_v5 = vadd.f32 %v1403_v28, %v5452_v22 }
 0x28b   : > { %v1665_v9 = vpop.f32.mrf.mxu2  ;;  %v1579_v34 = vpop.f32.mrf.mxu0 }
 0x28c   : > { %v1492_v14 = vpop.f32.mrf.mxu3  ;;  %v5043_v39 = vadd.f32 %v1665_v9, %v1577_v36  ;;  %v1580_v57 = vadd.f32 %v1579_v34, %v5453_v43 }
 0x28d   : > { %v5046_v51 = vadd.f32 %v1492_v14, %v1404_v5  ;;  %v1406_v23 = vpop.f32.mrf.mxu1  ;;  %v5456_v14 = vld [vmem:[#allocation20_spill] sm:$0xff] }
 0x28e   : > { %v1407_v2 = vadd.f32 %v1406_v23, %v4727_v21  ;;  %2267 = vmatmul.bf16.gmra.mxu0 %v3564_v4  ;;  %v3933_v4 = vld [vmem:[%s4182_s27 + $0xa4] sm:$0xf0] }
 0x28f   : > { %5454 = vst [vmem:[#allocation17_spill] sm:$0xff] %v5046_v51  ;;  %v5459_v51 = vld [vmem:[#allocation21_spill] sm:$0xff] }
 0x290   : > { %3759 = vmatmul.msk.bf16.gmra.mxu2 %vm605_vm0, %v3568_v6  ;;  %2094 = vmatmul.bf16.gmra.mxu1 %v3572_v32  ;;  %v3581_v6 = vld [vmem:[%s4182_s27 + $0xa8] sm:$0xf0] }
 0x291   : > { %3744 = vmatmul.msk.bf16.gmra.mxu3 %vm605_vm0, %v3576_v33 }
 0x293   : > { %v1668_v26 = vpop.f32.mrf.mxu2  ;;  %v1581_v36 = vpop.f32.mrf.mxu0 }
 0x294   : > { %v1495_v43 = vpop.f32.mrf.mxu3  ;;  %v5051_v28 = vadd.f32 %v1668_v26, %v1580_v57  ;;  %v1582_v22 = vadd.f32 %v1581_v36, %v5456_v14  ;;  %v3580_v26 = vor.u32 %v3933_v4, %v3579_v16  ;;  %v5078_v4 = vstv %s2541_s24 }
 0x295   : > { %v5054_v5 = vadd.f32 %v1495_v43, %v1407_v2  ;;  %v1408_v0 = vpop.f32.mrf.mxu1  ;;  %v3584_v2 = vor.u32 %v3932_v63, %v3581_v6  ;;  %v3587_v6 = vld [vmem:[%s4182_s27 + $0xb0] sm:$0xf] }
 0x296   : > { %5455 = vst [vmem:[#allocation16_spill] sm:$0xff] %v5051_v28  ;;  %v1409_v21 = vadd.f32 %v1408_v0, %v4734_v55  ;;  %v2471_v55 = vld [vmem:[%s5398_s2] sm:$0x3] }
 0x297   : > { %5457 = vst [vmem:[#allocation19_spill] sm:$0xff] %v5054_v5  ;;  %v5075_v0 = vperm.slane %v2471_v55, 0 }
 0x29b   : > { %v1670_v8 = vpop.f32.mrf.mxu2  ;;  %v1584_v9 = vpop.f32.mrf.mxu0 }
 0x29c   : > { %v1497_v34 = vpop.f32.mrf.mxu3  ;;  %v5061_v23 = vadd.f32 %v1670_v8, %v1582_v22  ;;  %v1585_v57 = vadd.f32 %v1584_v9, %v5459_v51  ;;  %v3935_v8 = vld [vmem:[%s4182_s27 + $0xb4] sm:$0xf0]  ;;  %v3934_v9 = vld [vmem:[%s4182_s27 + $0xb4] sm:$0xf] }
 0x29d   : > { %v5064_v28 = vadd.f32 %v1497_v34, %v1409_v21  ;;  %v2060_v36 = vpop.f32.mrf.mxu1  ;;  %v3589_v34 = vld [vmem:[%s4182_s27 + $0xb8] sm:$0xf0] }
 0x29e   : > { %5458 = vst [vmem:[#allocation18_spill] sm:$0xff] %v5061_v23  ;;  %2272 = vmatmul.bf16.gmra.mxu0 %v3572_v32 }
 0x29f   : > { %5460 = vst [vmem:[#allocation20_spill] sm:$0xff] %v5064_v28 }
 0x2a0   : > { %3760 = vmatmul.msk.bf16.gmra.mxu2 %vm605_vm0, %v3576_v33  ;;  %2099 = vmatmul.bf16.gmra.mxu1 %v3580_v26 }
 0x2a1   : > { %3745 = vmatmul.msk.bf16.gmra.mxu3 %vm605_vm0, %v3584_v2 }
 0x2a3   : > { %v1673_v51 = vpop.f32.mrf.mxu2  ;;  %v1586_v43 = vpop.f32.mrf.mxu0 }
 0x2a4   : > { %v5072_v14 = vadd.f32 %v1673_v51, %v1585_v57  ;;  %v2149_v32 = vpop.f32.mrf.mxu3  ;;  %v1587_v33 = vadd.f32 %v1586_v43, %v4743_v52  ;;  %v3588_v43 = vor.u32 %v3935_v8, %v3587_v6  ;;  %v5099_v8 = vperm.slane %v2471_v55, 1  ;;  %v3936_v55 = vld [vmem:[%s4182_s27 + $0xc4] sm:$0xf] }
 0x2a5   : > { %v2150_v22 = vadd.f32 %v2149_v32, %v2060_v36  ;;  %v2062_v21 = vpop.f32.mrf.mxu1 }
 0x2a6   : > { %5461 = vst [vmem:[#allocation21_spill] sm:$0xff] %v5072_v14 }
 0x2a7   : > { %v2407_v16 = vadd.f32 %v2150_v22, %v4736_v15 }
 0x2a9   : > { %v2477_v63 = vadd.f32 %v5075_v0, %v2407_v16  ;;  %v3592_v16 = vor.u32 %v3934_v9, %v3589_v34 }
 0x2ab   : > { %vm2542_vm1 = vcmp.ge.f32.partialorder %v2477_v63, 0.0  ;;  %v2607_v52 = vmul.f32 %v5078_v4, %v2477_v63  ;;  %v1675_v57 = vpop.f32.mrf.mxu2  ;;  %v2238_v15 = vpop.f32.mrf.mxu0 }
 0x2ac   : > { %v5091_v36 = vadd.f32 %v1675_v57, %v1587_v33  ;;  %v2151_v51 = vpop.f32.mrf.mxu3 }
 0x2ad   : > { %v2671_v32 = vsel %vm2542_vm1, %v2477_v63, %v2607_v52  ;;  %v2152_v22 = vadd.f32 %v2151_v51, %v2062_v21  ;;  %v2065_v14 = vpop.f32.mrf.mxu1  ;;  %v3595_v51 = vld [vmem:[%s4182_s27 + $0xc0] sm:$0xf] }
 0x2ae   : > { %5462 = vst [vmem:[#allocation26_spill] sm:$0xff] %v5091_v36  ;;  %2277 = vmatmul.bf16.gmra.mxu0 %v3580_v26 }
 0x2af   : > { %2735 = vst [vmem:[%s5088_s30] sm:$0xff] %v2671_v32  ;;  %v2409_v28 = vadd.f32 %v2152_v22, %v4746_v24  ;;  %v3937_v32 = vld [vmem:[%s4182_s27 + $0xc4] sm:$0xf0] }
 0x2b0   : > { %3761 = vmatmul.msk.bf16.gmra.mxu2 %vm605_vm0, %v3584_v2  ;;  %2104 = vmatmul.bf16.gmra.mxu1 %v3588_v43 }
 0x2b1   : > { %v2479_v23 = vadd.f32 %v5075_v0, %v2409_v28  ;;  %3746 = vmatmul.msk.bf16.gmra.mxu3 %vm605_vm0, %v3592_v16 }
 0x2b3   : > { %vm2544_vm2 = vcmp.ge.f32.partialorder %v2479_v23, 0.0  ;;  %v2609_v33 = vmul.f32 %v5078_v4, %v2479_v23  ;;  %v2327_v21 = vpop.f32.mrf.mxu2  ;;  %v2240_v63 = vpop.f32.mrf.mxu0 }
 0x2b4   : > { %v2154_v6 = vpop.f32.mrf.mxu3  ;;  %v2328_v26 = vadd.f32 %v2327_v21, %v2238_v15 }
 0x2b5   : > { %v2673_v24 = vsel %vm2544_vm2, %v2479_v23, %v2609_v33  ;;  %v2155_v2 = vadd.f32 %v2154_v6, %v2065_v14  ;;  %v2067_v9 = vpop.f32.mrf.mxu1  ;;  %v3597_v23 = vld [vmem:[%s4182_s27 + $0xc8] sm:$0xf0]  ;;  %v3596_v6 = vor.u32 %v3937_v32, %v3595_v51 }
 0x2b6   : > { %2736 = vst [vmem:[%s5088_s30 + $0x8] sm:$0xff] %v2673_v24  ;;  %v2408_v28 = vadd.f32 %v2328_v26, %v4751_v58 }
 0x2b7   : > { %v2411_v34 = vadd.f32 %v2155_v2, %v4754_v47  ;;  %v3600_v2 = vor.u32 %v3936_v55, %v3597_v23 }
 0x2b8   : > { %v2478_v52 = vadd.f32 %v5099_v8, %v2408_v28 }
 0x2b9   : > { %v2481_v57 = vadd.f32 %v5075_v0, %v2411_v34 }
 0x2ba   : > { %vm2543_vm3 = vcmp.ge.f32.partialorder %v2478_v52, 0.0  ;;  %v2608_v15 = vmul.f32 %v5078_v4, %v2478_v52 }
 0x2bb   : > { %vm2546_vm4 = vcmp.ge.f32.partialorder %v2481_v57, 0.0  ;;  %v2611_v14 = vmul.f32 %v5078_v4, %v2481_v57  ;;  %v2329_v22 = vpop.f32.mrf.mxu2  ;;  %v2243_v58 = vpop.f32.mrf.mxu0 }
 0x2bc   : > { %v2672_v33 = vsel %vm2543_vm3, %v2478_v52, %v2608_v15  ;;  %v2156_v47 = vpop.f32.mrf.mxu3  ;;  %v2330_v21 = vadd.f32 %v2329_v22, %v2240_v63  ;;  %v3603_v22 = vld [vmem:[%s4182_s27 + $0xd0] sm:$0xf] }
 0x2bd   : > { %v2675_v26 = vsel %vm2546_vm4, %v2481_v57, %v2611_v14  ;;  %3769 = vst [vmem:[%s5088_s30 + $0x10] sm:$0xff] %v2672_v33  ;;  %v2157_v24 = vadd.f32 %v2156_v47, %v2067_v9  ;;  %v2070_v28 = vpop.f32.mrf.mxu1  ;;  %v3605_v47 = vld [vmem:[%s4182_s27 + $0xd8] sm:$0xf0] }
 0x2be   : > { %2737 = vst [vmem:[%s5088_s30 + $0x20] sm:$0xff] %v2675_v26  ;;  %v2410_v34 = vadd.f32 %v2330_v21, %v4773_v60  ;;  %2282 = vmatmul.bf16.gmra.mxu0 %v3588_v43 }
 0x2bf   : > { %v2413_v36 = vadd.f32 %v2157_v24, %v4776_v13 }
 0x2c0   : > { %v2480_v5 = vadd.f32 %v5099_v8, %v2410_v34  ;;  %3762 = vmatmul.msk.bf16.gmra.mxu2 %vm605_vm0, %v3592_v16  ;;  %2109 = vmatmul.bf16.gmra.mxu1 %v3596_v6 }
 0x2c1   : > { %v2483_v63 = vadd.f32 %v5075_v0, %v2413_v36  ;;  %3747 = vmatmul.msk.bf16.gmra.mxu3 %vm605_vm0, %v3600_v2 }
 0x2c2   : > { %vm2545_vm5 = vcmp.ge.f32.partialorder %v2480_v5, 0.0  ;;  %v2610_v9 = vmul.f32 %v5078_v4, %v2480_v5 }
 0x2c3   : > { %vm2548_vm6 = vcmp.ge.f32.partialorder %v2483_v63, 0.0  ;;  %v2613_v60 = vmul.f32 %v5078_v4, %v2483_v63  ;;  %v2332_v13 = vpop.f32.mrf.mxu2  ;;  %v2245_v43 = vpop.f32.mrf.mxu0 }
 0x2c4   : > { %v2674_v52 = vsel %vm2545_vm5, %v2480_v5, %v2610_v9  ;;  %v2159_v57 = vpop.f32.mrf.mxu3  ;;  %v2333_v16 = vadd.f32 %v2332_v13, %v2243_v58  ;;  %v3939_v5 = vld [vmem:[%s4182_s27 + $0xd4] sm:$0xf0]  ;;  %v3938_v58 = vld [vmem:[%s4182_s27 + $0xd4] sm:$0xf] }
 0x2c5   : > { %v2677_v51 = vsel %vm2548_vm6, %v2483_v63, %v2613_v60  ;;  %3770 = vst [vmem:[%s5088_s30 + $0x18] sm:$0xff] %v2674_v52  ;;  %v2160_v36 = vadd.f32 %v2159_v57, %v2070_v28  ;;  %v2072_v32 = vpop.f32.mrf.mxu1  ;;  %v3604_v34 = vor.u32 %v3939_v5, %v3603_v22  ;;  %v3608_v60 = vor.u32 %v3938_v58, %v3605_v47  ;;  %v3611_v58 = vld [vmem:[%s4182_s27 + $0xe0] sm:$0xf]  ;;  %v3941_v47 = vld [vmem:[%s4182_s27 + $0xe4] sm:$0xf0] }
 0x2c6   : > { %2738 = vst [vmem:[%s5088_s30 + $0x28] sm:$0xff] %v2677_v51  ;;  %v2412_v15 = vadd.f32 %v2333_v16, %v4781_v11 }
 0x2c7   : > { %v2415_v55 = vadd.f32 %v2160_v36, %v4784_v1 }
 0x2c8   : > { %v2482_v23 = vadd.f32 %v5099_v8, %v2412_v15 }
 0x2c9   : > { %v2485_v14 = vadd.f32 %v5075_v0, %v2415_v55 }
 0x2ca   : > { %vm2547_vm7 = vcmp.ge.f32.partialorder %v2482_v23, 0.0  ;;  %v2612_v33 = vmul.f32 %v5078_v4, %v2482_v23 }
 0x2cb   : > { %vm2550_vm8 = vcmp.ge.f32.partialorder %v2485_v14, 0.0  ;;  %v2615_v21 = vmul.f32 %v5078_v4, %v2485_v14  ;;  %v2334_v26 = vpop.f32.mrf.mxu2  ;;  %v2248_v11 = vpop.f32.mrf.mxu0 }
 0x2cc   : > { %v2676_v24 = vsel %vm2547_vm7, %v2482_v23, %v2612_v33  ;;  %v2161_v1 = vpop.f32.mrf.mxu3  ;;  %v2335_v28 = vadd.f32 %v2334_v26, %v2245_v43  ;;  %v3940_v26 = vld [vmem:[%s4182_s27 + $0xe4] sm:$0xf] }
 0x2cd   : > { %v2679_v63 = vsel %vm2550_vm8, %v2485_v14, %v2615_v21  ;;  %3771 = vst [vmem:[%s5088_s30 + $0x30] sm:$0xff] %v2676_v24  ;;  %v2162_v9 = vadd.f32 %v2161_v1, %v2072_v32  ;;  %v2075_v13 = vpop.f32.mrf.mxu1 }
 0x2ce   : > { %2739 = vst [vmem:[%s5088_s30 + $0x40] sm:$0xff] %v2679_v63  ;;  %v2414_v52 = vadd.f32 %v2335_v28, %v4791_v17  ;;  %2287 = vmatmul.bf16.gmra.mxu0 %v3596_v6 }
 0x2cf   : > { %v2417_v57 = vadd.f32 %v2162_v9, %v4794_v38  ;;  %v3612_v9 = vor.u32 %v3941_v47, %v3611_v58  ;;  %v3943_v58 = vld [vmem:[%s4182_s27 + $0xf4] sm:$0xf0] }
 0x2d0   : > { %v2484_v16 = vadd.f32 %v5099_v8, %v2414_v52  ;;  %3763 = vmatmul.msk.bf16.gmra.mxu2 %vm605_vm0, %v3600_v2  ;;  %2114 = vmatmul.bf16.gmra.mxu1 %v3604_v34 }
 0x2d1   : > { %v2487_v43 = vadd.f32 %v5075_v0, %v2417_v57  ;;  %3748 = vmatmul.msk.bf16.gmra.mxu3 %vm605_vm0, %v3608_v60 }
 0x2d2   : > { %vm2549_vm9 = vcmp.ge.f32.partialorder %v2484_v16, 0.0  ;;  %v2614_v51 = vmul.f32 %v5078_v4, %v2484_v16 }
 0x2d3   : > { %vm2552_vm10 = vcmp.ge.f32.partialorder %v2487_v43, 0.0  ;;  %v2617_v17 = vmul.f32 %v5078_v4, %v2487_v43  ;;  %v2337_v38 = vpop.f32.mrf.mxu2  ;;  %v2250_v6 = vpop.f32.mrf.mxu0 }
 0x2d4   : > { %v2678_v36 = vsel %vm2549_vm9, %v2484_v16, %v2614_v51  ;;  %v2164_v32 = vpop.f32.mrf.mxu3  ;;  %v2338_v2 = vadd.f32 %v2337_v38, %v2248_v11  ;;  %v3613_v11 = vld [vmem:[%s4182_s27 + $0xe8] sm:$0xf0] }
 0x2d5   : > { %v2681_v15 = vsel %vm2552_vm10, %v2487_v43, %v2617_v17  ;;  %3772 = vst [vmem:[%s5088_s30 + $0x38] sm:$0xff] %v2678_v36  ;;  %v2165_v55 = vadd.f32 %v2164_v32, %v2075_v13  ;;  %v2077_v23 = vpop.f32.mrf.mxu1  ;;  %v3616_v57 = vor.u32 %v3940_v26, %v3613_v11  ;;  %v3621_v26 = vld [vmem:[%s4182_s27 + $0xf8] sm:$0xf0] }
 0x2d6   : > { %2740 = vst [vmem:[%s5088_s30 + $0x48] sm:$0xff] %v2681_v15  ;;  %v2416_v14 = vadd.f32 %v2338_v2, %v4811_v31 }
 0x2d7   : > { %v2419_v22 = vadd.f32 %v2165_v55, %v4814_v45 }
 0x2d8   : > { %v2486_v5 = vadd.f32 %v5099_v8, %v2416_v14 }
 0x2d9   : > { %v2489_v33 = vadd.f32 %v5075_v0, %v2419_v22 }
 0x2da   : > { %vm2551_vm11 = vcmp.ge.f32.partialorder %v2486_v5, 0.0  ;;  %v2616_v21 = vmul.f32 %v5078_v4, %v2486_v5 }
 0x2db   : > { %vm2554_vm12 = vcmp.ge.f32.partialorder %v2489_v33, 0.0  ;;  %v2619_v24 = vmul.f32 %v5078_v4, %v2489_v33  ;;  %v2339_v1 = vpop.f32.mrf.mxu2  ;;  %v2253_v31 = vpop.f32.mrf.mxu0 }
 0x2dc   : > { %v2680_v28 = vsel %vm2551_vm11, %v2486_v5, %v2616_v21  ;;  %v2166_v45 = vpop.f32.mrf.mxu3  ;;  %v2340_v63 = vadd.f32 %v2339_v1, %v2250_v6  ;;  %v3942_v21 = vld [vmem:[%s4182_s27 + $0xf4] sm:$0xf] }
 0x2dd   : > { %v2683_v13 = vsel %vm2554_vm12, %v2489_v33, %v2619_v24  ;;  %3773 = vst [vmem:[%s5088_s30 + $0x50] sm:$0xff] %v2680_v28  ;;  %v2167_v52 = vadd.f32 %v2166_v45, %v2077_v23  ;;  %v2080_v16 = vpop.f32.mrf.mxu1  ;;  %v3619_v33 = vld [vmem:[%s4182_s27 + $0xf0] sm:$0xf] }
 0x2de   : > { %2741 = vst [vmem:[%s5088_s30 + $0x60] sm:$0xff] %v2683_v13  ;;  %v2418_v43 = vadd.f32 %v2340_v63, %v4833_v10  ;;  %2292 = vmatmul.bf16.gmra.mxu0 %v3604_v34  ;;  %v3620_v28 = vor.u32 %v3943_v58, %v3619_v33  ;;  %v3624_v13 = vor.u32 %v3942_v21, %v3621_v26 }
 0x2df   : > { %v2421_v51 = vadd.f32 %v2167_v52, %v4836_v3 }
 0x2e0   : > { %v2488_v17 = vadd.f32 %v5099_v8, %v2418_v43  ;;  %3764 = vmatmul.msk.bf16.gmra.mxu2 %vm605_vm0, %v3608_v60  ;;  %2119 = vmatmul.bf16.gmra.mxu1 %v3612_v9 }
 0x2e1   : > { %v2491_v38 = vadd.f32 %v5075_v0, %v2421_v51  ;;  %3749 = vmatmul.msk.bf16.gmra.mxu3 %vm605_vm0, %v3616_v57 }
 0x2e2   : > { %vm2553_vm13 = vcmp.ge.f32.partialorder %v2488_v17, 0.0  ;;  %v2618_v6 = vmul.f32 %v5078_v4, %v2488_v17 }
 0x2e3   : > { %vm2556_vm14 = vcmp.ge.f32.partialorder %v2491_v38, 0.0  ;;  %v2621_v10 = vmul.f32 %v5078_v4, %v2491_v38  ;;  %v2342_v3 = vpop.f32.mrf.mxu2  ;;  %v2255_v34 = vpop.f32.mrf.mxu0 }
 0x2e4   : > { %v2682_v36 = vsel %vm2553_vm13, %v2488_v17, %v2618_v6  ;;  %v2169_v32 = vpop.f32.mrf.mxu3  ;;  %v2343_v60 = vadd.f32 %v2342_v3, %v2253_v31 }
 0x2e5   : > { %v2685_v2 = vsel %vm2556_vm14, %v2491_v38, %v2621_v10  ;;  %3774 = vst [vmem:[%s5088_s30 + $0x58] sm:$0xff] %v2682_v36  ;;  %v2170_v15 = vadd.f32 %v2169_v32, %v2080_v16  ;;  %v2082_v55 = vpop.f32.mrf.mxu1 }
 0x2e6   : > { %2742 = vst [vmem:[%s5088_s30 + $0x68] sm:$0xff] %v2685_v2  ;;  %v2420_v23 = vadd.f32 %v2343_v60, %v4841_v29 }
 0x2e7   : > { %v2423_v14 = vadd.f32 %v2170_v15, %v4844_v46 }
 0x2e8   : > { %v2490_v22 = vadd.f32 %v5099_v8, %v2420_v23  ;;  %v3945_v23 = vld [vmem:[%s4182_s27 + $0x104] sm:$0xf0] }
 0x2e9   : > { %v2493_v5 = vadd.f32 %v5075_v0, %v2423_v14 }
 0x2ea   : > { %vm2555_vm15 = vcmp.ge.f32.partialorder %v2490_v22, 0.0  ;;  %v2620_v47 = vmul.f32 %v5078_v4, %v2490_v22 }
 0x2eb   : > { %vm2558_vm1 = vcmp.ge.f32.partialorder %v2493_v5, 0.0  ;;  %v2623_v11 = vmul.f32 %v5078_v4, %v2493_v5  ;;  %v2344_v24 = vpop.f32.mrf.mxu2  ;;  %v2258_v29 = vpop.f32.mrf.mxu0 }
 0x2ec   : > { %v2684_v1 = vsel %vm2555_vm15, %v2490_v22, %v2620_v47  ;;  %v2171_v46 = vpop.f32.mrf.mxu3  ;;  %v2345_v31 = vadd.f32 %v2344_v24, %v2255_v34  ;;  %v3944_v22 = vld [vmem:[%s4182_s27 + $0x104] sm:$0xf] }
 0x2ed   : > { %v2687_v45 = vsel %vm2558_vm1, %v2493_v5, %v2623_v11  ;;  %3775 = vst [vmem:[%s5088_s30 + $0x70] sm:$0xff] %v2684_v1  ;;  %v2172_v63 = vadd.f32 %v2171_v46, %v2082_v55  ;;  %v2085_v52 = vpop.f32.mrf.mxu1  ;;  %v3627_v55 = vld [vmem:[%s4182_s27 + $0x100] sm:$0xf]  ;;  %v3629_v5 = vld [vmem:[%s4182_s27 + $0x108] sm:$0xf0] }
 0x2ee   : > { %2743 = vst [vmem:[%s5088_s30 + $0x80] sm:$0xff] %v2687_v45  ;;  %v2422_v16 = vadd.f32 %v2345_v31, %v4851_v54  ;;  %2297 = vmatmul.bf16.gmra.mxu0 %v3612_v9  ;;  %v3628_v26 = vor.u32 %v3945_v23, %v3627_v55 }
 0x2ef   : > { %v2425_v43 = vadd.f32 %v2172_v63, %v4854_v49 }
 0x2f0   : > { %v2492_v51 = vadd.f32 %v5099_v8, %v2422_v16  ;;  %3765 = vmatmul.msk.bf16.gmra.mxu2 %vm605_vm0, %v3616_v57  ;;  %2124 = vmatmul.bf16.gmra.mxu1 %v3620_v28 }
 0x2f1   : > { %v2495_v17 = vadd.f32 %v5075_v0, %v2425_v43  ;;  %3750 = vmatmul.msk.bf16.gmra.mxu3 %vm605_vm0, %v3624_v13 }
 0x2f2   : > { %vm2557_vm2 = vcmp.ge.f32.partialorder %v2492_v51, 0.0  ;;  %v2622_v38 = vmul.f32 %v5078_v4, %v2492_v51 }
 0x2f3   : > { %vm2560_vm3 = vcmp.ge.f32.partialorder %v2495_v17, 0.0  ;;  %v2625_v54 = vmul.f32 %v5078_v4, %v2495_v17  ;;  %v2347_v49 = vpop.f32.mrf.mxu2  ;;  %v2260_v9 = vpop.f32.mrf.mxu0 }
 0x2f4   : > { %v2686_v6 = vsel %vm2557_vm2, %v2492_v51, %v2622_v38  ;;  %v2174_v10 = vpop.f32.mrf.mxu3  ;;  %v2348_v57 = vadd.f32 %v2347_v49, %v2258_v29  ;;  %v3632_v29 = vor.u32 %v3944_v22, %v3629_v5 }
 0x2f5   : > { %v2689_v3 = vsel %vm2560_vm3, %v2495_v17, %v2625_v54  ;;  %3776 = vst [vmem:[%s5088_s30 + $0x78] sm:$0xff] %v2686_v6  ;;  %v2175_v34 = vadd.f32 %v2174_v10, %v2085_v52  ;;  %v2087_v36 = vpop.f32.mrf.mxu1  ;;  %v3635_v10 = vld [vmem:[%s4182_s27 + $0x110] sm:$0xf] }
 0x2f6   : > { %2744 = vst [vmem:[%s5088_s30 + $0x88] sm:$0xff] %v2689_v3  ;;  %v2424_v32 = vadd.f32 %v2348_v57, %v4859_v27  ;;  %v3947_v57 = vld [vmem:[%s4182_s27 + $0x114] sm:$0xf0] }
 0x2f7   : > { %v2427_v60 = vadd.f32 %v2175_v34, %v4862_v7  ;;  %v3946_v34 = vld [vmem:[%s4182_s27 + $0x114] sm:$0xf]  ;;  %v3636_v55 = vor.u32 %v3947_v57, %v3635_v10 }
 0x2f8   : > { %v2494_v2 = vadd.f32 %v5099_v8, %v2424_v32 }
 0x2f9   : > { %v2497_v15 = vadd.f32 %v5075_v0, %v2427_v60 }
 0x2fa   : > { %vm2559_vm4 = vcmp.ge.f32.partialorder %v2494_v2, 0.0  ;;  %v2624_v14 = vmul.f32 %v5078_v4, %v2494_v2 }
 0x2fb   : > { %vm2562_vm5 = vcmp.ge.f32.partialorder %v2497_v15, 0.0  ;;  %v2627_v33 = vmul.f32 %v5078_v4, %v2497_v15  ;;  %v2349_v58 = vpop.f32.mrf.mxu2  ;;  %v2263_v27 = vpop.f32.mrf.mxu0 }
 0x2fc   : > { %v2688_v47 = vsel %vm2559_vm4, %v2494_v2, %v2624_v14  ;;  %v2176_v7 = vpop.f32.mrf.mxu3  ;;  %v2350_v21 = vadd.f32 %v2349_v58, %v2260_v9 }
 0x2fd   : > { %v2691_v11 = vsel %vm2562_vm5, %v2497_v15, %v2627_v33  ;;  %3777 = vst [vmem:[%s5088_s30 + $0x90] sm:$0xff] %v2688_v47  ;;  %v2177_v24 = vadd.f32 %v2176_v7, %v2087_v36  ;;  %v2090_v1 = vpop.f32.mrf.mxu1  ;;  %v3637_v36 = vld [vmem:[%s4182_s27 + $0x118] sm:$0xf0] }
 0x2fe   : > { %2745 = vst [vmem:[%s5088_s30 + $0xa0] sm:$0xff] %v2691_v11  ;;  %v2426_v46 = vadd.f32 %v2350_v21, %v4881_v30  ;;  %2302 = vmatmul.bf16.gmra.mxu0 %v3620_v28  ;;  %v3640_v22 = vor.u32 %v3946_v34, %v3637_v36 }
 0x2ff   : > { %v2429_v31 = vadd.f32 %v2177_v24, %v4884_v50 }
 0x300   : > { %v2496_v45 = vadd.f32 %v5099_v8, %v2426_v46  ;;  %3766 = vmatmul.msk.bf16.gmra.mxu2 %vm605_vm0, %v3624_v13  ;;  %2129 = vmatmul.bf16.gmra.mxu1 %v3628_v26 }
 0x301   : > { %v2499_v63 = vadd.f32 %v5075_v0, %v2429_v31  ;;  %3751 = vmatmul.msk.bf16.gmra.mxu3 %vm605_vm0, %v3632_v29 }
 0x302   : > { %vm2561_vm6 = vcmp.ge.f32.partialorder %v2496_v45, 0.0  ;;  %v2626_v52 = vmul.f32 %v5078_v4, %v2496_v45 }
 0x303   : > { %vm2564_vm7 = vcmp.ge.f32.partialorder %v2499_v63, 0.0  ;;  %v2629_v30 = vmul.f32 %v5078_v4, %v2499_v63  ;;  %v2352_v50 = vpop.f32.mrf.mxu2  ;;  %v2265_v28 = vpop.f32.mrf.mxu0 }
 0x304   : > { %v2690_v16 = vsel %vm2561_vm6, %v2496_v45, %v2626_v52  ;;  %v2179_v43 = vpop.f32.mrf.mxu3  ;;  %v2353_v13 = vadd.f32 %v2352_v50, %v2263_v27 }
 0x305   : > { %v2693_v51 = vsel %vm2564_vm7, %v2499_v63, %v2629_v30  ;;  %3778 = vst [vmem:[%s5088_s30 + $0x98] sm:$0xff] %v2690_v16  ;;  %v2180_v17 = vadd.f32 %v2179_v43, %v2090_v1  ;;  %v2092_v38 = vpop.f32.mrf.mxu1 }
 0x306   : > { %2746 = vst [vmem:[%s5088_s30 + $0xa8] sm:$0xff] %v2693_v51  ;;  %v2428_v54 = vadd.f32 %v2353_v13, %v4889_v48 }
 0x307   : > { %v2431_v49 = vadd.f32 %v2180_v17, %v4892_v18 }
 0x308   : > { %v2498_v9 = vadd.f32 %v5099_v8, %v2428_v54 }
 0x309   : > { %v2501_v6 = vadd.f32 %v5075_v0, %v2431_v49 }
 0x30a   : > { %vm2563_vm8 = vcmp.ge.f32.partialorder %v2498_v9, 0.0  ;;  %v2628_v3 = vmul.f32 %v5078_v4, %v2498_v9 }
 0x30b   : > { %vm2566_vm9 = vcmp.ge.f32.partialorder %v2501_v6, 0.0  ;;  %v2631_v32 = vmul.f32 %v5078_v4, %v2501_v6  ;;  %v2354_v60 = vpop.f32.mrf.mxu2  ;;  %v2268_v48 = vpop.f32.mrf.mxu0 }
 0x30c   : > { %v2692_v2 = vsel %vm2563_vm8, %v2498_v9, %v2628_v3  ;;  %v2181_v18 = vpop.f32.mrf.mxu3  ;;  %v2355_v15 = vadd.f32 %v2354_v60, %v2265_v28 }
 0x30d   : > { %v2695_v23 = vsel %vm2566_vm9, %v2501_v6, %v2631_v32  ;;  %3779 = vst [vmem:[%s5088_s30 + $0xb0] sm:$0xff] %v2692_v2  ;;  %v2182_v14 = vadd.f32 %v2181_v18, %v2092_v38  ;;  %v2095_v5 = vpop.f32.mrf.mxu1 }
 0x30e   : > { %2747 = vst [vmem:[%s5088_s30 + $0xc0] sm:$0xff] %v2695_v23  ;;  %v2430_v33 = vadd.f32 %v2355_v15, %v4899_v41  ;;  %2307 = vmatmul.bf16.gmra.mxu0 %v3628_v26 }
 0x30f   : > { %v2433_v58 = vadd.f32 %v2182_v14, %v4902_v44 }
 0x310   : > { %v2500_v27 = vadd.f32 %v5099_v8, %v2430_v33  ;;  %3767 = vmatmul.msk.bf16.gmra.mxu2 %vm605_vm0, %v3632_v29  ;;  %2134 = vmatmul.bf16.gmra.mxu1 %v3636_v55 }
 0x311   : > { %v2503_v47 = vadd.f32 %v5075_v0, %v2433_v58  ;;  %3752 = vmatmul.msk.bf16.gmra.mxu3 %vm605_vm0, %v3640_v22 }
 0x312   : > { %vm2565_vm10 = vcmp.ge.f32.partialorder %v2500_v27, 0.0  ;;  %v2630_v7 = vmul.f32 %v5078_v4, %v2500_v27 }
 0x313   : > { %vm2568_vm11 = vcmp.ge.f32.partialorder %v2503_v47, 0.0  ;;  %v2633_v41 = vmul.f32 %v5078_v4, %v2503_v47  ;;  %v2357_v21 = vpop.f32.mrf.mxu2  ;;  %v2270_v26 = vpop.f32.mrf.mxu0 }
 0x314   : > { %v2694_v44 = vsel %vm2565_vm10, %v2500_v27, %v2630_v7  ;;  %v2184_v11 = vpop.f32.mrf.mxu3  ;;  %v2358_v24 = vadd.f32 %v2357_v21, %v2268_v48 }
 0x315   : > { %v2697_v1 = vsel %vm2568_vm11, %v2503_v47, %v2633_v41  ;;  %3780 = vst [vmem:[%s5088_s30 + $0xb8] sm:$0xff] %v2694_v44  ;;  %v2185_v29 = vadd.f32 %v2184_v11, %v2095_v5  ;;  %v2097_v46 = vpop.f32.mrf.mxu1 }
 0x316   : > { %2748 = vst [vmem:[%s5088_s30 + $0xc8] sm:$0xff] %v2697_v1  ;;  %v2432_v31 = vadd.f32 %v2358_v24, %v4907_v20 }
 0x317   : > { %v2435_v45 = vadd.f32 %v2185_v29, %v4910_v59 }
 0x318   : > { %v2502_v63 = vadd.f32 %v5099_v8, %v2432_v31 }
 0x319   : > { %v2505_v52 = vadd.f32 %v5075_v0, %v2435_v45 }
 0x31a   : > { %vm2567_vm12 = vcmp.ge.f32.partialorder %v2502_v63, 0.0  ;;  %v2632_v30 = vmul.f32 %v5078_v4, %v2502_v63 }
 0x31b   : > { %vm2570_vm13 = vcmp.ge.f32.partialorder %v2505_v52, 0.0  ;;  %v2635_v50 = vmul.f32 %v5078_v4, %v2505_v52  ;;  %v2359_v28 = vpop.f32.mrf.mxu2  ;;  %v2273_v16 = vpop.f32.mrf.mxu0 }
 0x31c   : > { %v2696_v43 = vsel %vm2567_vm12, %v2502_v63, %v2632_v30  ;;  %v2186_v13 = vpop.f32.mrf.mxu3  ;;  %v2360_v51 = vadd.f32 %v2359_v28, %v2270_v26  ;;  %v5463_v63 = vld [vmem:[#allocation22_spill] sm:$0xff] }
 0x31d   : > { %v2699_v17 = vsel %vm2570_vm13, %v2505_v52, %v2635_v50  ;;  %3781 = vst [vmem:[%s5088_s30 + $0xd0] sm:$0xff] %v2696_v43  ;;  %v2187_v20 = vadd.f32 %v2186_v13, %v2097_v46  ;;  %v2100_v59 = vpop.f32.mrf.mxu1 }
 0x31e   : > { %2749 = vst [vmem:[%s5088_s30 + $0xe0] sm:$0xff] %v2699_v17  ;;  %v2434_v38 = vadd.f32 %v2360_v51, %v4917_v19  ;;  %2312 = vmatmul.bf16.gmra.mxu0 %v3636_v55 }
 0x31f   : > { %v2437_v54 = vadd.f32 %v2187_v20, %v4920_v35 }
 0x320   : > { %v2504_v49 = vadd.f32 %v5099_v8, %v2434_v38  ;;  %3768 = vmatmul.msk.bf16.gmra.mxu2 %vm605_vm0, %v3640_v22 }
 0x321   : > { %v2507_v9 = vadd.f32 %v5075_v0, %v2437_v54  ;;  %v5464_v54 = vld [vmem:[#allocation23_spill] sm:$0xff] }
 0x322   : > { %vm2569_vm14 = vcmp.ge.f32.partialorder %v2504_v49, 0.0  ;;  %v2634_v6 = vmul.f32 %v5078_v4, %v2504_v49 }
 0x323   : > { %vm2572_vm15 = vcmp.ge.f32.partialorder %v2507_v9, 0.0  ;;  %v2637_v10 = vmul.f32 %v5078_v4, %v2507_v9  ;;  %v2362_v57 = vpop.f32.mrf.mxu2  ;;  %v2275_v3 = vpop.f32.mrf.mxu0 }
 0x324   : > { %v2698_v19 = vsel %vm2569_vm14, %v2504_v49, %v2634_v6  ;;  %v2189_v34 = vpop.f32.mrf.mxu3  ;;  %v2363_v36 = vadd.f32 %v2362_v57, %v2273_v16 }
 0x325   : > { %v2701_v32 = vsel %vm2572_vm15, %v2507_v9, %v2637_v10  ;;  %3782 = vst [vmem:[%s5088_s30 + $0xd8] sm:$0xff] %v2698_v19  ;;  %v2190_v35 = vadd.f32 %v2189_v34, %v2100_v59  ;;  %v2102_v60 = vpop.f32.mrf.mxu1  ;;  %v5465_v9 = vld [vmem:[#allocation24_spill] sm:$0xff] }
 0x326   : > { %2750 = vst [vmem:[%s5088_s30 + $0xe8] sm:$0xff] %v2701_v32  ;;  %v2436_v48 = vadd.f32 %v2363_v36, %v4925_v37 }
 0x327   : > { %v2439_v2 = vadd.f32 %v2190_v35, %v4928_v53 }
 0x328   : > { %v2506_v18 = vadd.f32 %v5099_v8, %v2436_v48 }
 0x329   : > { %v2509_v15 = vadd.f32 %v5075_v0, %v2439_v2 }
 0x32a   : > { %vm2571_vm0 = vcmp.ge.f32.partialorder %v2506_v18, 0.0  ;;  %v2636_v55 = vmul.f32 %v5078_v4, %v2506_v18 }
 0x32b   : > { %vm2574_vm1 = vcmp.ge.f32.partialorder %v2509_v15, 0.0  ;;  %v2639_v23 = vmul.f32 %v5078_v4, %v2509_v15  ;;  %v2364_v14 = vpop.f32.mrf.mxu2  ;;  %v2278_v22 = vpop.f32.mrf.mxu0 }
 0x32c   : > { %v2700_v5 = vsel %vm2571_vm0, %v2506_v18, %v2636_v55  ;;  %v2191_v33 = vpop.f32.mrf.mxu3  ;;  %v2365_v58 = vadd.f32 %v2364_v14, %v2275_v3 }
 0x32d   : > { %v2703_v27 = vsel %vm2574_vm1, %v2509_v15, %v2639_v23  ;;  %3783 = vst [vmem:[%s5088_s30 + $0xf0] sm:$0xff] %v2700_v5  ;;  %v2192_v37 = vadd.f32 %v2191_v33, %v2102_v60  ;;  %v2105_v53 = vpop.f32.mrf.mxu1  ;;  %v5466_v15 = vld [vmem:[#allocation25_spill] sm:$0xff]  ;;  %v5467_v23 = vld [vmem:[#allocation3_spill] sm:$0xff] }
 0x32e   : > { %2751 = vst [vmem:[%s5088_s30 + $0x100] sm:$0xff] %v2703_v27  ;;  %v2438_v47 = vadd.f32 %v2365_v58, %v4935_v62 }
 0x32f   : > { %v2441_v7 = vadd.f32 %v2192_v37, %v4938_v56 }
 0x330   : > { %v2508_v41 = vadd.f32 %v5099_v8, %v2438_v47 }
 0x331   : > { %v2511_v21 = vadd.f32 %v5075_v0, %v2441_v7 }
 0x332   : > { %vm2573_vm2 = vcmp.ge.f32.partialorder %v2508_v41, 0.0  ;;  %v2638_v26 = vmul.f32 %v5078_v4, %v2508_v41 }
 0x333   : > { %vm2576_vm3 = vcmp.ge.f32.partialorder %v2511_v21, 0.0  ;;  %v2641_v44 = vmul.f32 %v5078_v4, %v2511_v21  ;;  %v2367_v11 = vpop.f32.mrf.mxu2  ;;  %v2280_v24 = vpop.f32.mrf.mxu0 }
 0x334   : > { %v2702_v1 = vsel %vm2573_vm2, %v2508_v41, %v2638_v26  ;;  %v2194_v29 = vpop.f32.mrf.mxu3  ;;  %v2368_v46 = vadd.f32 %v2367_v11, %v2278_v22 }
 0x335   : > { %v2705_v31 = vsel %vm2576_vm3, %v2511_v21, %v2641_v44  ;;  %3784 = vst [vmem:[%s5088_s30 + $0xf8] sm:$0xff] %v2702_v1  ;;  %v2195_v62 = vadd.f32 %v2194_v29, %v2105_v53  ;;  %v2107_v56 = vpop.f32.mrf.mxu1  ;;  %v5468_v44 = vld [vmem:[#allocation5_spill] sm:$0xff] }
 0x336   : > { %2752 = vst [vmem:[%s5088_s30 + $0x108] sm:$0xff] %v2705_v31  ;;  %v2440_v45 = vadd.f32 %v2368_v46, %v4943_v12 }
 0x337   : > { %v2443_v52 = vadd.f32 %v2195_v62, %v5463_v63 }
 0x338   : > { %v2510_v30 = vadd.f32 %v5099_v8, %v2440_v45 }
 0x339   : > { %v2513_v50 = vadd.f32 %v5075_v0, %v2443_v52 }
 0x33a   : > { %vm2575_vm4 = vcmp.ge.f32.partialorder %v2510_v30, 0.0  ;;  %v2640_v28 = vmul.f32 %v5078_v4, %v2510_v30 }
 0x33b   : > { %vm2578_vm5 = vcmp.ge.f32.partialorder %v2513_v50, 0.0  ;;  %v2643_v16 = vmul.f32 %v5078_v4, %v2513_v50  ;;  %v2369_v43 = vpop.f32.mrf.mxu2  ;;  %v2283_v13 = vpop.f32.mrf.mxu0 }
 0x33c   : > { %v2704_v51 = vsel %vm2575_vm4, %v2510_v30, %v2640_v28  ;;  %v2196_v17 = vpop.f32.mrf.mxu3  ;;  %v2370_v20 = vadd.f32 %v2369_v43, %v2280_v24  ;;  %v5469_v24 = vld [vmem:[#allocation4_spill] sm:$0xff]  ;;  %v5470_v43 = vld [vmem:[#allocation7_spill] sm:$0xff] }
 0x33d   : > { %v2707_v59 = vsel %vm2578_vm5, %v2513_v50, %v2643_v16  ;;  %3785 = vst [vmem:[%s5088_s30 + $0x110] sm:$0xff] %v2704_v51  ;;  %v2197_v12 = vadd.f32 %v2196_v17, %v2107_v56  ;;  %v2110_v38 = vpop.f32.mrf.mxu1  ;;  %v5471_v51 = vld [vmem:[#allocation6_spill] sm:$0xff] }
 0x33e   : > { %2753 = vst [vmem:[%s5088_s30 + $0x120] sm:$0xff] %v2707_v59  ;;  %v2442_v49 = vadd.f32 %v2370_v20, %v5464_v54 }
 0x33f   : > { %v2445_v6 = vadd.f32 %v2197_v12, %v5465_v9 }
 0x340   : > { %v2512_v10 = vadd.f32 %v5099_v8, %v2442_v49 }
 0x341   : > { %v2515_v57 = vadd.f32 %v5075_v0, %v2445_v6 }
 0x342   : > { %vm2577_vm6 = vcmp.ge.f32.partialorder %v2512_v10, 0.0  ;;  %v2642_v3 = vmul.f32 %v5078_v4, %v2512_v10 }
 0x343   : > { %vm2580_vm7 = vcmp.ge.f32.partialorder %v2515_v57, 0.0  ;;  %v2645_v19 = vmul.f32 %v5078_v4, %v2515_v57  ;;  %v2372_v34 = vpop.f32.mrf.mxu2  ;;  %v2285_v36 = vpop.f32.mrf.mxu0 }
 0x344   : > { %v2706_v32 = vsel %vm2577_vm6, %v2512_v10, %v2642_v3  ;;  %v2199_v35 = vpop.f32.mrf.mxu3  ;;  %v2373_v60 = vadd.f32 %v2372_v34, %v2283_v13  ;;  %v5472_v34 = vld [vmem:[#allocation9_spill] sm:$0xff] }
 0x345   : > { %v2709_v48 = vsel %vm2580_vm7, %v2515_v57, %v2645_v19  ;;  %3786 = vst [vmem:[%s5088_s30 + $0x118] sm:$0xff] %v2706_v32  ;;  %v2200_v2 = vadd.f32 %v2199_v35, %v2110_v38  ;;  %v2112_v18 = vpop.f32.mrf.mxu1  ;;  %v5473_v32 = vld [vmem:[#allocation8_spill] sm:$0xff] }
 0x346   : > { %2754 = vst [vmem:[%s5088_s30 + $0x128] sm:$0xff] %v2709_v48  ;;  %v2444_v55 = vadd.f32 %v2373_v60, %v5466_v15 }
 0x347   : > { %v2447_v14 = vadd.f32 %v2200_v2, %v5467_v23 }
 0x348   : > { %v2514_v22 = vadd.f32 %v5099_v8, %v2444_v55 }
 0x349   : > { %v2517_v5 = vadd.f32 %v5075_v0, %v2447_v14 }
 0x34a   : > { %vm2579_vm8 = vcmp.ge.f32.partialorder %v2514_v22, 0.0  ;;  %v2644_v33 = vmul.f32 %v5078_v4, %v2514_v22 }
 0x34b   : > { %vm2582_vm9 = vcmp.ge.f32.partialorder %v2517_v5, 0.0  ;;  %v2647_v58 = vmul.f32 %v5078_v4, %v2517_v5  ;;  %v2374_v27 = vpop.f32.mrf.mxu2  ;;  %v2288_v37 = vpop.f32.mrf.mxu0 }
 0x34c   : > { %v2708_v53 = vsel %vm2579_vm8, %v2514_v22, %v2644_v33  ;;  %v2201_v47 = vpop.f32.mrf.mxu3  ;;  %v2375_v7 = vadd.f32 %v2374_v27, %v2285_v36 }
 0x34d   : > { %v2711_v41 = vsel %vm2582_vm9, %v2517_v5, %v2647_v58  ;;  %3787 = vst [vmem:[%s5088_s30 + $0x130] sm:$0xff] %v2708_v53  ;;  %v2202_v21 = vadd.f32 %v2201_v47, %v2112_v18  ;;  %v2115_v26 = vpop.f32.mrf.mxu1 }
 0x34e   : > { %2755 = vst [vmem:[%s5088_s30 + $0x140] sm:$0xff] %v2711_v41  ;;  %v2446_v11 = vadd.f32 %v2375_v7, %v5468_v44 }
 0x34f   : > { %v2449_v1 = vadd.f32 %v2202_v21, %v5469_v24 }
 0x350   : > { %v2516_v29 = vadd.f32 %v5099_v8, %v2446_v11 }
 0x351   : > { %v2519_v46 = vadd.f32 %v5075_v0, %v2449_v1 }
 0x352   : > { %vm2581_vm10 = vcmp.ge.f32.partialorder %v2516_v29, 0.0  ;;  %v2646_v31 = vmul.f32 %v5078_v4, %v2516_v29 }
 0x353   : > { %vm2584_vm11 = vcmp.ge.f32.partialorder %v2519_v46, 0.0  ;;  %v2649_v62 = vmul.f32 %v5078_v4, %v2519_v46  ;;  %v2377_v56 = vpop.f32.mrf.mxu2  ;;  %v2290_v45 = vpop.f32.mrf.mxu0 }
 0x354   : > { %v2710_v63 = vsel %vm2581_vm10, %v2516_v29, %v2646_v31  ;;  %v2204_v52 = vpop.f32.mrf.mxu3  ;;  %v2378_v30 = vadd.f32 %v2377_v56, %v2288_v37  ;;  %v5474_v29 = vld [vmem:[#allocation11_spill] sm:$0xff]  ;;  %v5475_v31 = vld [vmem:[#allocation10_spill] sm:$0xff] }
 0x355   : > { %v2713_v50 = vsel %vm2584_vm11, %v2519_v46, %v2649_v62  ;;  %3788 = vst [vmem:[%s5088_s30 + $0x138] sm:$0xff] %v2710_v63  ;;  %v2205_v28 = vadd.f32 %v2204_v52, %v2115_v26  ;;  %v2117_v16 = vpop.f32.mrf.mxu1 }
 0x356   : > { %2756 = vst [vmem:[%s5088_s30 + $0x148] sm:$0xff] %v2713_v50  ;;  %v2448_v13 = vadd.f32 %v2378_v30, %v5470_v43 }
 0x357   : > { %v2451_v17 = vadd.f32 %v2205_v28, %v5471_v51 }
 0x358   : > { %v2518_v20 = vadd.f32 %v5099_v8, %v2448_v13 }
 0x359   : > { %v2521_v59 = vadd.f32 %v5075_v0, %v2451_v17 }
 0x35a   : > { %vm2583_vm12 = vcmp.ge.f32.partialorder %v2518_v20, 0.0  ;;  %v2648_v12 = vmul.f32 %v5078_v4, %v2518_v20 }
 0x35b   : > { %vm2586_vm13 = vcmp.ge.f32.partialorder %v2521_v59, 0.0  ;;  %v2651_v38 = vmul.f32 %v5078_v4, %v2521_v59  ;;  %v2379_v54 = vpop.f32.mrf.mxu2  ;;  %v2293_v49 = vpop.f32.mrf.mxu0 }
 0x35c   : > { %v2712_v9 = vsel %vm2583_vm12, %v2518_v20, %v2648_v12  ;;  %v2206_v6 = vpop.f32.mrf.mxu3  ;;  %v2380_v10 = vadd.f32 %v2379_v54, %v2290_v45  ;;  %v5476_v20 = vld [vmem:[#allocation13_spill] sm:$0xff]  ;;  %v5477_v12 = vld [vmem:[#allocation12_spill] sm:$0xff] }
 0x35d   : > { %v2715_v57 = vsel %vm2586_vm13, %v2521_v59, %v2651_v38  ;;  %3789 = vst [vmem:[%s5088_s30 + $0x150] sm:$0xff] %v2712_v9  ;;  %v2207_v3 = vadd.f32 %v2206_v6, %v2117_v16  ;;  %v2120_v19 = vpop.f32.mrf.mxu1 }
 0x35e   : > { %2757 = vst [vmem:[%s5088_s30 + $0x160] sm:$0xff] %v2715_v57  ;;  %v2450_v36 = vadd.f32 %v2380_v10, %v5472_v34 }
 0x35f   : > { %v2453_v35 = vadd.f32 %v2207_v3, %v5473_v32 }
 0x360   : > { %v2520_v60 = vadd.f32 %v5099_v8, %v2450_v36 }
 0x361   : > { %v2523_v48 = vadd.f32 %v5075_v0, %v2453_v35 }
 0x362   : > { %vm2585_vm14 = vcmp.ge.f32.partialorder %v2520_v60, 0.0  ;;  %v2650_v2 = vmul.f32 %v5078_v4, %v2520_v60 }
 0x363   : > { %vm2588_vm15 = vcmp.ge.f32.partialorder %v2523_v48, 0.0  ;;  %v2653_v18 = vmul.f32 %v5078_v4, %v2523_v48  ;;  %v2382_v15 = vpop.f32.mrf.mxu2  ;;  %v2295_v55 = vpop.f32.mrf.mxu0 }
 0x364   : > { %v2714_v23 = vsel %vm2585_vm14, %v2520_v60, %v2650_v2  ;;  %v2209_v14 = vpop.f32.mrf.mxu3  ;;  %v2383_v22 = vadd.f32 %v2382_v15, %v2293_v49  ;;  %v5478_v60 = vld [vmem:[#allocation15_spill] sm:$0xff]  ;;  %v5479_v2 = vld [vmem:[#allocation14_spill] sm:$0xff] }
 0x365   : > { %v2717_v5 = vsel %vm2588_vm15, %v2523_v48, %v2653_v18  ;;  %3790 = vst [vmem:[%s5088_s30 + $0x158] sm:$0xff] %v2714_v23  ;;  %v2210_v33 = vadd.f32 %v2209_v14, %v2120_v19  ;;  %v2122_v58 = vpop.f32.mrf.mxu1 }
 0x366   : > { %2758 = vst [vmem:[%s5088_s30 + $0x168] sm:$0xff] %v2717_v5  ;;  %v2452_v27 = vadd.f32 %v2383_v22, %v4997_v42 }
 0x367   : > { %v2455_v37 = vadd.f32 %v2210_v33, %v5000_v61 }
 0x368   : > { %v2522_v53 = vadd.f32 %v5099_v8, %v2452_v27 }
 0x369   : > { %v2525_v47 = vadd.f32 %v5075_v0, %v2455_v37 }
 0x36a   : > { %vm2587_vm0 = vcmp.ge.f32.partialorder %v2522_v53, 0.0  ;;  %v2652_v7 = vmul.f32 %v5078_v4, %v2522_v53 }
 0x36b   : > { %vm2590_vm1 = vcmp.ge.f32.partialorder %v2525_v47, 0.0  ;;  %v2655_v41 = vmul.f32 %v5078_v4, %v2525_v47  ;;  %v2384_v21 = vpop.f32.mrf.mxu2  ;;  %v2298_v26 = vpop.f32.mrf.mxu0 }
 0x36c   : > { %v2716_v44 = vsel %vm2587_vm0, %v2522_v53, %v2652_v7  ;;  %v2211_v11 = vpop.f32.mrf.mxu3  ;;  %v2385_v24 = vadd.f32 %v2384_v21, %v2295_v55 }
 0x36d   : > { %v2719_v1 = vsel %vm2590_vm1, %v2525_v47, %v2655_v41  ;;  %3791 = vst [vmem:[%s5088_s30 + $0x170] sm:$0xff] %v2716_v44  ;;  %v2212_v42 = vadd.f32 %v2211_v11, %v2122_v58  ;;  %v2125_v61 = vpop.f32.mrf.mxu1 }
 0x36e   : > { %2759 = vst [vmem:[%s5088_s30 + $0x180] sm:$0xff] %v2719_v1  ;;  %v2454_v46 = vadd.f32 %v2385_v24, %v5474_v29 }
 0x36f   : > { %v2457_v62 = vadd.f32 %v2212_v42, %v5475_v31  ;;  %v5480_v31 = vld [vmem:[#allocation17_spill] sm:$0xff] }
 0x370   : > { %v2524_v56 = vadd.f32 %v5099_v8, %v2454_v46 }
 0x371   : > { %v2527_v45 = vadd.f32 %v5075_v0, %v2457_v62 }
 0x372   : > { %vm2589_vm2 = vcmp.ge.f32.partialorder %v2524_v56, 0.0  ;;  %v2654_v63 = vmul.f32 %v5078_v4, %v2524_v56 }
 0x373   : > { %vm2592_vm3 = vcmp.ge.f32.partialorder %v2527_v45, 0.0  ;;  %v2657_v52 = vmul.f32 %v5078_v4, %v2527_v45  ;;  %v2387_v30 = vpop.f32.mrf.mxu2  ;;  %v2300_v50 = vpop.f32.mrf.mxu0 }
 0x374   : > { %v2718_v28 = vsel %vm2589_vm2, %v2524_v56, %v2654_v63  ;;  %v2214_v16 = vpop.f32.mrf.mxu3  ;;  %v2388_v43 = vadd.f32 %v2387_v30, %v2298_v26 }
 0x375   : > { %v2721_v13 = vsel %vm2592_vm3, %v2527_v45, %v2657_v52  ;;  %3792 = vst [vmem:[%s5088_s30 + $0x178] sm:$0xff] %v2718_v28  ;;  %v2215_v51 = vadd.f32 %v2214_v16, %v2125_v61  ;;  %v2127_v17 = vpop.f32.mrf.mxu1 }
 0x376   : > { %2760 = vst [vmem:[%s5088_s30 + $0x188] sm:$0xff] %v2721_v13  ;;  %v2456_v59 = vadd.f32 %v2388_v43, %v5476_v20  ;;  %v5482_v20 = vld [vmem:[#allocation19_spill] sm:$0xff] }
 0x377   : > { %v2459_v38 = vadd.f32 %v2215_v51, %v5477_v12  ;;  %v5481_v51 = vld [vmem:[#allocation16_spill] sm:$0xff] }
 0x378   : > { %v2526_v54 = vadd.f32 %v5099_v8, %v2456_v59 }
 0x379   : > { %v2529_v49 = vadd.f32 %v5075_v0, %v2459_v38 }
 0x37a   : > { %vm2591_vm4 = vcmp.ge.f32.partialorder %v2526_v54, 0.0  ;;  %v2656_v9 = vmul.f32 %v5078_v4, %v2526_v54 }
 0x37b   : > { %vm2594_vm5 = vcmp.ge.f32.partialorder %v2529_v49, 0.0  ;;  %v2659_v6 = vmul.f32 %v5078_v4, %v2529_v49  ;;  %v2389_v10 = vpop.f32.mrf.mxu2  ;;  %v2303_v57 = vpop.f32.mrf.mxu0 }
 0x37c   : > { %v2720_v3 = vsel %vm2591_vm4, %v2526_v54, %v2656_v9  ;;  %v2216_v19 = vpop.f32.mrf.mxu3  ;;  %v2390_v34 = vadd.f32 %v2389_v10, %v2300_v50 }
 0x37d   : > { %v2723_v36 = vsel %vm2594_vm5, %v2529_v49, %v2659_v6  ;;  %3793 = vst [vmem:[%s5088_s30 + $0x190] sm:$0xff] %v2720_v3  ;;  %v2217_v32 = vadd.f32 %v2216_v19, %v2127_v17  ;;  %v2130_v35 = vpop.f32.mrf.mxu1 }
 0x37e   : > { %2761 = vst [vmem:[%s5088_s30 + $0x1a0] sm:$0xff] %v2723_v36  ;;  %v2458_v48 = vadd.f32 %v2390_v34, %v5478_v60  ;;  %v5484_v60 = vld [vmem:[#allocation20_spill] sm:$0xff] }
 0x37f   : > { %v2461_v18 = vadd.f32 %v2217_v32, %v5479_v2  ;;  %v5483_v32 = vld [vmem:[#allocation18_spill] sm:$0xff] }
 0x380   : > { %v2528_v15 = vadd.f32 %v5099_v8, %v2458_v48 }
 0x381   : > { %v2531_v55 = vadd.f32 %v5075_v0, %v2461_v18 }
 0x382   : > { %vm2593_vm6 = vcmp.ge.f32.partialorder %v2528_v15, 0.0  ;;  %v2658_v23 = vmul.f32 %v5078_v4, %v2528_v15 }
 0x383   : > { %vm2596_vm7 = vcmp.ge.f32.partialorder %v2531_v55, 0.0  ;;  %v2661_v14 = vmul.f32 %v5078_v4, %v2531_v55  ;;  %v2392_v22 = vpop.f32.mrf.mxu2  ;;  %v2305_v5 = vpop.f32.mrf.mxu0 }
 0x384   : > { %v2722_v33 = vsel %vm2593_vm6, %v2528_v15, %v2658_v23  ;;  %v2219_v58 = vpop.f32.mrf.mxu3  ;;  %v2393_v27 = vadd.f32 %v2392_v22, %v2303_v57 }
 0x385   : > { %v2725_v37 = vsel %vm2596_vm7, %v2531_v55, %v2661_v14  ;;  %3794 = vst [vmem:[%s5088_s30 + $0x198] sm:$0xff] %v2722_v33  ;;  %v2220_v53 = vadd.f32 %v2219_v58, %v2130_v35  ;;  %v2132_v7 = vpop.f32.mrf.mxu1  ;;  %v5485_v58 = vld [vmem:[#allocation21_spill] sm:$0xff] }
 0x386   : > { %2762 = vst [vmem:[%s5088_s30 + $0x1a8] sm:$0xff] %v2725_v37  ;;  %v2460_v47 = vadd.f32 %v2393_v27, %v5033_v25 }
 0x387   : > { %v2463_v41 = vadd.f32 %v2220_v53, %v5036_v40 }
 0x388   : > { %v2530_v21 = vadd.f32 %v5099_v8, %v2460_v47 }
 0x389   : > { %v2533_v26 = vadd.f32 %v5075_v0, %v2463_v41 }
 0x38a   : > { %vm2595_vm8 = vcmp.ge.f32.partialorder %v2530_v21, 0.0  ;;  %v2660_v44 = vmul.f32 %v5078_v4, %v2530_v21 }
 0x38b   : > { %vm2598_vm9 = vcmp.ge.f32.partialorder %v2533_v26, 0.0  ;;  %v2663_v11 = vmul.f32 %v5078_v4, %v2533_v26  ;;  %v2394_v24 = vpop.f32.mrf.mxu2  ;;  %v2308_v46 = vpop.f32.mrf.mxu0 }
 0x38c   : > { %v2724_v1 = vsel %vm2595_vm8, %v2530_v21, %v2660_v44  ;;  %v2221_v42 = vpop.f32.mrf.mxu3  ;;  %v2395_v61 = vadd.f32 %v2394_v24, %v2305_v5  ;;  %v5486_v21 = vld [vmem:[#allocation26_spill] sm:$0xff] }
 0x38d   : > { %v2727_v29 = vsel %vm2598_vm9, %v2533_v26, %v2663_v11  ;;  %3795 = vst [vmem:[%s5088_s30 + $0x1b0] sm:$0xff] %v2724_v1  ;;  %v2222_v25 = vadd.f32 %v2221_v42, %v2132_v7  ;;  %v2135_v45 = vpop.f32.mrf.mxu1 }
 0x38e   : > { %2763 = vst [vmem:[%s5088_s30 + $0x1c0] sm:$0xff] %v2727_v29  ;;  %v2462_v40 = vadd.f32 %v2395_v61, %v5043_v39 }
 0x38f   : > { %v2465_v62 = vadd.f32 %v2222_v25, %v5480_v31 }
 0x390   : > { %v2532_v56 = vadd.f32 %v5099_v8, %v2462_v40 }
 0x391   : > { %v2535_v63 = vadd.f32 %v5075_v0, %v2465_v62 }
 0x392   : > { %vm2597_vm10 = vcmp.ge.f32.partialorder %v2532_v56, 0.0  ;;  %v2662_v52 = vmul.f32 %v5078_v4, %v2532_v56 }
 0x393   : > { %vm2600_vm11 = vcmp.ge.f32.partialorder %v2535_v63, 0.0  ;;  %v2665_v30 = vmul.f32 %v5078_v4, %v2535_v63  ;;  %v2397_v50 = vpop.f32.mrf.mxu2  ;;  %v2310_v12 = vpop.f32.mrf.mxu0 }
 0x394   : > { %v2726_v28 = vsel %vm2597_vm10, %v2532_v56, %v2662_v52  ;;  %v2224_v16 = vpop.f32.mrf.mxu3  ;;  %v2398_v43 = vadd.f32 %v2397_v50, %v2308_v46 }
 0x395   : > { %v2729_v13 = vsel %vm2600_vm11, %v2535_v63, %v2665_v30  ;;  %3796 = vst [vmem:[%s5088_s30 + $0x1b8] sm:$0xff] %v2726_v28  ;;  %v2225_v39 = vadd.f32 %v2224_v16, %v2135_v45  ;;  %v2137_v9 = vpop.f32.mrf.mxu1 }
 0x396   : > { %2764 = vst [vmem:[%s5088_s30 + $0x1c8] sm:$0xff] %v2729_v13  ;;  %v2464_v17 = vadd.f32 %v2398_v43, %v5481_v51 }
 0x397   : > { %v2467_v59 = vadd.f32 %v2225_v39, %v5482_v20 }
 0x398   : > { %v2534_v38 = vadd.f32 %v5099_v8, %v2464_v17 }
 0x399   : > { %v2537_v54 = vadd.f32 %v5075_v0, %v2467_v59 }
 0x39a   : > { %vm2599_vm12 = vcmp.ge.f32.partialorder %v2534_v38, 0.0  ;;  %v2664_v49 = vmul.f32 %v5078_v4, %v2534_v38 }
 0x39b   : > { %vm2602_vm13 = vcmp.ge.f32.partialorder %v2537_v54, 0.0  ;;  %v2667_v6 = vmul.f32 %v5078_v4, %v2537_v54  ;;  %v2399_v10 = vpop.f32.mrf.mxu2  ;;  %v2313_v15 = vpop.f32.mrf.mxu0 }
 0x39c   : > { %v2728_v57 = vsel %vm2599_vm12, %v2534_v38, %v2664_v49  ;;  %v2226_v3 = vpop.f32.mrf.mxu3  ;;  %v2400_v19 = vadd.f32 %v2399_v10, %v2310_v12 }
 0x39d   : > { %v2731_v34 = vsel %vm2602_vm13, %v2537_v54, %v2667_v6  ;;  %3797 = vst [vmem:[%s5088_s30 + $0x1d0] sm:$0xff] %v2728_v57  ;;  %v2227_v36 = vadd.f32 %v2226_v3, %v2137_v9 }
 0x39e   : > { %2765 = vst [vmem:[%s5088_s30 + $0x1e0] sm:$0xff] %v2731_v34  ;;  %v2466_v35 = vadd.f32 %v2400_v19, %v5483_v32 }
 0x39f   : > { %v2469_v48 = vadd.f32 %v2227_v36, %v5484_v60 }
 0x3a0   : > { %v2536_v2 = vadd.f32 %v5099_v8, %v2466_v35 }
 0x3a1   : > { %v2539_v18 = vadd.f32 %v5075_v0, %v2469_v48 }
 0x3a2   : > { %vm2601_vm14 = vcmp.ge.f32.partialorder %v2536_v2, 0.0  ;;  %v2666_v55 = vmul.f32 %v5078_v4, %v2536_v2 }
 0x3a3   : > { %vm2604_vm15 = vcmp.ge.f32.partialorder %v2539_v18, 0.0  ;;  %v2669_v23 = vmul.f32 %v5078_v4, %v2539_v18  ;;  %v2402_v14 = vpop.f32.mrf.mxu2  ;;  %v2315_v53 = vpop.f32.mrf.mxu0 }
 0x3a4   : > { %v2730_v22 = vsel %vm2601_vm14, %v2536_v2, %v2666_v55  ;;  %v2403_v5 = vadd.f32 %v2402_v14, %v2313_v15 }
 0x3a5   : > { %v2733_v33 = vsel %vm2604_vm15, %v2539_v18, %v2669_v23  ;;  %3798 = vst [vmem:[%s5088_s30 + $0x1d8] sm:$0xff] %v2730_v22 }
 0x3a6   : > { %2766 = vst [vmem:[%s5088_s30 + $0x1e8] sm:$0xff] %v2733_v33  ;;  %v2468_v27 = vadd.f32 %v2403_v5, %v5485_v58 }
 0x3a8   : > { %v2538_v37 = vadd.f32 %v5099_v8, %v2468_v27 }
 0x3aa   : > { %vm2603_vm0 = vcmp.ge.f32.partialorder %v2538_v37, 0.0  ;;  %v2668_v0 = vmul.f32 %v5078_v4, %v2538_v37 }
 0x3ab   : > { %v2404_v47 = vpop.f32.mrf.mxu2 }
 0x3ac   : > { %v2732_v7 = vsel %vm2603_vm0, %v2538_v37, %v2668_v0  ;;  %v2405_v41 = vadd.f32 %v2404_v47, %v2315_v53 }
 0x3ad   : > { %3799 = vst [vmem:[%s5088_s30 + $0x1f0] sm:$0xff] %v2732_v7 }
 0x3ae   : > { %v2470_v26 = vadd.f32 %v2405_v41, %v5486_v21 }
 0x3b0   : > { %v2540_v44 = vadd.f32 %v5099_v8, %v2470_v26 }
 0x3b2   : > { %vm2605_vm1 = vcmp.ge.f32.partialorder %v2540_v44, 0.0  ;;  %v2670_v11 = vmul.f32 %v5078_v4, %v2540_v44 }
 0x3b4   : > { %v2734_v24 = vsel %vm2605_vm1, %v2540_v44, %v2670_v11 }
 0x3b5   : > { %3800 = vst [vmem:[%s5088_s30 + $0x1f8] sm:$0xff] %v2734_v24 }
 0x3b6 PF: > { %s15_s19 = sadd.s32 1, %s4019_s19   ;;  %s5487_s17 = smov %s4015_s18 }
 0x3b7   : > { %p12_p6 = scmp.ge.s32.totalorder %s15_s19, 4   ;;  %s5488_s18 = smov %s5490_s3 }
 0x3b9   :  { %14 = sbr.rel (!%p12_p6) target bundleno = 2 (0x2), region = 72 }

</bundles_post_ra>
